<compile_context>
chip_gen: v7x
topology: tpu7x:2x2x1
jax: 0.10.0
libtpu: 0.0.40
codegen_flags: <defaults>
</compile_context>

<pallas_src>
import numpy as np
import jax
import jax.numpy as jnp
from jax import lax
from jax.experimental import pallas as pl
from jax.experimental.pallas import tpu as pltpu

EPS = 1e-5   # nn.InstanceNorm2d default (affine=False, no running stats)
LANE = 128


# --------------------------------------------------------------------------
# Fused Pallas kernel (per image): conv1 + IN + ReLU + refpad + conv2 + IN + res
# --------------------------------------------------------------------------
def _make_resblock_kernel(H, W):
    HW = H * W
    inv_hw = 1.0 / float(HW)

    def _instance_norm(acc):
        # Single-pass: one sweep produces sum and sum-of-squares.
        s = jnp.sum(acc, axis=0, keepdims=True)
        ss = jnp.sum(acc * acc, axis=0, keepdims=True)
        mean = s * inv_hw
        var = jnp.maximum(ss * inv_hw - mean * mean, 0.0)
        return (acc - mean) * lax.rsqrt(var + EPS)

    def _conv3x3(tap_load, w_ref, col0, collast):
        # tap_load(dy) returns the sublane-aligned (HW, Cp) bf16 slab slice whose
        # row r is padded-row (r//W + dy) of the row-reflect-padded image.
        # Column-direction reflection is handled by rolling +/-1 along the flat
        # spatial axis and fixing the two boundary columns with selects:
        #   left  tap (dx=0): roll(+1), boundary col 0   -> use roll(-1) value
        #   right tap (dx=2): roll(-1), boundary col W-1 -> use roll(+1) value
        # Roll wraparound rows only ever land on those boundary columns, so the
        # selects make the result exact.
        acc = None
        for dy in range(3):
            f_c = tap_load(dy)                                  # (HW, Cp) bf16
            f32 = f_c.astype(jnp.float32)                       # rolls in f32 (32-bit XLU path)
            f_m = pltpu.roll(f32, shift=1, axis=0)              # row p -> value of row p-1
            f_p = pltpu.roll(f32, shift=HW - 1, axis=0)         # row p -> value of row p+1
            t_l = jnp.where(col0, f_p, f_m).astype(jnp.bfloat16)
            t_r = jnp.where(collast, f_m, f_p).astype(jnp.bfloat16)
            # Fold the 3 column taps into the contraction (K) axis: one MXU dot
            # per dy with K = 3*Cp, accumulation happens inside the MXU.
            taps = jnp.concatenate([t_l, f_c, t_r], axis=1)     # (HW, 3*Cp) bf16
            part = jnp.dot(taps, w_ref[dy], preferred_element_type=jnp.float32)
            acc = part if acc is None else acc + part
        return acc

    def kernel(xe_ref, w1_ref, w2_ref, o_ref, he_ref):
        cp = o_ref.shape[2]

        # Cheap column masks: (HW,1) iota + modulo, then a lane-broadcast of the
        # small int column (no full-tile iota, no full-tile modulo).
        col1 = lax.broadcasted_iota(jnp.int32, (HW, 1), 0) % W
        col = jnp.broadcast_to(col1, (HW, cp))
        col0 = col == 0
        collast = col == W - 1

        # ---- stage 1: conv3x3 + InstanceNorm + ReLU (taps straight off input) --
        acc1 = _conv3x3(lambda dy: xe_ref[0, dy * W:dy * W + HW, :],
                        w1_ref, col0, collast)
        h = jnp.maximum(_instance_norm(acc1), 0.0)

        # ---- row-reflection pad of h, written straight into the VMEM scratch ---
        # (scratch rows: 0 = reflect, 1..H = h, H+1 = reflect; offsets are
        #  multiples of W -> sublane-aligned when W % 8 == 0, e.g. CycleGAN W=64)
        he_ref[W:W + HW, :] = h.astype(jnp.bfloat16)                 # interior
        he_ref[0:W, :] = he_ref[2 * W:3 * W, :]                      # reflect h row 1
        he_ref[(H + 1) * W:(H + 2) * W, :] = he_ref[(H - 1) * W:H * W, :]  # reflect h row H-2

        # ---- stage 2: conv3x3 + InstanceNorm + residual add --------------------
        acc2 = _conv3x3(lambda dy: he_ref[dy * W:dy * W + HW, :],
                        w2_ref, col0, collast)
        y = _instance_norm(acc2)
        # Residual uses the bf16 input slab (documented ~1e-3 rel rounding of x).
        o_ref[0] = xe_ref[0, W:W + HW, :].astype(jnp.float32) + y

    return kernel


# --------------------------------------------------------------------------
# Wrapper: layout plumbing (NCHW <-> lane-padded flat NHWC) + pallas_call
# --------------------------------------------------------------------------
def _round_up(n, m):
    return (n + m - 1) // m * m


def _prep_weight(w, cp):
    # (Cout, Cin, 3, 3) -> (3, 3*Cp, Cp) bf16: per ky row, the three kx taps are
    # concatenated along the contraction axis in order kx=0,1,2 to match the
    # in-kernel tap block [t_left | f_center | t_right]; channels zero-padded.
    cout, cin, _, _ = w.shape
    wk = jnp.transpose(w.astype(jnp.float32), (2, 3, 1, 0))          # (ky, kx, Cin, Cout)
    wk = jnp.pad(wk, ((0, 0), (0, 0), (0, cp - cin), (0, cp - cout)))
    return wk.reshape(3, 3 * cp, cp).astype(jnp.bfloat16)


def residual_block(x_nchw, w1, b1, w2, b2):
    """Fused Pallas forward of ResidualBlock.  b1/b2 are accepted for interface
    parity but unused: a conv bias is cancelled exactly by the following
    InstanceNorm2d(affine=False)."""
    del b1, b2
    N, C, H, W = x_nchw.shape
    assert H >= 2 and W >= 2, "ReflectionPad2d(1) needs H, W >= 2"
    cp = _round_up(max(C, LANE), LANE)
    hw = H * W

    x = jnp.transpose(x_nchw, (0, 2, 3, 1)).astype(jnp.float32)      # NHWC
    if cp != C:
        x = jnp.pad(x, ((0, 0), (0, 0), (0, 0), (0, cp - C)))        # lane-pad channels
    # Row-direction reflect pad only (no guard rows needed: the +/-1 column taps
    # are built in-kernel with rolls); flatten rows, ship as bf16.
    xr = jnp.pad(x, ((0, 0), (1, 1), (0, 0), (0, 0)), mode="reflect")
    xe = xr.reshape(N, (H + 2) * W, cp).astype(jnp.bfloat16)

    w1k = _prep_weight(w1, cp)
    w2k = _prep_weight(w2, cp)

    y = pl.pallas_call(
        _make_resblock_kernel(H, W),
        out_shape=jax.ShapeDtypeStruct((N, hw, cp), jnp.float32),
        grid=(N,),
        in_specs=[
            pl.BlockSpec((1, (H + 2) * W, cp), lambda n: (n, 0, 0)),
            pl.BlockSpec((3, 3 * cp, cp), lambda n: (0, 0, 0)),      # constant across grid
            pl.BlockSpec((3, 3 * cp, cp), lambda n: (0, 0, 0)),
        ],
        out_specs=pl.BlockSpec((1, hw, cp), lambda n: (n, 0, 0)),
        scratch_shapes=[
            pltpu.VMEM(((H + 2) * W, cp), jnp.bfloat16),             # padded h staging
        ],
        compiler_params=pltpu.CompilerParams(
            dimension_semantics=("parallel",),
            # 64 MiB: fits the ~30-40 MiB footprint at CycleGAN sizes with headroom
            # on v7x (64 MiB physical); v5e/v6e (128 MiB) could raise this further
            # to enable a single K=9*Cp dot per stage.
            vmem_limit_bytes=64 * 1024 * 1024,
        ),
    )(xe, w1k, w2k)

    y = y[:, :, :C].reshape(N, H, W, C)
    return jnp.transpose(y, (0, 3, 1, 2))                            # back to NCHW


# --------------------------------------------------------------------------
# Pure-JAX reference (mirrors the PyTorch module exactly) for validation
# --------------------------------------------------------------------------
def _ref_forward(x, w1, b1, w2, b2):
    def conv(z, w, b):
        zp = jnp.pad(z, ((0, 0), (0, 0), (1, 1), (1, 1)), mode="reflect")
        y = lax.conv_general_dilated(zp, w, (1, 1), "VALID",
                                     dimension_numbers=("NCHW", "OIHW", "NCHW"))
        return y + b[None, :, None, None]

    def inorm(z):
        m = z.mean(axis=(2, 3), keepdims=True)
        v = jnp.mean(jnp.square(z - m), axis=(2, 3), keepdims=True)
        return (z - m) * lax.rsqrt(v + EPS)

    h = jnp.maximum(inorm(conv(x, w1, b1)), 0.0)
    return x + inorm(conv(h, w2, b2))


# --------------------------------------------------------------------------
if __name__ == "__main__":
    N, C, H, W = 2, 4, 16, 16

    key = jax.random.PRNGKey(0)
    kx, kw1, kb1, kw2, kb2 = jax.random.split(key, 5)

    x = jax.random.normal(kx, (N, C, H, W), dtype=jnp.float32)
    w1 = 0.2 * jax.random.normal(kw1, (C, C, 3, 3), dtype=jnp.float32)
    b1 = 0.1 * jax.random.normal(kb1, (C,), dtype=jnp.float32)
    w2 = 0.2 * jax.random.normal(kw2, (C, C, 3, 3), dtype=jnp.float32)
    b2 = 0.1 * jax.random.normal(kb2, (C,), dtype=jnp.float32)

    out = jax.block_until_ready(jax.jit(residual_block)(x, w1, b1, w2, b2))
    ref = jax.block_until_ready(_ref_forward(x, w1, b1, w2, b2))

    assert out.shape == (N, C, H, W), out.shape
    # bf16 MXU taps + bf16 input slab (residual path included) with f32
    # accumulation / InstanceNorm -> few 1e-3..1e-2 abs error vs the f32 reference.
    np.testing.assert_allclose(np.asarray(out), np.asarray(ref),
                               rtol=4e-2, atol=4e-2)
    print("KERNEL_OK")
</pallas_src>

<mosaic_0001>
module attributes {stable_mosaic.version = 11 : i64} {
  func.func @kernel(%arg0: i32, %arg1: memref<1x288x128xbf16, #tpu.memory_space<vmem>>, %arg2: memref<3x384x128xbf16, #tpu.memory_space<vmem>>, %arg3: memref<3x384x128xbf16, #tpu.memory_space<vmem>>, %arg4: memref<1x256x128xf32, #tpu.memory_space<vmem>>, %arg5: memref<288x128xbf16, #tpu.memory_space<vmem>>) attributes {dimension_semantics = [#tpu.dimension_semantics<parallel>], iteration_bounds = array<i64: 2>, scalar_prefetch = 0 : i64, scratch_operands = 1 : i64, tpu.core_type = #tpu.core_type<tc>, window_params = [{transform_indices = @transform_0, window_bounds = array<i64: 1, 288, 128>}, {pipeline_mode = #tpu.pipeline_mode<synchronous>, transform_indices = @transform_1, window_bounds = array<i64: 3, 384, 128>}, {pipeline_mode = #tpu.pipeline_mode<synchronous>, transform_indices = @transform_2, window_bounds = array<i64: 3, 384, 128>}, {transform_indices = @transform_3, window_bounds = array<i64: 1, 256, 128>}]} {
    %0 = tpu.iota {dimensions = array<i32: 0>} : vector<256x1xi32>
    %c16_i32 = arith.constant 16 : i32
    %c0_i32 = arith.constant 0 : i32
    %1 = arith.cmpi eq, %c16_i32, %c0_i32 : i32
    %c1_i32 = arith.constant 1 : i32
    %2 = arith.select %1, %c1_i32, %c16_i32 : i32
    %3 = vector.broadcast %2 : i32 to vector<256x1xi32>
    %4 = arith.remsi %0, %3 : vector<256x1xi32>
    %c0_i32_0 = arith.constant 0 : i32
    %5 = vector.broadcast %c0_i32_0 : i32 to vector<256x1xi32>
    %6 = arith.cmpi ne, %4, %5 : vector<256x1xi32>
    %c0_i32_1 = arith.constant 0 : i32
    %7 = vector.broadcast %c0_i32_1 : i32 to vector<256x1xi32>
    %8 = arith.cmpi slt, %4, %7 : vector<256x1xi32>
    %c0_i32_2 = arith.constant 0 : i32
    %9 = arith.cmpi slt, %2, %c0_i32_2 : i32
    %10 = vector.broadcast %9 : i1 to vector<256x1xi1>
    %11 = vector.broadcast %10 : vector<256x1xi1> to vector<256x1xi1>
    %12 = arith.xori %8, %11 : vector<256x1xi1>
    %13 = arith.andi %12, %6 : vector<256x1xi1>
    %14 = vector.broadcast %2 : i32 to vector<256x1xi32>
    %15 = arith.addi %4, %14 : vector<256x1xi32>
    %16 = arith.select %13, %15, %4 : vector<256x1xi1>, vector<256x1xi32>
    %17 = vector.shape_cast %16 : vector<256x1xi32> to vector<256x1xi32>
    %18 = vector.broadcast %17 : vector<256x1xi32> to vector<256x128xi32>
    %c0_i32_3 = arith.constant 0 : i32
    %19 = vector.broadcast %c0_i32_3 : i32 to vector<256x128xi32>
    %20 = arith.cmpi eq, %18, %19 : vector<256x128xi32>
    %c15_i32 = arith.constant 15 : i32
    %21 = vector.broadcast %c15_i32 : i32 to vector<256x128xi32>
    %22 = arith.cmpi eq, %18, %21 : vector<256x128xi32>
    %c0 = arith.constant 0 : index
    %c0_4 = arith.constant 0 : index
    %c0_5 = arith.constant 0 : index
    %23 = vector.load %arg1[%c0, %c0_4, %c0_5] : memref<1x288x128xbf16, #tpu.memory_space<vmem>>, vector<1x256x128xbf16>
    %24 = vector.shape_cast %23 : vector<1x256x128xbf16> to vector<256x128xbf16>
    %25 = arith.extf %24 : vector<256x128xbf16> to vector<256x128xf32>
    %c1_i32_6 = arith.constant 1 : i32
    %26 = tpu.dynamic_rotate %25 by %c1_i32_6 dim 0 : vector<256x128xf32>, i32 -> vector<256x128xf32>
    %c255_i32 = arith.constant 255 : i32
    %27 = tpu.dynamic_rotate %25 by %c255_i32 dim 0 : vector<256x128xf32>, i32 -> vector<256x128xf32>
    %28 = arith.select %20, %27, %26 : vector<256x128xi1>, vector<256x128xf32>
    %29 = arith.truncf %28 : vector<256x128xf32> to vector<256x128xbf16>
    %30 = arith.select %22, %26, %27 : vector<256x128xi1>, vector<256x128xf32>
    %31 = arith.truncf %30 : vector<256x128xf32> to vector<256x128xbf16>
    %32 = tpu.concatenate %29, %24, %31 in 1 : vector<256x128xbf16>, vector<256x128xbf16>, vector<256x128xbf16> -> vector<256x384xbf16>
    %c0_7 = arith.constant 0 : index
    %c0_8 = arith.constant 0 : index
    %c0_9 = arith.constant 0 : index
    %33 = vector.load %arg2[%c0_7, %c0_8, %c0_9] : memref<3x384x128xbf16, #tpu.memory_space<vmem>>, vector<1x384x128xbf16>
    %34 = vector.shape_cast %33 : vector<1x384x128xbf16> to vector<384x128xbf16>
    %cst = arith.constant dense<0.000000e+00> : vector<256x128xf32>
    %35 = tpu.matmul %32, %34, %cst {dimension_numbers = #tpu.dot_dimension_numbers<[1], [0], [0], [1], [0, 0, 1, 1], [], []>} : vector<256x384xbf16>, vector<384x128xbf16>, vector<256x128xf32> -> vector<256x128xf32>
    %c0_10 = arith.constant 0 : index
    %c16 = arith.constant 16 : index
    %c0_11 = arith.constant 0 : index
    %36 = vector.load %arg1[%c0_10, %c16, %c0_11] : memref<1x288x128xbf16, #tpu.memory_space<vmem>>, vector<1x256x128xbf16>
    %37 = vector.shape_cast %36 : vector<1x256x128xbf16> to vector<256x128xbf16>
    %38 = arith.extf %37 : vector<256x128xbf16> to vector<256x128xf32>
    %c1_i32_12 = arith.constant 1 : i32
    %39 = tpu.dynamic_rotate %38 by %c1_i32_12 dim 0 : vector<256x128xf32>, i32 -> vector<256x128xf32>
    %c255_i32_13 = arith.constant 255 : i32
    %40 = tpu.dynamic_rotate %38 by %c255_i32_13 dim 0 : vector<256x128xf32>, i32 -> vector<256x128xf32>
    %41 = arith.select %20, %40, %39 : vector<256x128xi1>, vector<256x128xf32>
    %42 = arith.truncf %41 : vector<256x128xf32> to vector<256x128xbf16>
    %43 = arith.select %22, %39, %40 : vector<256x128xi1>, vector<256x128xf32>
    %44 = arith.truncf %43 : vector<256x128xf32> to vector<256x128xbf16>
    %45 = tpu.concatenate %42, %37, %44 in 1 : vector<256x128xbf16>, vector<256x128xbf16>, vector<256x128xbf16> -> vector<256x384xbf16>
    %c1 = arith.constant 1 : index
    %c0_14 = arith.constant 0 : index
    %c0_15 = arith.constant 0 : index
    %46 = vector.load %arg2[%c1, %c0_14, %c0_15] : memref<3x384x128xbf16, #tpu.memory_space<vmem>>, vector<1x384x128xbf16>
    %47 = vector.shape_cast %46 : vector<1x384x128xbf16> to vector<384x128xbf16>
    %cst_16 = arith.constant dense<0.000000e+00> : vector<256x128xf32>
    %48 = tpu.matmul %45, %47, %cst_16 {dimension_numbers = #tpu.dot_dimension_numbers<[1], [0], [0], [1], [0, 0, 1, 1], [], []>} : vector<256x384xbf16>, vector<384x128xbf16>, vector<256x128xf32> -> vector<256x128xf32>
    %49 = arith.addf %35, %48 : vector<256x128xf32>
    %c0_17 = arith.constant 0 : index
    %c32 = arith.constant 32 : index
    %c0_18 = arith.constant 0 : index
    %50 = vector.load %arg1[%c0_17, %c32, %c0_18] : memref<1x288x128xbf16, #tpu.memory_space<vmem>>, vector<1x256x128xbf16>
    %51 = vector.shape_cast %50 : vector<1x256x128xbf16> to vector<256x128xbf16>
    %52 = arith.extf %51 : vector<256x128xbf16> to vector<256x128xf32>
    %c1_i32_19 = arith.constant 1 : i32
    %53 = tpu.dynamic_rotate %52 by %c1_i32_19 dim 0 : vector<256x128xf32>, i32 -> vector<256x128xf32>
    %c255_i32_20 = arith.constant 255 : i32
    %54 = tpu.dynamic_rotate %52 by %c255_i32_20 dim 0 : vector<256x128xf32>, i32 -> vector<256x128xf32>
    %55 = arith.select %20, %54, %53 : vector<256x128xi1>, vector<256x128xf32>
    %56 = arith.truncf %55 : vector<256x128xf32> to vector<256x128xbf16>
    %57 = arith.select %22, %53, %54 : vector<256x128xi1>, vector<256x128xf32>
    %58 = arith.truncf %57 : vector<256x128xf32> to vector<256x128xbf16>
    %59 = tpu.concatenate %56, %51, %58 in 1 : vector<256x128xbf16>, vector<256x128xbf16>, vector<256x128xbf16> -> vector<256x384xbf16>
    %c2 = arith.constant 2 : index
    %c0_21 = arith.constant 0 : index
    %c0_22 = arith.constant 0 : index
    %60 = vector.load %arg2[%c2, %c0_21, %c0_22] : memref<3x384x128xbf16, #tpu.memory_space<vmem>>, vector<1x384x128xbf16>
    %61 = vector.shape_cast %60 : vector<1x384x128xbf16> to vector<384x128xbf16>
    %cst_23 = arith.constant dense<0.000000e+00> : vector<256x128xf32>
    %62 = tpu.matmul %59, %61, %cst_23 {dimension_numbers = #tpu.dot_dimension_numbers<[1], [0], [0], [1], [0, 0, 1, 1], [], []>} : vector<256x384xbf16>, vector<384x128xbf16>, vector<256x128xf32> -> vector<256x128xf32>
    %63 = arith.addf %49, %62 : vector<256x128xf32>
    %cst_24 = arith.constant dense<0.000000e+00> : vector<128xf32>
    %64 = vector.multi_reduction <add>, %63, %cst_24 [0] : vector<256x128xf32> to vector<128xf32>
    %65 = vector.shape_cast %64 : vector<128xf32> to vector<1x128xf32>
    %66 = arith.mulf %63, %63 : vector<256x128xf32>
    %cst_25 = arith.constant dense<0.000000e+00> : vector<128xf32>
    %67 = vector.multi_reduction <add>, %66, %cst_25 [0] : vector<256x128xf32> to vector<128xf32>
    %68 = vector.shape_cast %67 : vector<128xf32> to vector<1x128xf32>
    %cst_26 = arith.constant 3.906250e-03 : f32
    %69 = vector.broadcast %cst_26 : f32 to vector<1x128xf32>
    %70 = arith.mulf %65, %69 : vector<1x128xf32>
    %cst_27 = arith.constant 3.906250e-03 : f32
    %71 = vector.broadcast %cst_27 : f32 to vector<1x128xf32>
    %72 = arith.mulf %68, %71 : vector<1x128xf32>
    %73 = arith.mulf %70, %70 : vector<1x128xf32>
    %74 = arith.subf %72, %73 : vector<1x128xf32>
    %cst_28 = arith.constant 0.000000e+00 : f32
    %75 = vector.broadcast %cst_28 : f32 to vector<1x128xf32>
    %76 = arith.maximumf %74, %75 : vector<1x128xf32>
    %77 = vector.broadcast %70 : vector<1x128xf32> to vector<256x128xf32>
    %78 = arith.subf %63, %77 : vector<256x128xf32>
    %cst_29 = arith.constant 9.99999974E-6 : f32
    %79 = vector.broadcast %cst_29 : f32 to vector<1x128xf32>
    %80 = arith.addf %76, %79 : vector<1x128xf32>
    %81 = math.rsqrt %80 : vector<1x128xf32>
    %82 = vector.broadcast %81 : vector<1x128xf32> to vector<256x128xf32>
    %83 = arith.mulf %78, %82 : vector<256x128xf32>
    %cst_30 = arith.constant 0.000000e+00 : f32
    %84 = vector.broadcast %cst_30 : f32 to vector<256x128xf32>
    %85 = arith.maximumf %83, %84 : vector<256x128xf32>
    %86 = arith.truncf %85 : vector<256x128xf32> to vector<256x128xbf16>
    %c16_31 = arith.constant 16 : index
    %c0_32 = arith.constant 0 : index
    %87 = vector.load %arg5[%c16_31, %c0_32] : memref<288x128xbf16, #tpu.memory_space<vmem>>, vector<256x128xbf16>
    tpu.vector_store %arg5[%c16_31, %c0_32], %86 {strides = array<i32>} : memref<288x128xbf16, #tpu.memory_space<vmem>>, vector<256x128xbf16>,
    %c32_33 = arith.constant 32 : index
    %c0_34 = arith.constant 0 : index
    %88 = vector.load %arg5[%c32_33, %c0_34] : memref<288x128xbf16, #tpu.memory_space<vmem>>, vector<16x128xbf16>
    %c0_35 = arith.constant 0 : index
    %c0_36 = arith.constant 0 : index
    %89 = vector.load %arg5[%c0_35, %c0_36] : memref<288x128xbf16, #tpu.memory_space<vmem>>, vector<16x128xbf16>
    tpu.vector_store %arg5[%c0_35, %c0_36], %88 {strides = array<i32>} : memref<288x128xbf16, #tpu.memory_space<vmem>>, vector<16x128xbf16>,
    %c240 = arith.constant 240 : index
    %c0_37 = arith.constant 0 : index
    %90 = vector.load %arg5[%c240, %c0_37] : memref<288x128xbf16, #tpu.memory_space<vmem>>, vector<16x128xbf16>
    %c272 = arith.constant 272 : index
    %c0_38 = arith.constant 0 : index
    %91 = vector.load %arg5[%c272, %c0_38] : memref<288x128xbf16, #tpu.memory_space<vmem>>, vector<16x128xbf16>
    tpu.vector_store %arg5[%c272, %c0_38], %90 {strides = array<i32>} : memref<288x128xbf16, #tpu.memory_space<vmem>>, vector<16x128xbf16>,
    %c0_39 = arith.constant 0 : index
    %c0_40 = arith.constant 0 : index
    %92 = vector.load %arg5[%c0_39, %c0_40] : memref<288x128xbf16, #tpu.memory_space<vmem>>, vector<256x128xbf16>
    %93 = arith.extf %92 : vector<256x128xbf16> to vector<256x128xf32>
    %c1_i32_41 = arith.constant 1 : i32
    %94 = tpu.dynamic_rotate %93 by %c1_i32_41 dim 0 : vector<256x128xf32>, i32 -> vector<256x128xf32>
    %c255_i32_42 = arith.constant 255 : i32
    %95 = tpu.dynamic_rotate %93 by %c255_i32_42 dim 0 : vector<256x128xf32>, i32 -> vector<256x128xf32>
    %96 = arith.select %20, %95, %94 : vector<256x128xi1>, vector<256x128xf32>
    %97 = arith.truncf %96 : vector<256x128xf32> to vector<256x128xbf16>
    %98 = arith.select %22, %94, %95 : vector<256x128xi1>, vector<256x128xf32>
    %99 = arith.truncf %98 : vector<256x128xf32> to vector<256x128xbf16>
    %100 = tpu.concatenate %97, %92, %99 in 1 : vector<256x128xbf16>, vector<256x128xbf16>, vector<256x128xbf16> -> vector<256x384xbf16>
    %c0_43 = arith.constant 0 : index
    %c0_44 = arith.constant 0 : index
    %c0_45 = arith.constant 0 : index
    %101 = vector.load %arg3[%c0_43, %c0_44, %c0_45] : memref<3x384x128xbf16, #tpu.memory_space<vmem>>, vector<1x384x128xbf16>
    %102 = vector.shape_cast %101 : vector<1x384x128xbf16> to vector<384x128xbf16>
    %cst_46 = arith.constant dense<0.000000e+00> : vector<256x128xf32>
    %103 = tpu.matmul %100, %102, %cst_46 {dimension_numbers = #tpu.dot_dimension_numbers<[1], [0], [0], [1], [0, 0, 1, 1], [], []>} : vector<256x384xbf16>, vector<384x128xbf16>, vector<256x128xf32> -> vector<256x128xf32>
    %c16_47 = arith.constant 16 : index
    %c0_48 = arith.constant 0 : index
    %104 = vector.load %arg5[%c16_47, %c0_48] : memref<288x128xbf16, #tpu.memory_space<vmem>>, vector<256x128xbf16>
    %105 = arith.extf %104 : vector<256x128xbf16> to vector<256x128xf32>
    %c1_i32_49 = arith.constant 1 : i32
    %106 = tpu.dynamic_rotate %105 by %c1_i32_49 dim 0 : vector<256x128xf32>, i32 -> vector<256x128xf32>
    %c255_i32_50 = arith.constant 255 : i32
    %107 = tpu.dynamic_rotate %105 by %c255_i32_50 dim 0 : vector<256x128xf32>, i32 -> vector<256x128xf32>
    %108 = arith.select %20, %107, %106 : vector<256x128xi1>, vector<256x128xf32>
    %109 = arith.truncf %108 : vector<256x128xf32> to vector<256x128xbf16>
    %110 = arith.select %22, %106, %107 : vector<256x128xi1>, vector<256x128xf32>
    %111 = arith.truncf %110 : vector<256x128xf32> to vector<256x128xbf16>
    %112 = tpu.concatenate %109, %104, %111 in 1 : vector<256x128xbf16>, vector<256x128xbf16>, vector<256x128xbf16> -> vector<256x384xbf16>
    %c1_51 = arith.constant 1 : index
    %c0_52 = arith.constant 0 : index
    %c0_53 = arith.constant 0 : index
    %113 = vector.load %arg3[%c1_51, %c0_52, %c0_53] : memref<3x384x128xbf16, #tpu.memory_space<vmem>>, vector<1x384x128xbf16>
    %114 = vector.shape_cast %113 : vector<1x384x128xbf16> to vector<384x128xbf16>
    %cst_54 = arith.constant dense<0.000000e+00> : vector<256x128xf32>
    %115 = tpu.matmul %112, %114, %cst_54 {dimension_numbers = #tpu.dot_dimension_numbers<[1], [0], [0], [1], [0, 0, 1, 1], [], []>} : vector<256x384xbf16>, vector<384x128xbf16>, vector<256x128xf32> -> vector<256x128xf32>
    %116 = arith.addf %103, %115 : vector<256x128xf32>
    %c32_55 = arith.constant 32 : index
    %c0_56 = arith.constant 0 : index
    %117 = vector.load %arg5[%c32_55, %c0_56] : memref<288x128xbf16, #tpu.memory_space<vmem>>, vector<256x128xbf16>
    %118 = arith.extf %117 : vector<256x128xbf16> to vector<256x128xf32>
    %c1_i32_57 = arith.constant 1 : i32
    %119 = tpu.dynamic_rotate %118 by %c1_i32_57 dim 0 : vector<256x128xf32>, i32 -> vector<256x128xf32>
    %c255_i32_58 = arith.constant 255 : i32
    %120 = tpu.dynamic_rotate %118 by %c255_i32_58 dim 0 : vector<256x128xf32>, i32 -> vector<256x128xf32>
    %121 = arith.select %20, %120, %119 : vector<256x128xi1>, vector<256x128xf32>
    %122 = arith.truncf %121 : vector<256x128xf32> to vector<256x128xbf16>
    %123 = arith.select %22, %119, %120 : vector<256x128xi1>, vector<256x128xf32>
    %124 = arith.truncf %123 : vector<256x128xf32> to vector<256x128xbf16>
    %125 = tpu.concatenate %122, %117, %124 in 1 : vector<256x128xbf16>, vector<256x128xbf16>, vector<256x128xbf16> -> vector<256x384xbf16>
    %c2_59 = arith.constant 2 : index
    %c0_60 = arith.constant 0 : index
    %c0_61 = arith.constant 0 : index
    %126 = vector.load %arg3[%c2_59, %c0_60, %c0_61] : memref<3x384x128xbf16, #tpu.memory_space<vmem>>, vector<1x384x128xbf16>
    %127 = vector.shape_cast %126 : vector<1x384x128xbf16> to vector<384x128xbf16>
    %cst_62 = arith.constant dense<0.000000e+00> : vector<256x128xf32>
    %128 = tpu.matmul %125, %127, %cst_62 {dimension_numbers = #tpu.dot_dimension_numbers<[1], [0], [0], [1], [0, 0, 1, 1], [], []>} : vector<256x384xbf16>, vector<384x128xbf16>, vector<256x128xf32> -> vector<256x128xf32>
    %129 = arith.addf %116, %128 : vector<256x128xf32>
    %cst_63 = arith.constant dense<0.000000e+00> : vector<128xf32>
    %130 = vector.multi_reduction <add>, %129, %cst_63 [0] : vector<256x128xf32> to vector<128xf32>
    %131 = vector.shape_cast %130 : vector<128xf32> to vector<1x128xf32>
    %132 = arith.mulf %129, %129 : vector<256x128xf32>
    %cst_64 = arith.constant dense<0.000000e+00> : vector<128xf32>
    %133 = vector.multi_reduction <add>, %132, %cst_64 [0] : vector<256x128xf32> to vector<128xf32>
    %134 = vector.shape_cast %133 : vector<128xf32> to vector<1x128xf32>
    %cst_65 = arith.constant 3.906250e-03 : f32
    %135 = vector.broadcast %cst_65 : f32 to vector<1x128xf32>
    %136 = arith.mulf %131, %135 : vector<1x128xf32>
    %cst_66 = arith.constant 3.906250e-03 : f32
    %137 = vector.broadcast %cst_66 : f32 to vector<1x128xf32>
    %138 = arith.mulf %134, %137 : vector<1x128xf32>
    %139 = arith.mulf %136, %136 : vector<1x128xf32>
    %140 = arith.subf %138, %139 : vector<1x128xf32>
    %cst_67 = arith.constant 0.000000e+00 : f32
    %141 = vector.broadcast %cst_67 : f32 to vector<1x128xf32>
    %142 = arith.maximumf %140, %141 : vector<1x128xf32>
    %143 = vector.broadcast %136 : vector<1x128xf32> to vector<256x128xf32>
    %144 = arith.subf %129, %143 : vector<256x128xf32>
    %cst_68 = arith.constant 9.99999974E-6 : f32
    %145 = vector.broadcast %cst_68 : f32 to vector<1x128xf32>
    %146 = arith.addf %142, %145 : vector<1x128xf32>
    %147 = math.rsqrt %146 : vector<1x128xf32>
    %148 = vector.broadcast %147 : vector<1x128xf32> to vector<256x128xf32>
    %149 = arith.mulf %144, %148 : vector<256x128xf32>
    %c0_69 = arith.constant 0 : index
    %c16_70 = arith.constant 16 : index
    %c0_71 = arith.constant 0 : index
    %150 = vector.load %arg1[%c0_69, %c16_70, %c0_71] : memref<1x288x128xbf16, #tpu.memory_space<vmem>>, vector<1x256x128xbf16>
    %151 = vector.shape_cast %150 : vector<1x256x128xbf16> to vector<256x128xbf16>
    %152 = arith.extf %151 : vector<256x128xbf16> to vector<256x128xf32>
    %153 = arith.addf %152, %149 : vector<256x128xf32>
    %c0_72 = arith.constant 0 : index
    %c0_73 = arith.constant 0 : index
    %c0_74 = arith.constant 0 : index
    %154 = vector.load %arg4[%c0_72, %c0_73, %c0_74] : memref<1x256x128xf32, #tpu.memory_space<vmem>>, vector<1x256x128xf32>
    %155 = vector.shape_cast %154 : vector<1x256x128xf32> to vector<256x128xf32>
    %156 = vector.shape_cast %153 : vector<256x128xf32> to vector<1x256x128xf32>
    tpu.vector_store %arg4[%c0_72, %c0_73, %c0_74], %156 {strides = array<i32>} : memref<1x256x128xf32, #tpu.memory_space<vmem>>, vector<1x256x128xf32>,
    return
  }
  func.func @transform_0(%arg0: i32) -> (i32, i32, i32) {
    %c0_i32 = arith.constant 0 : i32
    %c0_i32_0 = arith.constant 0 : i32
    %c0_i32_1 = arith.constant 0 : i32
    return %arg0, %c0_i32, %c0_i32_0 : i32, i32, i32
  }
  func.func @transform_1(%arg0: i32) -> (i32, i32, i32) {
    %c0_i32 = arith.constant 0 : i32
    %c0_i32_0 = arith.constant 0 : i32
    %c0_i32_1 = arith.constant 0 : i32
    %c0_i32_2 = arith.constant 0 : i32
    return %c0_i32, %c0_i32_0, %c0_i32_1 : i32, i32, i32
  }
  func.func @transform_2(%arg0: i32) -> (i32, i32, i32) {
    %c0_i32 = arith.constant 0 : i32
    %c0_i32_0 = arith.constant 0 : i32
    %c0_i32_1 = arith.constant 0 : i32
    %c0_i32_2 = arith.constant 0 : i32
    return %c0_i32, %c0_i32_0, %c0_i32_1 : i32, i32, i32
  }
  func.func @transform_3(%arg0: i32) -> (i32, i32, i32) {
    %c0_i32 = arith.constant 0 : i32
    %c0_i32_0 = arith.constant 0 : i32
    %c0_i32_1 = arith.constant 0 : i32
    return %arg0, %c0_i32, %c0_i32_0 : i32, i32, i32
  }
}

</mosaic_0001>

<bundles_post_ra>
// kernel: residual_block.1
= control target key start
LH: loop header
LB: loop body
LE: loop exit
PB: predicated region body
PF: predicated region fallthrough
CT: control target
= control target key end

     0   :  { %8 = vsyncpa [#allocation4], 0  ;;  %s12736_s0 = inlined_call_operand.hbm [shape: bf16[2,288,128], index: 0, kind: input, shape index: {}]   ;;  %s12737_s1 = inlined_call_operand.hbm [shape: bf16[3,384,128], index: 1, kind: input, shape index: {}]   ;;  %s12738_s2 = inlined_call_operand.hbm [shape: bf16[3,384,128], index: 2, kind: input, shape index: {}]   ;;  %s12739_s3 = inlined_call_operand.hbm [shape: f32[2,256,128], index: 3, kind: output, shape index: {}]  }
   0x1   :  { %10 = vsyncpa [#allocation4 + $0x1], 0 }
   0x2   :  { %11 = vsyncpa [#allocation7], 0 }
   0x3   :  { %12 = vsyncpa [#allocation5], 0 }
   0x4   :  { %14 = vsyncpa [#allocation5 + $0x1], 0  ;;  %s8218_s12 = smov 0   ;;  %s8220_s13 = smov 0  }
   0x5   :  { %s8222_s14 = smov 0   ;;  %s8224_s15 = smov 0  }
   0x6 LB: > { %s8239_s16 = sadd.s32 4294967295, %s8188_s15   ;;  %s6047_s17 = sadd.s32 4294967294, %s8188_s15   ;;  %s8188_s15 = sphi %s8224_s15, %s13903_s15   ;;  %s8184_s14 = sphi %s8222_s14, %s13902_s14   ;;  %s8180_s13 = sphi %s8220_s13, %s13901_s13   ;;  %s8176_s12 = sphi %s8218_s12, %s13900_s12  }
   0x7   : > { %p40_p0 = scmp.ne.s32.totalorder %s8180_s13, %s8176_s12  ;;  %p12740_p1 = scmp.eq.s32.totalorder %s8239_s16, 0 }
   0x8   : > { %p112_p3 = scmp.eq.s32.totalorder %s6047_s17, 1  ;;  %p6048_p5 = scmp.ge.s32.totalorder %s8188_s15, 1 }
   0x9   : > { %p8248_p4 = por %p12740_p1, %p40_p0  ;;  %p119_p7 = scmp.lt.s32.totalorder %s8188_s15, 3 }
   0xa   : > { %p8253_p6 = por %p112_p3, %p40_p0  ;;  %s8190_s21 = smov [#allocation6]  }
   0xb   : > { %s13055_s18 = scalar_select %p8248_p4, 1, 0 }
   0xc   : > { %s13056_s19 = scalar_select %p8253_p6, 1, 0 }
   0xd   : > { %p8258_p8 = pnand %p6048_p5, %p119_p7  ;;  %s131_s22 = sshll.u32 %s8190_s21, 4  ;;  %s8262_s22 = int_to_ptr.vmem [resolvable:$true] %s131_s22 }
   0xe   : > { %s8191_s24 = smov [#allocation8]   ;;  %s8032_s28 = scalar_lea.hbm %s12737_s1, 9216 }
   0xf   : > { %p7759_p9 = pneg %p8258_p8  ;;  %s144_s25 = sshll.u32 %s8191_s24, 4  ;;  %s8273_s25 = int_to_ptr.vmem [resolvable:$true] %s144_s25 }
  0x10   : > { %p8033_p12 = scmp.ne.s32.totalorder %s12737_s1, %s8032_s28  ;;  %p8039_p5 = scmp.lt.u32.totalorder %s8032_s28, %s12737_s1 }
  0x11   : > { %p8269_p11 = pnand %p7759_p9, %p12740_p1 }
  0x13   : > { %p8034_p13 = pneg %p8269_p11 }
  0x15   : > { %p8035_p0 = pnand %p8034_p13, %p8033_p12 }
  0x17   : > { %p8036_p3 = pneg %p8035_p0 }
  0x19   : > { %p8041_p7 = pnand %p8039_p5, %p8036_p3 }
  0x1b   : > { %8044 = shalt.err (!%p8041_p7)
}
  0x1c   : > { %s8045_s6 = scalar_lea.vmem %s8262_s22, 9216  ;;  %p8053_p2 = scmp.lt.s32.totalorder %s8262_s22, %s8262_s22 }
  0x1d   : > { %p8046_p9 = scmp.ne.s32.totalorder %s8262_s22, %s8045_s6  ;;  %p8054_p12 = scmp.lt.s32.totalorder %s8045_s6, %s8045_s6 }
  0x1f   : > { %p8048_p10 = pnand %p8046_p9, %p8034_p13  ;;  %p8055_p0 = por %p8054_p12, %p8053_p2 }
  0x21   : > { %p8049_p1 = pneg %p8048_p10 }
  0x23   : > { %p8056_p6 = pnand %p8055_p0, %p8049_p1 }
  0x25   : > { %8059 = shalt.err (!%p8056_p6)
}
  0x26   : > { %s8192_s7 = smov 64   ;;  %s8193_s8 = smov 4  }
  0x27   : > { %7762 = dma.hbm_to_vmem [thread:$0]  (!%p8269_p11), %s12737_s1, 9216, %s8262_s22, [#allocation7], %s8192_s7, %s8192_s7, %s8193_s8  }
  0x28   : > { %s8060_s21 = scalar_lea.hbm %s12738_s2, 9216 }
  0x29   : > { %p8061_p1 = scmp.ne.s32.totalorder %s12738_s2, %s8060_s21  ;;  %p8067_p10 = scmp.lt.u32.totalorder %s8060_s21, %s12738_s2 }
  0x2b   : > { %p8063_p2 = pnand %p8061_p1, %p8034_p13 }
  0x2d   : > { %p8064_p6 = pneg %p8063_p2 }
  0x2f   : > { %p8069_p3 = pnand %p8067_p10, %p8064_p6 }
  0x31   : > { %8072 = shalt.err (!%p8069_p3)
}
  0x32   : > { %s8073_s22 = scalar_lea.vmem %s8273_s25, 9216  ;;  %p8081_p12 = scmp.lt.s32.totalorder %s8273_s25, %s8273_s25 }
  0x33   : > { %p8074_p5 = scmp.ne.s32.totalorder %s8273_s25, %s8073_s22  ;;  %p8082_p0 = scmp.lt.s32.totalorder %s8073_s22, %s8073_s22 }
  0x35   : > { %p8076_p7 = pnand %p8074_p5, %p8034_p13  ;;  %p8083_p1 = por %p8082_p0, %p8081_p12 }
  0x37   : > { %p8077_p9 = pneg %p8076_p7 }
  0x39   : > { %p8084_p2 = pnand %p8083_p1, %p8077_p9 }
  0x3b   : > { %8087 = shalt.err (!%p8084_p2)
}
  0x3c   : > { %7765 = dma.hbm_to_vmem [thread:$0]  (!%p8269_p11), %s12738_s2, 9216, %s8273_s25, [#allocation7], %s8192_s7, %s8192_s7, %s8193_s8  }
  0x3d   : > { %s8334_s23 = sadd.s32 1, %s8188_s15   ;;  %s27_s4 = sadd.s32 1, %s8184_s14 }
  0x3e   : > { %s24_s5 = ssub.s32 %s8188_s15, %s8334_s23  ;;  %p34_p13 = scmp.ne.s32.totalorder %s8184_s14, %s8180_s13 }
  0x3f   : > { %p25_p6 = scmp.eq.s32.totalorder %s24_s5, 0  ;;  %p35_p10 = scmp.eq.s32.totalorder %s8188_s15, 0 }
  0x40   : > { %p13059_p3 = scmp.eq.s32.totalorder %s8239_s16, 1  ;;  %p7776_p7 = scmp.lt.s32.totalorder %s8188_s15, 2 }
  0x41   : > { %s8350_s9 = scalar_select %p25_p6, %s8184_s14, %s27_s4  }
  0x42   : > { %p8344_p5 = por %p13059_p3, %p34_p13  ;;  %p36_p9 = por %p35_p10, %p34_p13 }
  0x43   : > { %s158_s10 = sand.u32 1, %s8184_s14   ;;  %s7745_s25 = smul.u32 2304, %s8188_s15 }
  0x44   : > { %s13060_s6 = scalar_select %p8344_p5, 1, 0 }
  0x45   : > { %s7744_s11 = smul.u32 144, %s158_s10  ;;  %p8354_p11 = pnand %p7776_p7, %p36_p9 }
  0x46   : > { %s8361_s26 = scalar_lea.hbm %s12736_s0, %s7745_s25  ;;  %s8365_s22 = scalar_lea.sflag [#allocation4], %s158_s10 }
  0x47   : > { %s162_s27 = scalar_lea.vmem [#allocation3], %s7744_s11  ;;  %s8088_s29 = scalar_lea.hbm %s8361_s26, 2304 }
  0x48   : > { %s169_s28 = sshll.u32 %s162_s27, 4  ;;  %p8089_p12 = scmp.ne.s32.totalorder %s8361_s26, %s8088_s29  ;;  %s8363_s28 = int_to_ptr.vmem [resolvable:$true] %s169_s28 }
  0x49   : > { %p8090_p0 = pneg %p8354_p11  ;;  %s8093_s5 = scalar_lea.hbm %s12736_s0, 4608 }
  0x4a   : > { %p8094_p13 = scmp.lt.u32.totalorder %s8361_s26, %s12736_s0  ;;  %p8095_p6 = scmp.lt.u32.totalorder %s8093_s5, %s8088_s29 }
  0x4b   : > { %p8091_p1 = pnand %p8090_p0, %p8089_p12  ;;  %p8097_p3 = scmp.lt.u32.totalorder %s8088_s29, %s8361_s26 }
  0x4c   : > { %p8096_p10 = por %p8095_p6, %p8094_p13 }
  0x4d   : > { %p8092_p2 = pneg %p8091_p1 }
  0x4e   : > { %p8098_p7 = por %p8097_p3, %p8096_p10 }
  0x50   : > { %p8099_p9 = pnand %p8098_p7, %p8092_p2 }
  0x52   : > { %8102 = shalt.err (!%p8099_p9)
}
  0x53   : > { %s8103_s10 = scalar_lea.vmem %s8363_s28, 2304  ;;  %s8194_s11 = smov [#allocation3]  }
  0x54   : > { %p8104_p12 = scmp.ne.s32.totalorder %s8363_s28, %s8103_s10  ;;  %s8108_s24 = sshll.u32 %s8194_s11, 4  ;;  %s8109_s24 = int_to_ptr.vmem [resolvable:$false] %s8108_s24 }
  0x55   : > { %s8110_s27 = scalar_lea.vmem %s8109_s24, 4608  ;;  %p8111_p4 = scmp.lt.s32.totalorder %s8363_s28, %s8109_s24 }
  0x56   : > { %p8106_p1 = pnand %p8104_p12, %p8090_p0  ;;  %p8112_p13 = scmp.lt.s32.totalorder %s8110_s27, %s8103_s10 }
  0x58   : > { %p8107_p5 = pneg %p8106_p1  ;;  %p8113_p6 = por %p8112_p13, %p8111_p4 }
  0x5a   : > { %p8114_p10 = pnand %p8113_p6, %p8107_p5 }
  0x5c   : > { %8117 = shalt.err (!%p8114_p10)
}
  0x5d   : > { %7769 = dma.hbm_to_vmem [thread:$0]  (!%p8354_p11), %s8361_s26, 2304, %s8363_s28, %s8365_s22, %s8192_s7, %s8192_s7, %s8193_s8  }
  0x5e   : > { %181 = sbr.rel (%p8258_p8) target bundleno = 1396 (0x574), region = 32 }
  0x65   : > { %s8399_s29 = sand.u32 1, %s8180_s13   ;;  %p13062_p4 = scmp.ne.s32.totalorder %s13055_s18, 0 }
  0x66   : > { %s7746_s30 = smul.u32 144, %s8399_s29  ;;  %s184_s4 = scalar_lea.sflag [#allocation4], %s8399_s29 }
  0x68   : > { %s8403_s5 = scalar_lea.vmem [#allocation3], %s7746_s30 }
  0x69   : > { %8163 = dma.done.wait (%p13062_p4), %s184_s4, 2304  }
  0x6a   : > { %8165 = vsyncadd (%p13062_p4), %s184_s4, 4294964992  ;;  %p13063_p5 = scmp.eq.s32.totalorder %s8239_s16, 0 }
  0x6c   : > { %8167 = dma.done.wait (%p13063_p5), [#allocation7], 18432   ;;  %p13064_p8 = pmov %p13063_p5 }
  0x6d   : > { %v7818_v0 = vld [vmem:[#allocation6 + $0x100] sm:$0xff]   ;;  %v7822_v4 = vld [vmem:[#allocation6 + $0x108] sm:$0xff]   ;;  %v7826_v8 = vld [vmem:[#allocation6 + $0x110] sm:$0xff]   ;;  %v219_v15 = vlaneseq  ;;  %v13066_v39 = vmov 0  ;;  %v13069_v54 = vmov 0  ;;  %s6056_s18 = sshll.u32 %s8399_s29, 8 }
  0x6e   : > { %8169 = vsyncadd (%p13064_p8), [#allocation7], 4294948864  ;;  %v7819_v1 = vld [vmem:[#allocation6 + $0x40] sm:$0xff]   ;;  %6320 = vmatprep.subr.bf16.mxu0 %v7818_v0  ;;  %v7823_v5 = vld [vmem:[#allocation6 + $0x48] sm:$0xff]   ;;  %s12538_s20 = scalar_lea.vmem [#allocation9], %s6056_s18  ;;  %s6239_s7 = sshll.u32 %s8239_s16, 12 }
  0x6f   : > { %v7820_v2 = vld [vmem:[#allocation6 + $0xc0] sm:$0xff]   ;;  %6456 = vmatprep.subr.bf16.mxu1 %v7819_v1  ;;  %v7824_v6 = vld [vmem:[#allocation6 + $0xc8] sm:$0xff]   ;;  %v7827_v9 = vld [vmem:[#allocation6 + $0x50] sm:$0xff]   ;;  %v8413_v20 = vshrl.u32 %v219_v15, 7  ;;  %s5955_s8 = sshll.u32 %s12538_s20, 4  ;;  %s12670_s26 = scalar_lea.hbm %s12739_s3, %s6239_s7  ;;  %s12672_s8 = int_to_ptr.vmem [resolvable:$true] %s5955_s8 }
  0x70   : > { %v7821_v3 = vld [vmem:[#allocation6] sm:$0xff]   ;;  %6321 = vmatpush3.bf16.msra.mxu0 %v7820_v2  ;;  %v7825_v7 = vld [vmem:[#allocation6 + $0x8] sm:$0xff]   ;;  %v7828_v10 = vld [vmem:[#allocation6 + $0xd0] sm:$0xff]   ;;  %s5942_s28 = scalar_lea.sflag [#allocation5], %s8399_s29  ;;  %s8118_s22 = scalar_lea.vmem %s12672_s8, 4096 }
  0x71   : > { %6457 = vmatpush3.bf16.msra.mxu1 %v7821_v3  ;;  %6322 = vmatprep.subr.bf16.mxu0 %v7822_v4  ;;  %v7829_v11 = vld [vmem:[#allocation6 + $0x10] sm:$0xff]   ;;  %v7830_v12 = vld [vmem:[#allocation6 + $0x118] sm:$0xff]   ;;  %v7834_v17 = vld [vmem:[#allocation6 + $0x120] sm:$0xff]   ;;  %13065 = vst [vmem:[#allocation13_spill] sm:$0xff] %v8413_v20  ;;  %v256_v25 = vand.u32 15, %v8413_v20  ;;  %v222_v27 = vadd.s32 16, %v8413_v20  ;;  %p8119_p11 = scmp.ne.s32.totalorder %s12672_s8, %s8118_s22 }
  0x72   : > { %6458 = vmatprep.subr.bf16.mxu1 %v7823_v5  ;;  %v7831_v13 = vld [vmem:[#allocation6 + $0x58] sm:$0xff]   ;;  %v7835_v18 = vld [vmem:[#allocation6 + $0x60] sm:$0xff]   ;;  %v7838_v22 = vld [vmem:[#allocation6 + $0x128] sm:$0xff]   ;;  %v8418_v29 = vadd.s32 32, %v8413_v20  ;;  %v8421_v31 = vadd.s32 48, %v8413_v20  ;;  %vm12831_vm0 = vcmp.lt.s32.totalorder %v8413_v20, 7 }
  0x73   : > { %v7832_v14 = vld [vmem:[#allocation6 + $0xd8] sm:$0xff]   ;;  %v7836_v19 = vld [vmem:[#allocation6 + $0xe0] sm:$0xff]   ;;  %v7839_v23 = vld [vmem:[#allocation6 + $0x68] sm:$0xff]   ;;  %v8425_v33 = vadd.s32 64, %v8413_v20  ;;  %vm12828_vm1 = vcmp.lt.s32.totalorder %v8413_v20, 1  ;;  %v8429_v35 = vadd.s32 80, %v8413_v20 }
  0x74   : > { %6323 = vmatpush3.bf16.msra.mxu0 %v7824_v6  ;;  %v7833_v16 = vld [vmem:[#allocation6 + $0x18] sm:$0xff]   ;;  %v7837_v21 = vld [vmem:[#allocation6 + $0x20] sm:$0xff]   ;;  %v7840_v24 = vld [vmem:[#allocation6 + $0xe8] sm:$0xff]   ;;  %v270_v37 = vand.u32 15, %v222_v27  ;;  %vm8431_vm2 = vcmp.eq.s32.totalorder %v256_v25, 0  ;;  %v8436_v40 = vadd.s32 96, %v8413_v20 }
  0x75   : > { %6459 = vmatpush3.bf16.msra.mxu1 %v7825_v7  ;;  %6324 = vmatprep.subr.bf16.mxu0 %v7826_v8  ;;  %v7841_v26 = vld [vmem:[#allocation6 + $0x28] sm:$0xff]   ;;  %v7842_v28 = vld [vmem:[#allocation6 + $0x130] sm:$0xff]   ;;  %v7846_v36 = vld [vmem:[#allocation6 + $0x138] sm:$0xff]   ;;  %v13067_v39 = vsel %vm8431_vm2, 4294967295, %v13066_v39  ;;  %v8439_v42 = vadd.s32 112, %v8413_v20  ;;  %v284_v44 = vand.u32 15, %v8418_v29 }
  0x76   : > { %6460 = vmatprep.subr.bf16.mxu1 %v7827_v9  ;;  %v7843_v30 = vld [vmem:[#allocation6 + $0x70] sm:$0xff]   ;;  %v7847_v38 = vld [vmem:[#allocation6 + $0x78] sm:$0xff]   ;;  %13068 = vst [vmem:[#allocation14_spill] sm:$0xff] %v13067_v39  ;;  %v298_v48 = vand.u32 15, %v8421_v31  ;;  %v312_v49 = vand.u32 15, %v8425_v33  ;;  %v7852_v53 = vld [vmem:[#allocation6 + $0x140] sm:$0xff]  }
  0x77   : > { %v7844_v32 = vld [vmem:[#allocation6 + $0xf0] sm:$0xff]   ;;  %v7848_v41 = vld [vmem:[#allocation6 + $0xf8] sm:$0xff]   ;;  %vm8453_vm3 = vcmp.eq.s32.totalorder %v270_v37, 0  ;;  %v326_v59 = vand.u32 15, %v8429_v35  ;;  %v8486_v7 = vadd.s32 128, %v8413_v20  ;;  %vm8519_vm4 = vcmp.eq.s32.totalorder %v284_v44, 0 }
  0x78   : > { %6325 = vmatpush3.bf16.msra.mxu0 %v7828_v10  ;;  %v7845_v34 = vld [vmem:[#allocation6 + $0x30] sm:$0xff]   ;;  %v7849_v43 = vld [vmem:[#allocation6 + $0x38] sm:$0xff]   ;;  %v13070_v54 = vsel %vm8453_vm3, 4294967295, %v13069_v54  ;;  %v7855_v25 = vld [vmem:[#allocation6 + $0x148] sm:$0xff]   ;;  %vm8574_vm5 = vcmp.eq.s32.totalorder %v298_v48, 0  ;;  %vm8599_vm6 = vcmp.eq.s32.totalorder %v312_v49, 0 }
  0x79   : > { %6461 = vmatpush3.bf16.msra.mxu1 %v7829_v11  ;;  %6326 = vmatprep.subr.bf16.mxu0 %v7830_v12  ;;  %v8443_v45 = vld [vmem:[%s8403_s5 + $0x8] sm:$0xff]   ;;  %v700_v46 = vld [vmem:[%s8403_s5] sm:$0xff]   ;;  %13071 = vst [vmem:[#allocation15_spill] sm:$0xff] %v13070_v54  ;;  %v8459_v57 = vld [vmem:[%s8403_s5 + $0x7c] sm:$0xf]  ;;  %vm8658_vm7 = vcmp.eq.s32.totalorder %v326_v59, 0 }
  0x7a   : > { %6462 = vmatprep.subr.bf16.mxu1 %v7831_v13  ;;  %v8447_v47 = vld [vmem:[%s8403_s5 + $0x84] sm:$0xf]  ;;  %v734_v50 = vunpack.c.l.bf16 %v8443_v45  ;;  %v735_v51 = vunpack.c.h.bf16 %v8443_v45  ;;  %v732_v52 = vunpack.c.l.bf16 %v700_v46  ;;  %v733_v55 = vunpack.c.h.bf16 %v700_v46  ;;  %v8462_v58 = vld [vmem:[%s8403_s5 + $0x10] sm:$0xff]   ;;  %1475 = vmatprep.mubr.bf16.mxu0 %v8443_v45  ;;  %p13897_p0 = scmp.ne.s32.totalorder %s13060_s6, 0  ;;  %s8195_s25 = smov [#allocation9]  }
  0x7b   : > { %v12743_v56 = vunpack.c.l.bf16 %v8447_v47  ;;  %1941 = vmatprep.mubr.bf16.mxu1 %v700_v46  ;;  %v12744_v6 = vunpack.c.l.bf16 %v8459_v57  ;;  %v736_v10 = vunpack.c.l.bf16 %v8462_v58  ;;  %v737_v11 = vunpack.c.h.bf16 %v8462_v58  ;;  %s8122_s21 = sshll.u32 %s8195_s25, 4  ;;  %s8123_s21 = int_to_ptr.vmem [resolvable:$false] %s8122_s21 }
  0x7c   : > { %6327 = vmatpush3.bf16.msra.mxu0 %v7832_v14  ;;  %v766_v60 = vrot.slane %v734_v50, 7  ;;  %v767_v61 = vrot.slane %v735_v51, 7  ;;  %v8465_v62 = vrot.slane %v734_v50, 1  ;;  %v8467_v63 = vrot.slane %v735_v51, 1  ;;  %p8120_p2 = pnand %p8119_p11, %p13897_p0  ;;  %s8124_s10 = scalar_lea.vmem %s8123_s21, 8192 }
  0x7d   : > { %6463 = vmatpush3.bf16.msra.mxu1 %v7833_v16  ;;  %6328 = vmatprep.subr.bf16.mxu0 %v7834_v17  ;;  %v764_v0 = vrot.slane %v732_v52, 7  ;;  %v765_v1 = vrot.slane %v733_v55, 7  ;;  %v8470_v2 = vrot.slane %v732_v52, 1  ;;  %v8472_v3 = vrot.slane %v733_v55, 1  ;;  %p8125_p7 = scmp.lt.s32.totalorder %s12672_s8, %s8123_s21  ;;  %p8126_p9 = scmp.lt.s32.totalorder %s8124_s10, %s8118_s22 }
  0x7e   : > { %6464 = vmatprep.subr.bf16.mxu1 %v7835_v18  ;;  %v8478_v4 = vsel %vm12831_vm0, %v8465_v62, %v8467_v63  ;;  %v8482_v5 = vrot.slane %v12743_v56, 7  ;;  %v8490_v8 = vsel %vm12828_vm1, %v766_v60, %v767_v61  ;;  %v8503_v13 = vrot.slane %v12744_v6, 7  ;;  %v7864_v6 = vld [vmem:[#allocation6 + $0x160] sm:$0xff]   ;;  %p8121_p3 = pneg %p8120_p2 }
  0x7f   : > { %13072 = vst [vmem:[#allocation16_spill] sm:$0xff] %v8470_v2  ;;  %13073 = vst [vmem:[#allocation17_spill] sm:$0xff] %v8478_v4  ;;  %v8494_v9 = vsel %vm12828_vm1, %v764_v0, %v765_v1  ;;  %v8509_v14 = vsel %vm12831_vm0, %v8470_v2, %v8472_v3  ;;  %v768_v16 = vrot.slane %v736_v10, 7  ;;  %v769_v17 = vrot.slane %v737_v11, 7  ;;  %p8127_p12 = por %p8126_p9, %p8125_p7 }
  0x80   : > { %6329 = vmatpush3.bf16.msra.mxu0 %v7836_v19  ;;  %v1142_v12 = vsel %vm12828_vm1, %v8482_v5, %v766_v60  ;;  %13074 = vst [vmem:[#allocation18_spill] sm:$0xff] %v8509_v14  ;;  %v8514_v18 = vrot.slane %v736_v10, 1  ;;  %v8517_v19 = vld [vmem:[%s8403_s5 + $0x18] sm:$0xff]   ;;  %v826_v29 = vsel %vm12828_vm1, %v765_v1, %v766_v60  ;;  %v8563_v55 = vadd.s32 160, %v8413_v20 }
  0x81   : > { %6465 = vmatpush3.bf16.msra.mxu1 %v7837_v21  ;;  %6330 = vmatprep.subr.bf16.mxu0 %v7838_v22  ;;  %v1148_v15 = vsel %vm8431_vm2, %v8478_v4, %v1142_v12  ;;  %v13075_v21 = vmov 0  ;;  %v739_v37 = vunpack.c.h.bf16 %v8517_v19  ;;  %v896_v60 = vsel %vm8453_vm3, %v8478_v4, %v826_v29  ;;  %v7861_v29 = vld [vmem:[#allocation6 + $0x158] sm:$0xff]   ;;  %p8128_p1 = pnand %p8127_p12, %p8121_p3 }
  0x82   : > { %6466 = vmatprep.subr.bf16.mxu1 %v7839_v23  ;;  %v13076_v21 = vsel %vm8519_vm4, 4294967295, %v13075_v21  ;;  %v1180_v22 = vpack.c.bf16 %v8490_v8, %v1148_v15  ;;  %v828_v23 = vsel %vm12828_vm1, %v8503_v13, %v764_v0  ;;  %v13080_v10 = vmov 0 }
  0x83   : > { %13077 = vst [vmem:[#allocation19_spill] sm:$0xff] %v13076_v21  ;;  %v894_v27 = vsel %vm8431_vm2, %v8509_v14, %v828_v23  ;;  %v8569_v0 = vrot.slane %v739_v37, 1  ;;  %v13081_v10 = vsel %vm8574_vm5, 4294967295, %v13080_v10  ;;  %v13085_v23 = vmov 0 }
  0x84   : > { %6331 = vmatpush3.bf16.msra.mxu0 %v7840_v24  ;;  %v834_v24 = vrot.slane %v737_v11, 1  ;;  %13082 = vst [vmem:[#allocation22_spill] sm:$0xff] %v13081_v10  ;;  %v7869_v11 = vld [vmem:[#allocation6 + $0x88] sm:$0xff]   ;;  %v13086_v23 = vsel %vm8599_vm6, 4294967295, %v13085_v23  ;;  %v13096_v54 = vand.u32 15, %v8436_v40 }
  0x85   : > { %6467 = vmatpush3.bf16.msra.mxu1 %v7841_v26  ;;  %6332 = vmatprep.subr.bf16.mxu0 %v7842_v28  ;;  %v8533_v28 = vsel %vm12828_vm1, %v767_v61, %v768_v16  ;;  %v771_v61 = vrot.slane %v739_v37, 7  ;;  %13087 = vst [vmem:[#allocation25_spill] sm:$0xff] %v13086_v23  ;;  %v7873_v37 = vld [vmem:[#allocation6 + $0x90] sm:$0xff]   ;;  %v8703_v10 = vld [vmem:[%s8403_s5 + $0x48] sm:$0xff]  }
  0x86   : > { %6468 = vmatprep.subr.bf16.mxu1 %v7843_v30  ;;  %v8538_v30 = vadd.s32 144, %v8413_v20  ;;  %vm8675_vm8 = vcmp.eq.s32.totalorder %v13096_v54, 0  ;;  %v7879_v54 = vld [vmem:[#allocation6 + $0xa8] sm:$0xff]   ;;  %13107 = vst [vmem:[#allocation37_spill] sm:$0xff] %v8703_v10 }
  0x88   : > { %6333 = vmatpush3.bf16.msra.mxu0 %v7844_v32  ;;  %v926_v32 = vpack.c.bf16 %v8494_v9, %v894_v27  ;;  %v8608_v27 = vld [vmem:[%s8403_s5 + $0x30] sm:$0xff]  }
  0x89   : > { %6469 = vmatpush3.bf16.msra.mxu1 %v7845_v34  ;;  %6334 = vmatprep.subr.bf16.mxu0 %v7846_v36  ;;  %v8544_v34 = vsel %vm12831_vm0, %v8514_v18, %v834_v24  ;;  %v738_v36 = vunpack.c.l.bf16 %v8517_v19  ;;  %v745_v46 = vunpack.c.h.bf16 %v8608_v27 }
  0x8a   : > { %6470 = vmatprep.subr.bf16.mxu1 %v7847_v38  ;;  %13078 = vst [vmem:[#allocation20_spill] sm:$0xff] %v8544_v34  ;;  %v8549_v38 = vld [vmem:[%s8403_s5 + $0x20] sm:$0xff]   ;;  %v1150_v44 = vsel %vm8453_vm3, %v8544_v34, %v8533_v28 }
  0x8b   : > { %v770_v51 = vrot.slane %v738_v36, 7  ;;  %v835_v52 = vrot.slane %v738_v36, 1  ;;  %v740_v1 = vunpack.c.l.bf16 %v8549_v38  ;;  %v741_v15 = vunpack.c.h.bf16 %v8549_v38 }
  0x8c   : > { %6335 = vmatpush3.bf16.msra.mxu0 %v7848_v41  ;;  %v7865_v41 = vld [vmem:[#allocation6 + $0x80] sm:$0xff]   ;;  %v8638_v36 = vadd.s32 192, %v8413_v20  ;;  %v8694_v2 = vrot.slane %v745_v46, 1 }
  0x8d   : > { %6471 = vmatpush3.bf16.msra.mxu1 %v7849_v43  ;;  %7136 = vmatprep.subr.bf16.mxu0 %v7852_v53  ;;  %v8554_v43 = vsel %vm12828_vm1, %v768_v16, %v769_v17  ;;  %v8581_v12 = vsel %vm12831_vm0, %v834_v24, %v835_v52  ;;  %v8587_v31 = vsel %vm12828_vm1, %v769_v17, %v770_v51  ;;  %v8604_v24 = vadd.s32 176, %v8413_v20 }
  0x8e   : > { %13079 = vst [vmem:[#allocation21_spill] sm:$0xff] %v8554_v43  ;;  %7184 = vmatprep.subr.bf16.mxu1 %v7865_v41  ;;  %13083 = vst [vmem:[#allocation23_spill] sm:$0xff] %v8581_v12  ;;  %v8592_v48 = vsel %vm12831_vm0, %v835_v52, %v8569_v0  ;;  %v927_v17 = vpack.c.bf16 %v8490_v8, %v896_v60  ;;  %v8615_v33 = vsel %vm12828_vm1, %v770_v51, %v771_v61 }
  0x8f   : > { %1476 = vmatmul.mubr.bf16.vlgmr.msra.gmra.mrb[0].mxu0 %v1180_v22  ;;  %13084 = vst [vmem:[#allocation24_spill] sm:$0xff] %v8592_v48  ;;  %v8595_v22 = vld [vmem:[%s8403_s5 + $0x28] sm:$0xff]   ;;  %13088 = vst [vmem:[#allocation26_spill] sm:$0xff] %v8604_v24  ;;  %v772_v49 = vrot.slane %v740_v1, 7  ;;  %v8627_v52 = vrot.slane %v741_v15, 1  ;;  %v8642_v16 = vadd.s32 240, %v8413_v20  ;;  %v900_v35 = vsel %vm8574_vm5, %v8592_v48, %v8587_v31 }
  0x90   : > { %7137 = vmatpush3.bf16.msra.mxu0 %v7852_v53  ;;  %1483 = vmatprep.mubr.bf16.mxu0 %v8462_v58  ;;  %v7858_v53 = vld [vmem:[#allocation6 + $0x150] sm:$0xff]   ;;  %13089 = vst [vmem:[#allocation27_spill] sm:$0xff] %v8615_v33  ;;  %v742_v60 = vunpack.c.l.bf16 %v8595_v22  ;;  %v743_v51 = vunpack.c.h.bf16 %v8595_v22  ;;  %13090 = vst [vmem:[#allocation28_spill] sm:$0xff] %v8638_v36 }
  0x91   : > { %1942 = vmatmul.mubr.bf16.vlgmr.msra.gmra.mrb[0].mxu1 %v926_v32  ;;  %7138 = vmatprep.subr.bf16.mxu0 %v7855_v25  ;;  %v8618_v32 = vld [vmem:[%s8403_s5 + $0x38] sm:$0xff]   ;;  %v820_v56 = vsel %vm12828_vm1, %v771_v61, %v772_v49  ;;  %13102 = vst [vmem:[#allocation35_spill] sm:$0xff] %v8694_v2 }
  0x92   : > { %1949 = vmatprep.mubr.bf16.mxu1 %v8443_v45  ;;  %v1181_v45 = vpack.c.bf16 %v8554_v43, %v1150_v44  ;;  %7185 = vmatpush3.bf16.msra.mxu1 %v7865_v41  ;;  %v1152_v41 = vsel %vm8519_vm4, %v8592_v48, %v8587_v31  ;;  %v8625_v44 = vrot.slane %v740_v1, 1  ;;  %v898_v1 = vsel %vm8519_vm4, %v8544_v34, %v8533_v28  ;;  %v7872_v34 = vld [vmem:[#allocation6 + $0x170] sm:$0xff]  }
  0x93   : > { %7186 = vmatprep.subr.bf16.mxu1 %v7869_v11  ;;  %v744_v28 = vunpack.c.l.bf16 %v8608_v27  ;;  %v774_v50 = vrot.slane %v742_v60, 7  ;;  %v746_v61 = vunpack.c.l.bf16 %v8618_v32  ;;  %v928_v26 = vpack.c.bf16 %v8554_v43, %v898_v1  ;;  %v7878_v1 = vld [vmem:[#allocation6 + $0xa0] sm:$0xff]  }
  0x94   : > { %7139 = vmatpush3.bf16.msra.mxu0 %v7855_v25  ;;  %v8611_v25 = vadd.s32 224, %v8413_v20  ;;  %v775_v59 = vrot.slane %v743_v51, 7  ;;  %v747_v21 = vunpack.c.h.bf16 %v8618_v32  ;;  %v13103_v48 = vand.u32 15, %v8439_v42 }
  0x95   : > { %7140 = vmatprep.subr.bf16.mxu0 %v7858_v53  ;;  %v8689_v40 = vrot.slane %v744_v28, 1  ;;  %v778_v24 = vrot.slane %v746_v61, 7 }
  0x96   : > { %7187 = vmatpush3.bf16.msra.mxu1 %v7869_v11  ;;  %v8653_v11 = vsel %vm12831_vm0, %v8625_v44, %v8627_v52  ;;  %vm8698_vm9 = vcmp.eq.s32.totalorder %v13103_v48, 0 }
  0x97   : > { %1484 = vmatmul.mubr.bf16.gmra.mrb[4].mxu0 %v1181_v45  ;;  %v7875_v45 = vld [vmem:[#allocation6 + $0x98] sm:$0xff]   ;;  %7188 = vmatprep.subr.bf16.mxu1 %v7873_v37  ;;  %13091 = vst [vmem:[#allocation29_spill] sm:$0xff] %v8653_v11  ;;  %v1154_v31 = vsel %vm8574_vm5, %v8653_v11, %v820_v56  ;;  %13101 = vst [vmem:[#allocation34_spill] sm:$0xff] %v8689_v40  ;;  %v902_v36 = vsel %vm8599_vm6, %v8653_v11, %v820_v56 }
  0x98   : > { %1491 = vmatprep.mubr.bf16.mxu0 %v8517_v19  ;;  %7141 = vmatpush3.bf16.msra.mxu0 %v7858_v53  ;;  %v1182_v53 = vpack.c.bf16 %v8615_v33, %v1152_v41  ;;  %v8665_v41 = vrot.slane %v743_v51, 1  ;;  %v776_v51 = vrot.slane %v744_v28, 7  ;;  %v8718_v28 = vrot.slane %v746_v61, 1 }
  0x99   : > { %1950 = vmatmul.mubr.bf16.gmra.mrb[4].mxu1 %v927_v17  ;;  %7142 = vmatprep.subr.bf16.mxu0 %v7861_v29  ;;  %v773_v17 = vrot.slane %v741_v15, 7  ;;  %v8663_v15 = vrot.slane %v742_v60, 1  ;;  %v8680_v60 = vld [vmem:[%s8403_s5 + $0x40] sm:$0xff]   ;;  %v779_v61 = vrot.slane %v747_v21, 7  ;;  %v8751_v23 = vsel %vm12831_vm0, %v8689_v40, %v8694_v2 }
  0x9a   : > { %1957 = vmatprep.mubr.bf16.mxu1 %v8462_v58  ;;  %v13092_v58 = vmov 0  ;;  %7189 = vmatpush3.bf16.msra.mxu1 %v7873_v37  ;;  %13095 = vst [vmem:[#allocation31_spill] sm:$0xff] %v8665_v41  ;;  %v13097_v37 = vmov 0  ;;  %13109 = vst [vmem:[#allocation39_spill] sm:$0xff] %v8718_v28  ;;  %v748_v11 = vunpack.c.l.bf16 %v8680_v60 }
  0x9b   : > { %v13093_v58 = vsel %vm8658_vm7, 4294967295, %v13092_v58  ;;  %7190 = vmatprep.subr.bf16.mxu1 %v7875_v45  ;;  %v13098_v37 = vsel %vm8675_vm8, 4294967295, %v13097_v37  ;;  %v8684_v39 = vsel %vm12828_vm1, %v772_v49, %v773_v17  ;;  %v13104_v49 = vmov 0 }
  0x9c   : > { %13094 = vst [vmem:[#allocation30_spill] sm:$0xff] %v13093_v58  ;;  %7143 = vmatpush3.bf16.msra.mxu0 %v7861_v29  ;;  %13099 = vst [vmem:[#allocation32_spill] sm:$0xff] %v13098_v37  ;;  %v7868_v29 = vld [vmem:[#allocation6 + $0x168] sm:$0xff]   ;;  %v13105_v49 = vsel %vm8698_vm9, 4294967295, %v13104_v49  ;;  %v8709_v56 = vsel %vm12828_vm1, %v773_v17, %v774_v50  ;;  %v8715_v42 = vsel %vm12831_vm0, %v8663_v15, %v8665_v41  ;;  %v780_v41 = vrot.slane %v748_v11, 7  ;;  %v8847_v37 = vld [vmem:[%s8403_s5 + $0x60] sm:$0xff]  }
  0x9d   : > { %7144 = vmatprep.subr.bf16.mxu0 %v7864_v6  ;;  %13100 = vst [vmem:[#allocation33_spill] sm:$0xff] %v8684_v39  ;;  %13106 = vst [vmem:[#allocation36_spill] sm:$0xff] %v13105_v49  ;;  %v1183_v48 = vpack.c.bf16 %v8684_v39, %v1154_v31  ;;  %v8724_v17 = vpack.c.bf16 %v8684_v39, %v902_v36  ;;  %v13112_v36 = vand.u32 15, %v8486_v7  ;;  %v7877_v31 = vld [vmem:[#allocation6 + $0x178] sm:$0xff]   ;;  %v750_v7 = vunpack.c.l.bf16 %v8703_v10 }
  0x9e   : > { %7191 = vmatpush3.bf16.msra.mxu1 %v7875_v45  ;;  %13108 = vst [vmem:[#allocation38_spill] sm:$0xff] %v8715_v42  ;;  %v8720_v45 = vrot.slane %v747_v21, 1  ;;  %v8773_v40 = vrot.slane %v748_v11, 1  ;;  %v13118_v11 = vmov 0  ;;  %13129 = vst [vmem:[#allocation50_spill] sm:$0xff] %v8847_v37  ;;  %v756_v49 = vunpack.c.l.bf16 %v8847_v37 }
  0x9f   : > { %1492 = vmatmul.mubr.bf16.gmra.mrb[8].mxu0 %v1182_v53  ;;  %v929_v53 = vpack.c.bf16 %v8615_v33, %v900_v35  ;;  %v777_v35 = vrot.slane %v745_v46, 7  ;;  %v8728_v33 = vld [vmem:[%s8403_s5 + $0x50] sm:$0xff]   ;;  %7192 = vmatprep.subr.bf16.mxu1 %v7878_v1  ;;  %vm8741_vm10 = vcmp.eq.s32.totalorder %v13112_v36, 0  ;;  %v13113_v46 = vmov 0 }
  0xa0   : > { %1499 = vmatprep.mubr.bf16.mxu0 %v8549_v38  ;;  %7145 = vmatpush3.bf16.msra.mxu0 %v7864_v6  ;;  %13110 = vst [vmem:[#allocation40_spill] sm:$0xff] %v8720_v45  ;;  %13111 = vst [vmem:[#allocation41_spill] sm:$0xff] %v8728_v33  ;;  %v8732_v6 = vsel %vm12828_vm1, %v774_v50, %v775_v59  ;;  %v13114_v46 = vsel %vm8741_vm10, 4294967295, %v13113_v46  ;;  %v816_v50 = vsel %vm12828_vm1, %v775_v59, %v776_v51 }
  0xa1   : > { %1958 = vmatmul.mubr.bf16.gmra.mrb[8].mxu1 %v928_v26  ;;  %7146 = vmatprep.subr.bf16.mxu0 %v7868_v29  ;;  %v1156_v26 = vsel %vm8599_vm6, %v8715_v42, %v8709_v56  ;;  %13115 = vst [vmem:[#allocation42_spill] sm:$0xff] %v13114_v46  ;;  %v814_v21 = vsel %vm12828_vm1, %v777_v35, %v778_v24  ;;  %v751_v59 = vunpack.c.h.bf16 %v8703_v10  ;;  %v752_v36 = vunpack.c.l.bf16 %v8728_v33  ;;  %v7881_v10 = vld [vmem:[#allocation6 + $0xb0] sm:$0xff]  }
  0xa2   : > { %1965 = vmatprep.mubr.bf16.mxu1 %v8517_v19  ;;  %v749_v19 = vunpack.c.h.bf16 %v8680_v60  ;;  %7193 = vmatpush3.bf16.msra.mxu1 %v7878_v1  ;;  %v8760_v1 = vsel %vm12831_vm0, %v8718_v28, %v8720_v45  ;;  %v753_v39 = vunpack.c.h.bf16 %v8728_v33  ;;  %v8767_v2 = vsel %vm12828_vm1, %v776_v51, %v777_v35  ;;  %v8776_v45 = vld [vmem:[%s8403_s5 + $0x58] sm:$0xff]   ;;  %v8926_v46 = vld [vmem:[%s8403_s5 + $0x70] sm:$0xff]  }
  0xa3   : > { %7194 = vmatprep.subr.bf16.mxu1 %v7879_v54  ;;  %13116 = vst [vmem:[#allocation43_spill] sm:$0xff] %v8776_v45  ;;  %v1158_v33 = vsel %vm8658_vm7, %v8751_v23, %v816_v50  ;;  %v8783_v51 = vsel %vm12828_vm1, %v778_v24, %v779_v61  ;;  %v1160_v58 = vsel %vm8675_vm8, %v8760_v1, %v814_v21  ;;  %v8800_v14 = vrot.slane %v750_v7, 1 }
  0xa4   : > { %7147 = vmatpush3.bf16.msra.mxu0 %v7868_v29  ;;  %v904_v29 = vsel %vm8658_vm7, %v8715_v42, %v8709_v56  ;;  %v781_v35 = vrot.slane %v749_v19, 7  ;;  %v8785_v28 = vrot.slane %v749_v19, 1  ;;  %v13117_v56 = vand.u32 15, %v8538_v30  ;;  %v7882_v42 = vld [vmem:[#allocation6 + $0xb8] sm:$0xff]   ;;  %13140 = vst [vmem:[#allocation58_spill] sm:$0xff] %v8926_v46 }
  0xa5   : > { %7148 = vmatprep.subr.bf16.mxu0 %v7872_v34  ;;  %v906_v24 = vsel %vm8675_vm8, %v8751_v23, %v816_v50  ;;  %v782_v19 = vrot.slane %v750_v7, 7  ;;  %v13121_v30 = vand.u32 15, %v8563_v55  ;;  %v784_v4 = vrot.slane %v752_v36, 7 }
  0xa6   : > { %vm8789_vm11 = vcmp.eq.s32.totalorder %v13117_v56, 0  ;;  %7195 = vmatpush3.bf16.msra.mxu1 %v7879_v54  ;;  %v13122_v56 = vmov 0  ;;  %v8808_v54 = vrot.slane %v751_v59, 1  ;;  %v8810_v43 = vrot.slane %v752_v36, 1 }
  0xa7   : > { %1500 = vmatmul.mubr.bf16.gmra.mrb[12].mxu0 %v1183_v48  ;;  %v13119_v11 = vsel %vm8789_vm11, 4294967295, %v13118_v11  ;;  %v7883_v48 = vld [vmem:[#allocation6 + $0x1c0] sm:$0xff]   ;;  %vm8804_vm12 = vcmp.eq.s32.totalorder %v13121_v30, 0  ;;  %v8812_v12 = vrot.slane %v753_v39, 1  ;;  %v1184_v50 = vpack.c.bf16 %v8732_v6, %v1156_v26  ;;  %7196 = vmatprep.subr.bf16.mxu1 %v7881_v10 }
  0xa8   : > { %13120 = vst [vmem:[#allocation44_spill] sm:$0xff] %v13119_v11  ;;  %1507 = vmatprep.mubr.bf16.mxu0 %v8595_v22  ;;  %v13123_v56 = vsel %vm8804_vm12, 4294967295, %v13122_v56  ;;  %7149 = vmatpush3.bf16.msra.mxu0 %v7872_v34  ;;  %13125 = vst [vmem:[#allocation46_spill] sm:$0xff] %v8808_v54  ;;  %v8817_v55 = vpack.c.bf16 %v8732_v6, %v904_v29  ;;  %v908_v34 = vsel %vm8698_vm9, %v8760_v1, %v814_v21  ;;  %v8929_v11 = vld [vmem:[%s8403_s5 + $0x78] sm:$0xf] }
  0xa9   : > { %13124 = vst [vmem:[#allocation45_spill] sm:$0xff] %v13123_v56  ;;  %1966 = vmatmul.mubr.bf16.gmra.mrb[12].mxu1 %v929_v53  ;;  %13126 = vst [vmem:[#allocation47_spill] sm:$0xff] %v8812_v12  ;;  %7150 = vmatprep.subr.bf16.mxu0 %v7877_v31  ;;  %v1185_v53 = vpack.c.bf16 %v8767_v2, %v1158_v33  ;;  %v812_v7 = vsel %vm12828_vm1, %v779_v61, %v780_v41  ;;  %v754_v26 = vunpack.c.l.bf16 %v8776_v45 }
  0xaa   : > { %1973 = vmatprep.mubr.bf16.mxu1 %v8549_v38  ;;  %v8829_v38 = vsel %vm12831_vm0, %v8773_v40, %v8785_v28  ;;  %v8833_v36 = vpack.c.bf16 %v8783_v51, %v1160_v58  ;;  %v8836_v21 = vpack.c.bf16 %v8767_v2, %v906_v24  ;;  %v755_v33 = vunpack.c.h.bf16 %v8776_v45  ;;  %7197 = vmatpush3.bf16.msra.mxu1 %v7881_v10  ;;  %v8858_v24 = vld [vmem:[%s8403_s5 + $0x68] sm:$0xff]  }
  0xab   : > { %13127 = vst [vmem:[#allocation48_spill] sm:$0xff] %v8829_v38  ;;  %v8841_v61 = vsel %vm12828_vm1, %v780_v41, %v781_v35  ;;  %v8844_v29 = vpack.c.bf16 %v8783_v51, %v908_v34  ;;  %v783_v30 = vrot.slane %v751_v59, 7  ;;  %7198 = vmatprep.subr.bf16.mxu1 %v7882_v42  ;;  %v1162_v58 = vsel %vm8698_vm9, %v8829_v38, %v812_v7 }
  0xac   : > { %7151 = vmatpush3.bf16.msra.mxu0 %v7877_v31  ;;  %13128 = vst [vmem:[#allocation49_spill] sm:$0xff] %v8841_v61  ;;  %v810_v31 = vsel %vm12828_vm1, %v781_v35, %v782_v19  ;;  %v910_v10 = vsel %vm8741_vm10, %v8829_v38, %v812_v7  ;;  %v785_v41 = vrot.slane %v753_v39, 7  ;;  %13130 = vst [vmem:[#allocation51_spill] sm:$0xff] %v8858_v24  ;;  %v786_v34 = vrot.slane %v754_v26, 7  ;;  %v8874_v39 = vld [vmem:[#allocation6 + $0x200] sm:$0xff]  }
  0xad   : > { %6592 = vmatprep.subr.bf16.mxu0 %v7883_v48  ;;  %v8864_v59 = vsel %vm12831_vm0, %v8800_v14, %v8808_v54  ;;  %v808_v48 = vsel %vm12828_vm1, %v783_v30, %v784_v4  ;;  %v8872_v35 = vsel %vm12831_vm0, %v8810_v43, %v8812_v12  ;;  %13133 = vst [vmem:[#allocation54_spill] sm:$0xff] %v8874_v39  ;;  %v8879_v7 = vrot.slane %v755_v33, 1 }
  0xae   : > { %13131 = vst [vmem:[#allocation52_spill] sm:$0xff] %v8864_v59  ;;  %13132 = vst [vmem:[#allocation53_spill] sm:$0xff] %v8872_v35  ;;  %v757_v45 = vunpack.c.h.bf16 %v8847_v37  ;;  %7199 = vmatpush3.bf16.msra.mxu1 %v7882_v42  ;;  %v8885_v38 = vpack.c.bf16 %v8841_v61, %v1162_v58  ;;  %v8889_v12 = vsel %vm12828_vm1, %v782_v19, %v783_v30  ;;  %v8894_v54 = vrot.slane %v755_v33, 7 }
  0xaf   : > { %1508 = vmatmul.mubr.bf16.gmra.mrb[16].mxu0 %v1184_v50  ;;  %v8877_v50 = vrot.slane %v754_v26, 1  ;;  %v8892_v26 = vpack.c.bf16 %v8841_v61, %v910_v10  ;;  %7232 = vmatprep.subr.bf16.mxu1 %v8874_v39  ;;  %v1164_v42 = vsel %vm8741_vm10, %v8864_v59, %v810_v31  ;;  %v1166_v19 = vsel %vm8789_vm11, %v8872_v35, %v808_v48 }
  0xb0   : > { %1515 = vmatprep.mubr.bf16.mxu0 %v8608_v27  ;;  %13134 = vst [vmem:[#allocation55_spill] sm:$0xff] %v8894_v54  ;;  %v912_v33 = vsel %vm8789_vm11, %v8864_v59, %v810_v31  ;;  %v13135_v30 = vand.u32 15, %v8611_v25  ;;  %v8919_v58 = vsel %vm12828_vm1, %v785_v41, %v786_v34  ;;  %v758_v10 = vunpack.c.l.bf16 %v8858_v24  ;;  %13141 = vst [vmem:[#allocation59_spill] sm:$0xff] %v8929_v11 }
  0xb1   : > { %1974 = vmatmul.mubr.bf16.gmra.mrb[16].mxu1 %v8724_v17  ;;  %v8903_v17 = vsel %vm12828_vm1, %v784_v4, %v785_v41  ;;  %13139 = vst [vmem:[#allocation57_spill] sm:$0xff] %v8919_v58  ;;  %v914_v4 = vsel %vm8804_vm12, %v8872_v35, %v808_v48  ;;  %v8935_v25 = vsel %vm12831_vm0, %v8877_v50, %v8879_v7  ;;  %v8937_v31 = vrot.slane %v756_v49, 7  ;;  %v8952_v35 = vld [vmem:[%s8403_s5 + $0x80] sm:$0xf] }
  0xb2   : > { %1981 = vmatprep.mubr.bf16.mxu1 %v8595_v22  ;;  %vm8913_vm13 = vcmp.eq.s32.totalorder %v13135_v30, 0  ;;  %v13136_v22 = vmov 0  ;;  %v8939_v41 = vrot.slane %v757_v45, 7  ;;  %v759_v30 = vunpack.c.h.bf16 %v8858_v24  ;;  %13144 = vst [vmem:[#allocation62_spill] sm:$0xff] %v8952_v35 }
  0xb3   : > { %v13137_v22 = vsel %vm8913_vm13, 4294967295, %v13136_v22  ;;  %v8943_v48 = vpack.c.bf16 %v8889_v12, %v1164_v42  ;;  %v8946_v39 = vpack.c.bf16 %v8903_v17, %v1166_v19  ;;  %v8949_v37 = vpack.c.bf16 %v8889_v12, %v912_v33 }
  0xb4   : > { %13138 = vst [vmem:[#allocation56_spill] sm:$0xff] %v13137_v22  ;;  %13142 = vst [vmem:[#allocation60_spill] sm:$0xff] %v8939_v41  ;;  %v8957_v59 = vsel %vm12828_vm1, %v786_v34, %v8894_v54  ;;  %v8960_v61 = vpack.c.bf16 %v8903_v17, %v914_v4  ;;  %v760_v24 = vunpack.c.l.bf16 %v8926_v46  ;;  %v761_v42 = vunpack.c.h.bf16 %v8926_v46 }
  0xb5   : > { %13143 = vst [vmem:[#allocation61_spill] sm:$0xff] %v8949_v37  ;;  %v1168_v19 = vsel %vm8804_vm12, %v8935_v25, %v8919_v58  ;;  %v8968_v33 = vrot.slane %v756_v49, 1  ;;  %v8970_v37 = vrot.slane %v757_v45, 1  ;;  %v762_v34 = vunpack.c.l.bf16 %v8929_v11 }
  0xb6   : > { %13145 = vst [vmem:[#allocation63_spill] sm:$0xff] %v8960_v61  ;;  %v8974_v4 = vrot.slane %v758_v10, 7  ;;  %v8976_v61 = vrot.slane %v759_v30, 7  ;;  %v8978_v54 = vrot.slane %v758_v10, 1  ;;  %v8983_v56 = vrot.slane %v761_v42, 7 }
  0xb7   : > { %1516 = vmatmul.mubr.bf16.gmra.mrb[20].mxu0 %v1185_v53  ;;  %v8981_v53 = vrot.slane %v759_v30, 1  ;;  %v794_v49 = vrot.slane %v762_v34, 7  ;;  %v8985_v46 = vrot.slane %v762_v34, 1  ;;  %v8989_v45 = vpack.c.bf16 %v8957_v59, %v1168_v19 }
  0xb8   : > { %1523 = vmatprep.mubr.bf16.mxu0 %v8618_v32  ;;  %13146 = vst [vmem:[#allocation64_spill] sm:$0xff] %v8974_v4  ;;  %13147 = vst [vmem:[#allocation65_spill] sm:$0xff] %v8976_v61  ;;  %v8991_v11 = vrot.slane %v760_v24, 7  ;;  %v13150_v58 = vunpack.c.l.bf16 %v8459_v57  ;;  %v9002_v30 = vsel %vm12828_vm1, %v8937_v31, %v8939_v41  ;;  %v9022_v19 = vsel %vm12828_vm1, %v8974_v4, %v8976_v61 }
  0xb9   : > { %1982 = vmatmul.mubr.bf16.gmra.mrb[20].mxu1 %v8817_v55  ;;  %13148 = vst [vmem:[#allocation66_spill] sm:$0xff] %v8989_v45  ;;  %v1136_v55 = vunpack.c.l.bf16 %v8952_v35  ;;  %v9013_v57 = vsel %vm12828_vm1, %v794_v49, %v8503_v13  ;;  %v9024_v34 = vrot.slane %v760_v24, 1  ;;  %v9038_v45 = vrot.slane %v761_v42, 1 }
  0xba   : > { %1989 = vmatprep.mubr.bf16.mxu1 %v8608_v27  ;;  %13149 = vst [vmem:[#allocation67_spill] sm:$0xff] %v8991_v11  ;;  %v8995_v10 = vrot.slane %v13150_v58, 1  ;;  %v9008_v27 = vsel %vm12831_vm0, %v8968_v33, %v8970_v37  ;;  %v798_v58 = vsel %vm12828_vm1, %v8983_v56, %v794_v49  ;;  %v9036_v49 = vsel %vm12831_vm0, %v8978_v54, %v8981_v53 }
  0xbb   : > { %v1138_v41 = vrot.slane %v1136_v55, 7  ;;  %v9043_v61 = vrot.slane %v1136_v55, 1  ;;  %v13153_v22 = vunpack.c.l.bf16 %v8447_v47  ;;  %v891_v47 = vsel %vm12831_vm0, %v8472_v3, %v8465_v62 }
  0xbc   : > { %13151 = vst [vmem:[#allocation68_spill] sm:$0xff] %v8995_v10  ;;  %v9030_v35 = vsel %vm12831_vm0, %v8985_v46, %v8995_v10  ;;  %v466_v10 = vand.u32 15, %v8642_v16  ;;  %v13155_v16 = vmov 0  ;;  %vm13193_vm11 = vcmp.lt.s32.totalorder %v8413_v20, 7 }
  0xbd   : > { %v1176_v24 = vsel %vm8913_vm13, %v9030_v35, %v798_v58  ;;  %v9052_v11 = vsel %vm12828_vm1, %v1138_v41, %v8482_v5  ;;  %v1141_v42 = vsel %vm12828_vm1, %v8503_v13, %v1138_v41  ;;  %v9060_v55 = vrot.slane %v13153_v22, 1 }
  0xbe   : > { %v9046_v4 = vpack.c.bf16 %v9013_v57, %v1176_v24  ;;  %v221_v24 = vadd.s32 8, %v8413_v20  ;;  %v889_v5 = vsel %vm12831_vm0, %v8467_v63, %v8514_v18  ;;  %vm9069_vm14 = vcmp.eq.s32.totalorder %v466_v10, 0 }
  0xbf   : > { %1524 = vmatmul.mubr.bf16.gmra.mrb[24].mxu0 %v8833_v36  ;;  %13154 = vst [vmem:[#allocation70_spill] sm:$0xff] %v9060_v55  ;;  %v13156_v16 = vsel %vm9069_vm14, 4294967295, %v13155_v16  ;;  %v225_v13 = vadd.s32 40, %v8413_v20  ;;  %v885_v36 = vsel %vm12831_vm0, %v8569_v0, %v8625_v44  ;;  %v9087_v63 = vsel %vm12831_vm0, %v9043_v61, %v9060_v55 }
  0xc0   : > { %13152 = vst [vmem:[#allocation69_spill] sm:$0xff] %v9046_v4  ;;  %v223_v4 = vadd.s32 24, %v8413_v20  ;;  %1531 = vmatprep.mubr.bf16.mxu0 %v8680_v60  ;;  %13157 = vst [vmem:[#allocation71_spill] sm:$0xff] %v13156_v16  ;;  %v924_v18 = vsel %vm9069_vm14, %v9030_v35, %v798_v58  ;;  %v263_v3 = vand.u32 15, %v221_v24  ;;  %v1178_v0 = vsel %vm9069_vm14, %v9087_v63, %v1141_v42 }
  0xc1   : > { %1990 = vmatmul.mubr.bf16.gmra.mrb[24].mxu1 %v8836_v21  ;;  %v9097_v44 = vpack.c.bf16 %v9013_v57, %v924_v18  ;;  %v291_v21 = vand.u32 15, %v225_v13  ;;  %v227_v41 = vadd.s32 56, %v8413_v20  ;;  %v9101_v10 = vpack.c.bf16 %v9052_v11, %v1178_v0  ;;  %v13165_v13 = vld [vmem:[#allocation23_spill] sm:$0xff]  ;;  %v13166_v18 = vld [vmem:[#allocation21_spill] sm:$0xff] }
  0xc2   : > { %v277_v22 = vand.u32 15, %v223_v4  ;;  %1997 = vmatprep.mubr.bf16.mxu1 %v8618_v32  ;;  %vm9103_vm15 = vcmp.eq.s32.totalorder %v263_v3, 15  ;;  %v13159_v55 = vmov 0  ;;  %v13162_v4 = vmov 0 }
  0xc3   : > { %13158 = vst [vmem:[#allocation72_spill] sm:$0xff] %v9097_v44  ;;  %v13160_v55 = vsel %vm9103_vm15, 4294967295, %v13159_v55  ;;  %v883_v32 = vsel %vm12831_vm0, %v8627_v52, %v8663_v15  ;;  %v1197_v42 = vsel %vm9103_vm15, %v8490_v8, %v889_v5  ;;  %v943_v24 = vsel %vm9103_vm15, %v8494_v9, %v891_v47  ;;  %v13169_v15 = vld [vmem:[#allocation18_spill] sm:$0xff]  ;;  %v13170_v44 = vld [vmem:[#allocation20_spill] sm:$0xff] }
  0xc4   : > { %13161 = vst [vmem:[#allocation73_spill] sm:$0xff] %v13160_v55  ;;  %vm9107_vm1 = vcmp.eq.s32.totalorder %v277_v22, 15  ;;  %v13167_v22 = vld [vmem:[#allocation17_spill] sm:$0xff]  ;;  %v9135_v16 = vpack.c.bf16 %v943_v24, %v13169_v15  ;;  %vm9140_vm0 = vcmp.eq.s32.totalorder %v291_v21, 15  ;;  %v305_v9 = vand.u32 15, %v227_v41  ;;  %v13176_v55 = vld [vmem:[#allocation31_spill] sm:$0xff] }
  0xc5   : > { %v13163_v4 = vsel %vm9107_vm1, 4294967295, %v13162_v4  ;;  %v945_v58 = vsel %vm9107_vm1, %v8490_v8, %v889_v5  ;;  %v1199_v3 = vsel %vm9107_vm1, %v13166_v18, %v13165_v13  ;;  %v9132_v52 = vpack.c.bf16 %v1197_v42, %v13167_v22  ;;  %v13178_v42 = vld [vmem:[#allocation27_spill] sm:$0xff] }
  0xc6   : > { %13164 = vst [vmem:[#allocation74_spill] sm:$0xff] %v13163_v4  ;;  %v9129_v0 = vpack.c.bf16 %v945_v58, %v13167_v22  ;;  %v9138_v8 = vpack.c.bf16 %v1199_v3, %v13170_v44  ;;  %v13172_v5 = vmov 0  ;;  %v229_v47 = vadd.s32 72, %v8413_v20  ;;  %v13175_v4 = vld [vmem:[#allocation34_spill] sm:$0xff]  ;;  %v13179_v3 = vld [vmem:[#allocation39_spill] sm:$0xff] }
  0xc7   : > { %v13173_v5 = vsel %vm9140_vm0, 4294967295, %v13172_v5  ;;  %vm13177_vm14 = vcmp.lt.s32.totalorder %v8413_v20, 7  ;;  %1532 = vmatmul.mubr.bf16.gmra.mrb[28].mxu0 %v8885_v38  ;;  %v1201_v24 = vsel %vm9140_vm0, %v13178_v42, %v885_v36  ;;  %v947_v21 = vsel %vm9140_vm0, %v13166_v18, %v13165_v13  ;;  %v13180_v22 = vld [vmem:[#allocation35_spill] sm:$0xff]  ;;  %v13187_v18 = vld [vmem:[#allocation33_spill] sm:$0xff] }
  0xc8   : > { %13168 = vst [vmem:[#allocation23_spill] sm:$0xff] %v9129_v0  ;;  %13171 = vst [vmem:[#allocation21_spill] sm:$0xff] %v9138_v8  ;;  %v881_v58 = vsel %vm13177_vm14, %v13176_v55, %v13175_v4  ;;  %v231_v41 = vadd.s32 88, %v8413_v20  ;;  %v13182_v0 = vld [vmem:[#allocation37_spill] sm:$0xff]  ;;  %v13183_v55 = vld [vmem:[#allocation24_spill] sm:$0xff]  ;;  %v9167_v4 = vpack.c.bf16 %v947_v21, %v13170_v44  ;;  %v13184_v8 = vmov 0 }
  0xc9   : > { %13174 = vst [vmem:[#allocation17_spill] sm:$0xff] %v13173_v5  ;;  %vm13181_vm12 = vmmov %vm13177_vm14  ;;  %1539 = vmatprep.mubr.bf16.mxu0 %v13182_v0  ;;  %v9164_v38 = vpack.c.bf16 %v1201_v24, %v13183_v55  ;;  %vm9169_vm14 = vcmp.eq.s32.totalorder %v305_v9, 15  ;;  %v319_v13 = vand.u32 15, %v229_v47  ;;  %1998 = vmatmul.mubr.bf16.gmra.mrb[28].mxu1 %v8844_v29  ;;  %v13188_v44 = vld [vmem:[#allocation29_spill] sm:$0xff]  ;;  %v13189_v29 = vmov 0  ;;  %v13192_v21 = vld [vmem:[#allocation40_spill] sm:$0xff] }
  0xca   : > { %v879_v15 = vsel %vm13181_vm12, %v13180_v22, %v13179_v3  ;;  %v13185_v8 = vsel %vm9169_vm14, 4294967295, %v13184_v8  ;;  %v1203_v5 = vsel %vm9169_vm14, %v13187_v18, %v883_v32  ;;  %v949_v3 = vsel %vm9169_vm14, %v13178_v42, %v885_v36  ;;  %2005 = vmatprep.mubr.bf16.mxu1 %v8680_v60 }
  0xcb   : > { %13186 = vst [vmem:[#allocation18_spill] sm:$0xff] %v13185_v8  ;;  %v333_v24 = vand.u32 15, %v231_v41  ;;  %v233_v22 = vadd.s32 104, %v8413_v20  ;;  %v9183_v9 = vpack.c.bf16 %v1203_v5, %v13188_v44  ;;  %v9186_v47 = vpack.c.bf16 %v949_v3, %v13183_v55  ;;  %v13197_v55 = vld [vmem:[#allocation38_spill] sm:$0xff] }
  0xcc   : > { %vm9188_vm12 = vcmp.eq.s32.totalorder %v319_v13, 15  ;;  %v877_v36 = vsel %vm13193_vm11, %v13192_v21, %v8773_v40  ;;  %v13194_v5 = vmov 0  ;;  %vm13201_vm9 = vcmp.lt.s32.totalorder %v8413_v20, 7 }
  0xcd   : > { %v13190_v29 = vsel %vm9188_vm12, 4294967295, %v13189_v29  ;;  %v1205_v42 = vsel %vm9188_vm12, %v8732_v6, %v881_v58  ;;  %v951_v60 = vsel %vm9188_vm12, %v13187_v18, %v883_v32  ;;  %vm9202_vm10 = vcmp.eq.s32.totalorder %v333_v24, 15  ;;  %vm13203_vm8 = vmmov %vm13201_vm9 }
  0xce   : > { %13191 = vst [vmem:[#allocation20_spill] sm:$0xff] %v13190_v29  ;;  %v13195_v5 = vsel %vm9202_vm10, 4294967295, %v13194_v5  ;;  %v347_v41 = vand.u32 15, %v233_v22  ;;  %v9207_v13 = vpack.c.bf16 %v1205_v42, %v13197_v55  ;;  %v9210_v3 = vpack.c.bf16 %v951_v60, %v13188_v44  ;;  %vm13210_vm6 = vmmov %vm13203_vm8 }
  0xcf   : > { %13196 = vst [vmem:[#allocation34_spill] sm:$0xff] %v13195_v5  ;;  %v1207_v40 = vsel %vm9202_vm10, %v8767_v2, %v879_v15  ;;  %v953_v21 = vsel %vm9202_vm10, %v8732_v6, %v881_v58  ;;  %v13198_v24 = vmov 0  ;;  %v235_v22 = vadd.s32 120, %v8413_v20  ;;  %1540 = vmatmul.mubr.bf16.gmra.mrb[32].mxu0 %v8943_v48 }
  0xd0   : > { %v9219_v32 = vpack.c.bf16 %v1207_v40, %v8751_v23  ;;  %v9222_v18 = vpack.c.bf16 %v953_v21, %v13197_v55  ;;  %vm9224_vm11 = vcmp.eq.s32.totalorder %v347_v41, 15  ;;  %v875_v58 = vsel %vm13201_vm9, %v8785_v28, %v8800_v14  ;;  %v13202_v40 = vld [vmem:[#allocation46_spill] sm:$0xff]  ;;  %v13205_v28 = vld [vmem:[#allocation47_spill] sm:$0xff]  ;;  %vm13206_vm9 = vmmov %vm13203_vm8 }
  0xd1   : > { %v13199_v24 = vsel %vm9224_vm11, 4294967295, %v13198_v24  ;;  %v1209_v44 = vsel %vm9224_vm11, %v8783_v51, %v877_v36  ;;  %v955_v6 = vsel %vm9224_vm11, %v8767_v2, %v879_v15  ;;  %v237_v42 = vadd.s32 136, %v8413_v20  ;;  %v13204_v15 = vld [vmem:[#allocation41_spill] sm:$0xff]  ;;  %2006 = vmatmul.mubr.bf16.gmra.mrb[32].mxu1 %v8892_v26 }
  0xd2   : > { %13200 = vst [vmem:[#allocation31_spill] sm:$0xff] %v13199_v24  ;;  %v9242_v60 = vpack.c.bf16 %v1209_v44, %v8760_v1  ;;  %v9245_v41 = vpack.c.bf16 %v955_v6, %v8751_v23  ;;  %v361_v55 = vand.u32 15, %v235_v22  ;;  %v873_v2 = vsel %vm13203_vm8, %v13202_v40, %v8810_v43  ;;  %1547 = vmatprep.mubr.bf16.mxu0 %v13204_v15  ;;  %v13211_v6 = vld [vmem:[#allocation49_spill] sm:$0xff]  ;;  %v9757_v24 = vld [vmem:[%s8403_s5 + $0x68] sm:$0xff]  }
  0xd3   : > { %v375_v21 = vand.u32 15, %v237_v42  ;;  %v239_v14 = vadd.s32 152, %v8413_v20  ;;  %v871_v48 = vsel %vm13206_vm9, %v13205_v28, %v8877_v50  ;;  %v241_v44 = vadd.s32 168, %v8413_v20  ;;  %2013 = vmatprep.mubr.bf16.mxu1 %v13182_v0  ;;  %v13220_v28 = vld [vmem:[#allocation26_spill] sm:$0xff]  ;;  %13305 = vst [vmem:[#allocation49_spill] sm:$0xff] %v9757_v24 }
  0xd4   : > { %vm9259_vm7 = vcmp.eq.s32.totalorder %v361_v55, 15  ;;  %v13207_v23 = vmov 0  ;;  %v869_v43 = vsel %vm13203_vm8, %v8879_v7, %v8968_v33  ;;  %v243_v22 = vadd.s32 184, %v8413_v20  ;;  %v13215_v33 = vld [vmem:[#allocation48_spill] sm:$0xff] }
  0xd5   : > { %v13208_v23 = vsel %vm9259_vm7, 4294967295, %v13207_v23  ;;  %v867_v50 = vsel %vm13210_vm6, %v8970_v37, %v8978_v54  ;;  %v1211_v26 = vsel %vm9259_vm7, %v13211_v6, %v875_v58  ;;  %v957_v42 = vsel %vm9259_vm7, %v8783_v51, %v877_v36  ;;  %v13216_v51 = vld [vmem:[#allocation52_spill] sm:$0xff] }
  0xd6   : > { %13209 = vst [vmem:[#allocation27_spill] sm:$0xff] %v13208_v23  ;;  %vm9279_vm9 = vcmp.eq.s32.totalorder %v375_v21, 15  ;;  %v13212_v55 = vmov 0  ;;  %v389_v7 = vand.u32 15, %v239_v14  ;;  %v9284_v40 = vpack.c.bf16 %v1211_v26, %v13215_v33 }
  0xd7   : > { %v13213_v55 = vsel %vm9279_vm9, 4294967295, %v13212_v55  ;;  %v9287_v37 = vpack.c.bf16 %v957_v42, %v8760_v1  ;;  %v1213_v54 = vsel %vm9279_vm9, %v8889_v12, %v873_v2  ;;  %v959_v0 = vsel %vm9279_vm9, %v13211_v6, %v875_v58  ;;  %1548 = vmatmul.mubr.bf16.gmra.mrb[36].mxu0 %v8946_v39 }
  0xd8   : > { %13214 = vst [vmem:[#allocation39_spill] sm:$0xff] %v13213_v55  ;;  %v9296_v36 = vpack.c.bf16 %v1213_v54, %v13216_v51  ;;  %v9299_v21 = vpack.c.bf16 %v959_v0, %v13215_v33  ;;  %vm9301_vm6 = vcmp.eq.s32.totalorder %v389_v7, 15  ;;  %v13217_v14 = vmov 0  ;;  %v13225_v54 = vld [vmem:[#allocation53_spill] sm:$0xff]  ;;  %v13254_v55 = vld [vmem:[#allocation66_spill] sm:$0xff] }
  0xd9   : > { %v13218_v14 = vsel %vm9301_vm6, 4294967295, %v13217_v14  ;;  %v403_v1 = vand.u32 15, %v241_v44  ;;  %v13221_v26 = vand.u32 15, %v13220_v28  ;;  %v13222_v42 = vmov 0 }
  0xda   : > { %13219 = vst [vmem:[#allocation35_spill] sm:$0xff] %v13218_v14  ;;  %v1215_v58 = vsel %vm9301_vm6, %v8903_v17, %v871_v48  ;;  %v961_v6 = vsel %vm9301_vm6, %v8889_v12, %v873_v2  ;;  %v417_v33 = vand.u32 15, %v243_v22  ;;  %v245_v7 = vadd.s32 200, %v8413_v20 }
  0xdb   : > { %vm9307_vm8 = vcmp.eq.s32.totalorder %v13221_v26, 0  ;;  %v9319_v0 = vpack.c.bf16 %v1215_v58, %v13225_v54  ;;  %v9322_v44 = vpack.c.bf16 %v961_v6, %v13216_v51  ;;  %vm9324_vm9 = vcmp.eq.s32.totalorder %v403_v1, 15  ;;  %v13233_v1 = vld [vmem:[#allocation43_spill] sm:$0xff] }
  0xdc   : > { %v13223_v42 = vsel %vm9307_vm8, 4294967295, %v13222_v42  ;;  %v13226_v28 = vmov 0  ;;  %vm13229_vm7 = vcmp.lt.s32.totalorder %v8413_v20, 7  ;;  %v1217_v12 = vsel %vm9324_vm9, %v8957_v59, %v869_v43  ;;  %1555 = vmatprep.mubr.bf16.mxu0 %v13233_v1 }
  0xdd   : > { %13224 = vst [vmem:[#allocation37_spill] sm:$0xff] %v13223_v42  ;;  %v13227_v28 = vsel %vm9324_vm9, 4294967295, %v13226_v28  ;;  %v865_v26 = vsel %vm13229_vm7, %v8981_v53, %v9024_v34  ;;  %v963_v2 = vsel %vm9324_vm9, %v8903_v17, %v871_v48  ;;  %vm9339_vm6 = vcmp.eq.s32.totalorder %v417_v33, 15  ;;  %v13234_v48 = vld [vmem:[#allocation61_spill] sm:$0xff] }
  0xde   : > { %13228 = vst [vmem:[#allocation24_spill] sm:$0xff] %v13227_v28  ;;  %v13230_v22 = vmov 0  ;;  %v431_v51 = vand.u32 15, %v245_v7  ;;  %v9345_v58 = vpack.c.bf16 %v1217_v12, %v8935_v25  ;;  %v9348_v39 = vpack.c.bf16 %v963_v2, %v13225_v54  ;;  %2014 = vmatmul.mubr.bf16.gmra.mrb[36].mxu1 %v13234_v48  ;;  %v13243_v28 = vld [vmem:[#allocation68_spill] sm:$0xff] }
  0xdf   : > { %v13231_v22 = vsel %vm9339_vm6, 4294967295, %v13230_v22  ;;  %v1219_v53 = vsel %vm9339_vm6, %v9002_v30, %v867_v50  ;;  %v965_v17 = vsel %vm9339_vm6, %v8957_v59, %v869_v43  ;;  %v13235_v7 = vmov 0  ;;  %2021 = vmatprep.mubr.bf16.mxu1 %v13204_v15  ;;  %1556 = vmatmul.mubr.bf16.gmra.mrb[40].mxu0 %v13254_v55 }
  0xe0   : > { %13232 = vst [vmem:[#allocation33_spill] sm:$0xff] %v13231_v22  ;;  %v9358_v6 = vpack.c.bf16 %v1219_v53, %v9008_v27  ;;  %v9361_v33 = vpack.c.bf16 %v965_v17, %v8935_v25  ;;  %vm9363_vm7 = vcmp.eq.s32.totalorder %v431_v51, 15  ;;  %v247_v54 = vadd.s32 216, %v8413_v20  ;;  %v13239_v53 = vld [vmem:[#allocation55_spill] sm:$0xff] }
  0xe1   : > { %v13236_v7 = vsel %vm9363_vm7, 4294967295, %v13235_v7  ;;  %v1221_v43 = vsel %vm9363_vm7, %v9022_v19, %v865_v26  ;;  %v967_v12 = vsel %vm9363_vm7, %v9002_v30, %v867_v50  ;;  %vm13238_vm6 = vcmp.lt.s32.totalorder %v8413_v20, 7  ;;  %v13241_v50 = vld [vmem:[#allocation67_spill] sm:$0xff] }
  0xe2   : > { %13237 = vst [vmem:[#allocation29_spill] sm:$0xff] %v13236_v7  ;;  %v863_v2 = vsel %vm13238_vm6, %v9038_v45, %v8985_v46  ;;  %v249_v51 = vadd.s32 232, %v8413_v20  ;;  %vm13240_vm9 = vcmp.lt.s32.totalorder %v8413_v20, 1  ;;  %v9385_v17 = vpack.c.bf16 %v1221_v43, %v9036_v49 }
  0xe3   : > { %v804_v15 = vsel %vm13240_vm9, %v13239_v53, %v8937_v31  ;;  %v9388_v48 = vpack.c.bf16 %v967_v12, %v9008_v27  ;;  %v445_v7 = vand.u32 15, %v247_v54  ;;  %vm13242_vm7 = vmmov %vm13240_vm9  ;;  %v1146_v14 = vsel %vm13238_vm6, %v13243_v28, %v9043_v61 }
  0xe4   : > { %v9394_v22 = vsel %vm13242_vm7, %v13241_v50, %v8983_v56  ;;  %v459_v46 = vand.u32 15, %v249_v51  ;;  %v251_v31 = vadd.s32 248, %v8413_v20  ;;  %vm13244_vm9 = vmmov %vm13238_vm6  ;;  %v13245_v54 = vmov 0  ;;  %v13248_v56 = vld [vmem:[#allocation70_spill] sm:$0xff]  ;;  %v13250_v51 = vld [vmem:[#allocation16_spill] sm:$0xff] }
  0xe5   : > { %v864_v43 = vsel %vm13244_vm9, %v9024_v34, %v9038_v45  ;;  %vm9405_vm5 = vcmp.eq.s32.totalorder %v445_v7, 15  ;;  %vm13249_vm7 = vmmov %vm13238_vm6  ;;  %v893_v61 = vsel %vm13238_vm6, %v13243_v28, %v13250_v51  ;;  %v13251_v34 = vmov 0 }
  0xe6   : > { %v13246_v54 = vsel %vm9405_vm5, 4294967295, %v13245_v54  ;;  %v1147_v12 = vsel %vm13249_vm7, %v13248_v56, %v8465_v62  ;;  %v1223_v53 = vsel %vm9405_vm5, %v9394_v22, %v863_v2  ;;  %v969_v45 = vsel %vm9405_vm5, %v9022_v19, %v865_v26 }
  0xe7   : > { %13247 = vst [vmem:[#allocation40_spill] sm:$0xff] %v13246_v54  ;;  %vm9423_vm9 = vcmp.eq.s32.totalorder %v459_v46, 15  ;;  %v473_v7 = vand.u32 15, %v251_v31  ;;  %v9428_v62 = vpack.c.bf16 %v1223_v53, %v864_v43  ;;  %v9431_v56 = vpack.c.bf16 %v969_v45, %v9036_v49  ;;  %v13255_v46 = vld [vmem:[#allocation50_spill] sm:$0xff]  ;;  %v13260_v45 = vld [vmem:[#allocation28_spill] sm:$0xff] }
  0xe8   : > { %v13252_v34 = vsel %vm9423_vm9, 4294967295, %v13251_v34  ;;  %v1225_v28 = vsel %vm9423_vm9, %v9013_v57, %v1146_v14  ;;  %v971_v26 = vsel %vm9423_vm9, %v9394_v22, %v863_v2  ;;  %1563 = vmatprep.mubr.bf16.mxu0 %v13255_v46  ;;  %v1170_v31 = vsel %vm9307_vm8, %v9008_v27, %v804_v15  ;;  %v13259_v14 = vld [vmem:[#allocation63_spill] sm:$0xff] }
  0xe9   : > { %13253 = vst [vmem:[#allocation38_spill] sm:$0xff] %v13252_v34  ;;  %v9444_v55 = vpack.c.bf16 %v1225_v28, %v9030_v35  ;;  %v9446_v51 = vpack.c.bf16 %v971_v26, %v864_v43  ;;  %vm9448_vm7 = vcmp.eq.s32.totalorder %v473_v7, 15  ;;  %v13256_v53 = vmov 0  ;;  %2022 = vmatmul.mubr.bf16.gmra.mrb[40].mxu1 %v13259_v14  ;;  %v13261_v28 = vld [vmem:[#allocation57_spill] sm:$0xff] }
  0xea   : > { %v13257_v53 = vsel %vm9448_vm7, 4294967295, %v13256_v53  ;;  %v424_v34 = vand.u32 15, %v13260_v45  ;;  %v1227_v2 = vsel %vm9448_vm7, %v9052_v11, %v1147_v12  ;;  %v973_v54 = vsel %vm9448_vm7, %v9013_v57, %v893_v61  ;;  %2029 = vmatprep.mubr.bf16.mxu1 %v13233_v1  ;;  %v13265_v57 = vld [vmem:[#allocation64_spill] sm:$0xff] }
  0xeb   : > { %13258 = vst [vmem:[#allocation46_spill] sm:$0xff] %v13257_v53  ;;  %v916_v7 = vsel %vm9307_vm8, %v8935_v25, %v13261_v28  ;;  %v9466_v26 = vpack.c.bf16 %v1227_v2, %v9087_v63  ;;  %v9469_v14 = vpack.c.bf16 %v973_v54, %v9030_v35  ;;  %v1191_v45 = vpack.c.bf16 %v9002_v30, %v1170_v31  ;;  %v13266_v1 = vld [vmem:[#allocation60_spill] sm:$0xff]  ;;  %v13268_v63 = vld [vmem:[#allocation51_spill] sm:$0xff]  ;;  %v13272_v28 = vld [vmem:[#allocation65_spill] sm:$0xff] }
  0xec   : > { %v937_v11 = vpack.c.bf16 %v8957_v59, %v916_v7  ;;  %vm9473_vm6 = vcmp.eq.s32.totalorder %v424_v34, 0  ;;  %v13262_v12 = vmov 0  ;;  %vm13267_vm7 = vcmp.lt.s32.totalorder %v8413_v20, 1 }
  0xed   : > { %v13263_v12 = vsel %vm9473_vm6, 4294967295, %v13262_v12  ;;  %v802_v61 = vsel %vm13267_vm7, %v13266_v1, %v13265_v57  ;;  %v246_v25 = vadd.s32 208, %v8413_v20  ;;  %1564 = vmatmul.mubr.bf16.gmra.mrb[44].mxu0 %v1191_v45  ;;  %v918_v54 = vsel %vm9473_vm6, %v9008_v27, %v804_v15  ;;  %v8030_v45 = vld [vmem:[%s8403_s5 + $0x7c] sm:$0xf] }
  0xee   : > { %13264 = vst [vmem:[#allocation41_spill] sm:$0xff] %v13263_v12  ;;  %1571 = vmatprep.mubr.bf16.mxu0 %v13268_v63  ;;  %v1172_v35 = vsel %vm9473_vm6, %v9036_v49, %v802_v61  ;;  %v938_v31 = vpack.c.bf16 %v9002_v30, %v918_v54  ;;  %v13269_v2 = vmov 0  ;;  %vm13273_vm8 = vcmp.lt.s32.totalorder %v8413_v20, 1  ;;  %v7884_v54 = vld [vmem:[#allocation6 + $0x180] sm:$0xff]  }
  0xef   : > { %v438_v59 = vand.u32 15, %v246_v25  ;;  %v1192_v34 = vpack.c.bf16 %v9022_v19, %v1172_v35  ;;  %v800_v7 = vsel %vm13273_vm8, %v13272_v28, %v13241_v50  ;;  %v13277_v35 = vld [vmem:[#allocation62_spill] sm:$0xff]  ;;  %v13281_v28 = vld [vmem:[#allocation23_spill] sm:$0xff] }
  0xf0   : > { %v922_v25 = vsel %vm8913_vm13, %v864_v43, %v800_v7  ;;  %vm13283_vm13 = vcmp.lt.s32.totalorder %v8413_v20, 7 }
  0xf1   : > { %2030 = vmatmul.mubr.bf16.gmra.mrb[44].mxu1 %v937_v11  ;;  %vm9492_vm7 = vcmp.eq.s32.totalorder %v438_v59, 0  ;;  %v13275_v11 = vld [vmem:[#allocation59_spill] sm:$0xff] }
  0xf2   : > { %2037 = vmatprep.mubr.bf16.mxu1 %v13255_v46  ;;  %v13270_v2 = vsel %vm9492_vm7, 4294967295, %v13269_v2  ;;  %v13274_v46 = vld [vmem:[#allocation58_spill] sm:$0xff]  ;;  %v1174_v27 = vsel %vm9492_vm7, %v864_v43, %v800_v7  ;;  %v920_v30 = vsel %vm9492_vm7, %v9036_v49, %v802_v61  ;;  %v6072_v57 = vcombine.low %v13275_v11, %v8030_v45  ;;  %v13278_v61 = vld [vmem:[#allocation69_spill] sm:$0xff]  ;;  %v7887_v7 = vld [vmem:[#allocation6 + $0x1d0] sm:$0xff]  }
  0xf3   : > { %13271 = vst [vmem:[#allocation47_spill] sm:$0xff] %v13270_v2  ;;  %v1193_v15 = vpack.c.bf16 %v9394_v22, %v1174_v27  ;;  %v939_v50 = vpack.c.bf16 %v9022_v19, %v920_v30  ;;  %v940_v49 = vpack.c.bf16 %v9394_v22, %v922_v25  ;;  %v13279_v19 = vld [vmem:[#allocation72_spill] sm:$0xff]  ;;  %v7885_v43 = vld [vmem:[#allocation6 + $0x1c8] sm:$0xff]   ;;  %v7900_v30 = vld [vmem:[#allocation6 + $0x220] sm:$0xff]  }
  0xf4   : > { %v7886_v22 = vld [vmem:[#allocation6 + $0x188] sm:$0xff]   ;;  %v7890_v27 = vld [vmem:[#allocation6 + $0x198] sm:$0xff]   ;;  %v7901_v11 = vld [vmem:[#allocation6 + $0x1b0] sm:$0xff]  }
  0xf5   : > { %1572 = vmatmul.mubr.bf16.gmra.mrb[48].mxu0 %v1192_v34  ;;  %v13280_v34 = vld [vmem:[#allocation21_spill] sm:$0xff]  ;;  %v7895_v45 = vld [vmem:[#allocation6 + $0x1e8] sm:$0xff]   ;;  %vm13284_vm7 = vmmov %vm13283_vm13 }
  0xf6   : > { %1579 = vmatprep.mubr.bf16.mxu0 %v13274_v46  ;;  %v9560_v25 = vld [vmem:[%s8403_s5 + $0x28] sm:$0xff]  }
  0xf9   : > { %2038 = vmatmul.mubr.bf16.gmra.mrb[48].mxu1 %v938_v31  ;;  %v7894_v31 = vld [vmem:[#allocation6 + $0x208] sm:$0xff]  }
  0xfa   : > { %2045 = vmatprep.mubr.bf16.mxu1 %v13268_v63  ;;  %v8031_v63 = vld [vmem:[%s8403_s5 + $0x84] sm:$0xf] }
  0xfb   : > { %v6073_v59 = vcombine.low %v13277_v35, %v8031_v63 }
  0xfd   : > { %1580 = vmatmul.mubr.bf16.gmra.mrb[52].mxu0 %v1193_v15  ;;  %v7893_v15 = vld [vmem:[#allocation6 + $0x1a0] sm:$0xff]  }
  0xfe   : > { %1587 = vmatprep.mubr.bf16.mxu0 %v6072_v57 }
 0x101   : > { %2046 = vmatmul.mubr.bf16.gmra.mrb[52].mxu1 %v939_v50 }
 0x102   : > { %2053 = vmatprep.mubr.bf16.mxu1 %v13274_v46  ;;  %v7889_v46 = vld [vmem:[#allocation6 + $0x1d8] sm:$0xff]  }
 0x105   : > { %1588 = vmatmul.mubr.bf16.gmra.mrb[56].mxu0 %v13278_v61 }
 0x106   : > { %1595 = vmatprep.mubr.bf16.mxu0 %v6073_v59  ;;  %v2269_v59 = vunpack.c.l.bf16 %v9560_v25 }
 0x109   : > { %2054 = vmatmul.mubr.bf16.gmra.mrb[56].mxu1 %v940_v49 }
 0x10a   : > { %2061 = vmatprep.mubr.bf16.mxu1 %v6072_v57  ;;  %v7903_v57 = vld [vmem:[#allocation6 + $0x1f8] sm:$0xff]  }
 0x10d   : > { %1596 = vmatmul.mubr.bf16.gmra.mrb[60].mxu0 %v9101_v10  ;;  %v13282_v10 = vld [vmem:[#allocation54_spill] sm:$0xff] }
 0x10e   : > { %7152 = vmatprep.mubr.bf16.mxu0 %v9132_v52  ;;  %v7896_v52 = vld [vmem:[#allocation6 + $0x210] sm:$0xff]  }
 0x111   : > { %2062 = vmatmul.mubr.bf16.gmra.mrb[60].mxu1 %v13279_v19 }
 0x112   : > { %7200 = vmatprep.mubr.bf16.mxu1 %v9135_v16  ;;  %v7888_v16 = vld [vmem:[#allocation6 + $0x190] sm:$0xff]  }
 0x115   : > { %7153 = vmatmul.mubr.bf16.vlgmr.msra.gmra.mrb[64].mxu0 %v13280_v34 }
 0x116   : > { %6593 = vmatpush3.bf16.msra.mxu0 %v7884_v54  ;;  %7156 = vmatprep.mubr.bf16.mxu0 %v9164_v38  ;;  %v7898_v38 = vld [vmem:[#allocation6 + $0x218] sm:$0xff]  }
 0x117   : > { %6594 = vmatprep.subr.bf16.mxu0 %v7885_v43  ;;  %v9585_v43 = vld [vmem:[%s8403_s5 + $0x30] sm:$0xff]  }
 0x119   : > { %7201 = vmatmul.mubr.bf16.vlgmr.msra.gmra.mrb[64].mxu1 %v13281_v28 }
 0x11a   : > { %7204 = vmatprep.mubr.bf16.mxu1 %v9167_v4  ;;  %7233 = vmatpush3.bf16.msra.mxu1 %v13282_v10  ;;  %v7891_v4 = vld [vmem:[#allocation6 + $0x1e0] sm:$0xff]  }
 0x11b   : > { %7234 = vmatprep.subr.bf16.mxu1 %v7894_v31  ;;  %6595 = vmatpush3.bf16.msra.mxu0 %v7886_v22 }
 0x11c   : > { %6596 = vmatprep.subr.bf16.mxu0 %v7887_v7 }
 0x11d   : > { %7157 = vmatmul.mubr.bf16.gmra.mrb[68].mxu0 %v9183_v9  ;;  %v7902_v9 = vld [vmem:[#allocation6 + $0x228] sm:$0xff]  }
 0x11e   : > { %7235 = vmatpush3.bf16.msra.mxu1 %v7894_v31  ;;  %7160 = vmatprep.mubr.bf16.mxu0 %v9207_v13  ;;  %v7899_v13 = vld [vmem:[#allocation6 + $0x1f0] sm:$0xff]  }
 0x11f   : > { %7236 = vmatprep.subr.bf16.mxu1 %v7896_v52  ;;  %6597 = vmatpush3.bf16.msra.mxu0 %v7888_v16  ;;  %v2270_v16 = vunpack.c.h.bf16 %v9560_v25 }
 0x120   : > { %6598 = vmatprep.subr.bf16.mxu0 %v7889_v46  ;;  %v2271_v46 = vunpack.c.l.bf16 %v9585_v43 }
 0x121   : > { %7205 = vmatmul.mubr.bf16.gmra.mrb[68].mxu1 %v9186_v47  ;;  %v7897_v47 = vld [vmem:[#allocation6 + $0x1a8] sm:$0xff]  }
 0x122   : > { %7208 = vmatprep.mubr.bf16.mxu1 %v9210_v3  ;;  %7237 = vmatpush3.bf16.msra.mxu1 %v7896_v52  ;;  %v7904_v3 = vld [vmem:[#allocation6 + $0x230] sm:$0xff]   ;;  %v2365_v52 = vrot.slane %v2269_v59, 1 }
 0x123   : > { %7238 = vmatprep.subr.bf16.mxu1 %v7898_v38  ;;  %6599 = vmatpush3.bf16.msra.mxu0 %v7890_v27 }
 0x124   : > { %6600 = vmatprep.subr.bf16.mxu0 %v7891_v4 }
 0x125   : > { %7161 = vmatmul.mubr.bf16.gmra.mrb[72].mxu0 %v9219_v32  ;;  %v7906_v32 = vld [vmem:[#allocation6 + $0x238] sm:$0xff]  }
 0x126   : > { %7239 = vmatpush3.bf16.msra.mxu1 %v7898_v38  ;;  %7164 = vmatprep.mubr.bf16.mxu0 %v9242_v60  ;;  %v2231_v60 = vld [vmem:[%s8403_s5 + $0x10] sm:$0xff]  }
 0x127   : > { %7240 = vmatprep.subr.bf16.mxu1 %v7900_v30  ;;  %6601 = vmatpush3.bf16.msra.mxu0 %v7893_v15 }
 0x128   : > { %6602 = vmatprep.subr.bf16.mxu0 %v7895_v45 }
 0x129   : > { %7209 = vmatmul.mubr.bf16.gmra.mrb[72].mxu1 %v9222_v18  ;;  %v7905_v18 = vld [vmem:[#allocation6 + $0x1b8] sm:$0xff]  }
 0x12a   : > { %7212 = vmatprep.mubr.bf16.mxu1 %v9245_v41  ;;  %7241 = vmatpush3.bf16.msra.mxu1 %v7900_v30  ;;  %v9545_v41 = vld [vmem:[%s8403_s5 + $0x18] sm:$0xff]  }
 0x12b   : > { %7242 = vmatprep.subr.bf16.mxu1 %v7902_v9  ;;  %6603 = vmatpush3.bf16.msra.mxu0 %v7897_v47  ;;  %v2266_v63 = vunpack.c.h.bf16 %v9545_v41  ;;  %v2272_v47 = vunpack.c.h.bf16 %v9585_v43 }
 0x12c   : > { %6604 = vmatprep.subr.bf16.mxu0 %v7899_v13 }
 0x12d   : > { %7165 = vmatmul.mubr.bf16.gmra.mrb[76].mxu0 %v9284_v40  ;;  %v9549_v40 = vld [vmem:[%s8403_s5 + $0x88] sm:$0xff]   ;;  %v9582_v54 = vrot.slane %v2266_v63, 7  ;;  %v2362_v34 = vrot.slane %v2266_v63, 1 }
 0x12e   : > { %7243 = vmatpush3.bf16.msra.mxu1 %v7902_v9  ;;  %7168 = vmatprep.mubr.bf16.mxu0 %v9296_v36  ;;  %v2264_v36 = vunpack.c.h.bf16 %v2231_v60  ;;  %v9642_v63 = vld [vmem:[%s8403_s5 + $0x48] sm:$0xff]  }
 0x12f   : > { %7244 = vmatprep.subr.bf16.mxu1 %v7904_v3  ;;  %6605 = vmatpush3.bf16.msra.mxu0 %v7901_v11  ;;  %v9622_v11 = vrot.slane %v2270_v16, 7 }
 0x130   : > { %6606 = vmatprep.subr.bf16.mxu0 %v7903_v57  ;;  %v2360_v50 = vrot.slane %v2264_v36, 1  ;;  %v2367_v57 = vrot.slane %v2271_v46, 1 }
 0x131   : > { %7213 = vmatmul.mubr.bf16.gmra.mrb[76].mxu1 %v9287_v37  ;;  %v2263_v37 = vunpack.c.l.bf16 %v2231_v60 }
 0x132   : > { %7216 = vmatprep.mubr.bf16.mxu1 %v9299_v21  ;;  %7245 = vmatpush3.bf16.msra.mxu1 %v7904_v3  ;;  %v2265_v21 = vunpack.c.l.bf16 %v9545_v41  ;;  %v9620_v3 = vrot.slane %v2269_v59, 7 }
 0x133   : > { %7246 = vmatprep.subr.bf16.mxu1 %v7906_v32  ;;  %6607 = vmatpush3.bf16.msra.mxu0 %v7905_v18 }
 0x134   : > { %v2297_v19 = vrot.slane %v2265_v21, 7 }
 0x135   : > { %7169 = vmatmul.mubr.bf16.gmra.mrb[80].mxu0 %v9319_v0  ;;  %v12894_v0 = vunpack.c.h.bf16 %v9549_v40 }
 0x136   : > { %7247 = vmatpush3.bf16.msra.mxu1 %v7906_v32  ;;  %7172 = vmatprep.mubr.bf16.mxu0 %v9345_v58  ;;  %v2295_v58 = vrot.slane %v2263_v37, 7 }
 0x139   : > { %7217 = vmatmul.mubr.bf16.gmra.mrb[80].mxu1 %v9322_v44  ;;  %v9557_v44 = vld [vmem:[%s8403_s5 + $0x20] sm:$0xff]  }
 0x13a   : > { %7220 = vmatprep.mubr.bf16.mxu1 %v9348_v39  ;;  %v2296_v39 = vrot.slane %v2264_v36, 7  ;;  %v2268_v35 = vunpack.c.h.bf16 %v9557_v44  ;;  %v9630_v36 = vld [vmem:[%s8403_s5 + $0x40] sm:$0xff]  }
 0x13c   : > { %v2357_v49 = vsel %vm13273_vm8, %v2295_v58, %v2296_v39  ;;  %v9595_v7 = vrot.slane %v2268_v35, 7  ;;  %v2364_v10 = vrot.slane %v2268_v35, 1  ;;  %v2368_v35 = vrot.slane %v2272_v47, 1 }
 0x13d   : > { %7173 = vmatmul.mubr.bf16.gmra.mrb[84].mxu0 %v9358_v6  ;;  %v2361_v6 = vrot.slane %v2265_v21, 1 }
 0x13e   : > { %7176 = vmatprep.mubr.bf16.mxu0 %v9385_v17  ;;  %v9562_v17 = vrot.slane %v2263_v37, 1 }
 0x13f   : > { %v2420_v61 = vsel %vm13283_vm13, %v2360_v50, %v2361_v6  ;;  %vm13287_vm13 = vmmov %vm13273_vm8 }
 0x140   : > { %v2472_v28 = vsel %vm9103_vm15, %v2357_v49, %v2420_v61  ;;  %v2355_v30 = vsel %vm13287_vm13, %v2297_v19, %v9582_v54  ;;  %vm13288_vm15 = vmmov %vm13284_vm7 }
 0x141   : > { %7221 = vmatmul.mubr.bf16.gmra.mrb[84].mxu1 %v9361_v33  ;;  %v9567_v33 = vrot.slane %v12894_v0, 7  ;;  %v2416_v9 = vsel %vm13288_vm15, %v2364_v10, %v2365_v52  ;;  %vm13289_vm13 = vmmov %vm13284_vm7 }
 0x142   : > { %7224 = vmatprep.mubr.bf16.mxu1 %v9388_v48  ;;  %v2267_v48 = vunpack.c.l.bf16 %v9557_v44  ;;  %v2419_v32 = vsel %vm13289_vm13, %v2361_v6, %v2362_v34  ;;  %vm13291_vm15 = vmmov %vm13284_vm7  ;;  %v9644_v6 = vrot.slane %v2271_v46, 7 }
 0x144   : > { %v2363_v31 = vrot.slane %v2267_v48, 1  ;;  %v9591_v22 = vrot.slane %v2267_v48, 7  ;;  %v9646_v48 = vrot.slane %v2272_v47, 7 }
 0x145   : > { %7177 = vmatmul.mubr.bf16.gmra.mrb[88].mxu0 %v9428_v62  ;;  %v2421_v62 = vsel %vm13284_vm7, %v9562_v17, %v2360_v50 }
 0x146   : > { %7180 = vmatprep.mubr.bf16.mxu0 %v9444_v55  ;;  %v2358_v55 = vsel %vm13273_vm8, %v9567_v33, %v2295_v58  ;;  %v2503_v4 = vpack.c.bf16 %v2472_v28, %v2421_v62  ;;  %v2418_v15 = vsel %vm13284_vm7, %v2362_v34, %v2363_v31  ;;  %v9614_v45 = vsel %vm13273_vm8, %v9591_v22, %v9595_v7  ;;  %vm13293_vm7 = vmmov %vm13273_vm8 }
 0x147   : > { %v2423_v27 = vsel %vm8431_vm2, %v2421_v62, %v2358_v55  ;;  %v2474_v37 = vsel %vm9107_vm1, %v2355_v30, %v2418_v15  ;;  %v2476_v50 = vsel %vm9140_vm0, %v9614_v45, %v2416_v9  ;;  %vm13294_vm8 = vmmov %vm13293_vm7  ;;  %v2276_v55 = vunpack.c.h.bf16 %v9630_v36 }
 0x148   : > { %v2455_v21 = vpack.c.bf16 %v2357_v49, %v2423_v27  ;;  %v9652_v49 = vsel %vm13294_vm8, %v9620_v3, %v9622_v11  ;;  %v2277_v34 = vunpack.c.l.bf16 %v9642_v63  ;;  %v9674_v27 = vsel %vm13293_vm7, %v9644_v6, %v9646_v48  ;;  %vm13297_vm8 = vmmov %vm13289_vm13 }
 0x149   : > { %7225 = vmatmul.mubr.bf16.gmra.mrb[88].mxu1 %v9431_v56  ;;  %v13319_v56 = vld [vmem:[#allocation25_spill] sm:$0xff] }
 0x14a   : > { %7228 = vmatprep.mubr.bf16.mxu1 %v9446_v51  ;;  %v9600_v51 = vld [vmem:[%s8403_s5 + $0x38] sm:$0xff]  }
 0x14b   : > { %v2273_v13 = vunpack.c.l.bf16 %v9600_v51  ;;  %v2274_v62 = vunpack.c.h.bf16 %v9600_v51 }
 0x14d   : > { %7181 = vmatmul.mubr.bf16.gmra.mrb[92].mxu0 %v9466_v26  ;;  %v2366_v26 = vrot.slane %v2270_v16, 1  ;;  %v2369_v59 = vrot.slane %v2273_v13, 1  ;;  %v9679_v15 = vrot.slane %v2273_v13, 7  ;;  %v2370_v9 = vrot.slane %v2274_v62, 1 }
 0x14e   : > { %2840 = vmatprep.mubr.bf16.mxu0 %v2231_v60  ;;  %v9634_v60 = vsel %vm13291_vm15, %v2363_v31, %v2364_v10  ;;  %vm13296_vm15 = vmmov %vm13289_vm13 }
 0x14f   : > { %v2414_v61 = vsel %vm13289_vm13, %v2366_v26, %v2367_v57  ;;  %v2505_v31 = vpack.c.bf16 %v2476_v50, %v9634_v60  ;;  %v9665_v16 = vsel %vm13296_vm15, %v2365_v52, %v2366_v26  ;;  %v9681_v52 = vrot.slane %v2274_v62, 7  ;;  %v9688_v50 = vld [vmem:[%s8403_s5 + $0x50] sm:$0xff]   ;;  %vm13298_vm13 = vmmov %vm13297_vm8 }
 0x150   : > { %v2478_v46 = vsel %vm9169_vm14, %v9652_v49, %v2414_v61  ;;  %v9698_v61 = vld [vmem:[%s8403_s5 + $0x58] sm:$0xff]   ;;  %vm13299_vm15 = vmmov %vm13293_vm7 }
 0x151   : > { %7229 = vmatmul.mubr.bf16.gmra.mrb[92].mxu1 %v9469_v14  ;;  %v2356_v14 = vsel %vm13293_vm7, %v2296_v39, %v2297_v19  ;;  %v2275_v39 = vunpack.c.l.bf16 %v9630_v36  ;;  %v2504_v19 = vpack.c.bf16 %v2474_v37, %v2419_v32  ;;  %v2372_v37 = vrot.slane %v2276_v55, 1 }
 0x152   : > { %7248 = vmatprep.mubr.bf16.mxu1 %v2503_v4  ;;  %v2425_v10 = vsel %vm8453_vm3, %v2419_v32, %v2356_v14  ;;  %v2412_v4 = vsel %vm13297_vm8, %v2368_v35, %v2369_v59  ;;  %v9685_v32 = vrot.slane %v2276_v55, 7  ;;  %v2506_v62 = vpack.c.bf16 %v2478_v46, %v9665_v16 }
 0x153   : > { %v2371_v47 = vrot.slane %v2275_v39, 1  ;;  %v9683_v26 = vrot.slane %v2275_v39, 7  ;;  %v2456_v14 = vpack.c.bf16 %v2355_v30, %v2425_v10  ;;  %v2480_v13 = vsel %vm9188_vm12, %v9674_v27, %v2412_v4  ;;  %vm13301_vm12 = vmmov %vm13297_vm8 }
 0x154   : > { %v2354_v39 = vsel %vm13299_vm15, %v9582_v54, %v9591_v22  ;;  %v9709_v30 = vsel %vm13293_vm7, %v9679_v15, %v9681_v52  ;;  %v2278_v54 = vunpack.c.h.bf16 %v9642_v63  ;;  %v2279_v22 = vunpack.c.l.bf16 %v9688_v50  ;;  %vm13304_vm15 = vmmov %vm13297_vm8 }
 0x155   : > { %2841 = vmatmul.mubr.bf16.vlgmr.msra.gmra.mrb[96].mxu0 %v2455_v21  ;;  %v2373_v21 = vrot.slane %v2277_v34, 1  ;;  %v2281_v10 = vunpack.c.l.bf16 %v9698_v61  ;;  %v2427_v4 = vsel %vm8519_vm4, %v9634_v60, %v2354_v39  ;;  %v9739_v29 = vsel %vm13304_vm15, %v2371_v47, %v2372_v37 }
 0x156   : > { %2848 = vmatprep.mubr.bf16.mxu0 %v9545_v41  ;;  %v9692_v41 = vsel %vm13298_vm13, %v2367_v57, %v2368_v35  ;;  %v2410_v57 = vsel %vm13297_vm8, %v2370_v9, %v2371_v47  ;;  %vm13300_vm13 = vmmov %vm13293_vm7  ;;  %v9748_v39 = vrot.slane %v2279_v22, 7  ;;  %v9753_v47 = vld [vmem:[%s8403_s5 + $0x60] sm:$0xff]  }
 0x157   : > { %v9717_v35 = vsel %vm13300_vm13, %v9683_v26, %v9685_v32  ;;  %v2507_v55 = vpack.c.bf16 %v2480_v13, %v9692_v41  ;;  %v2482_v13 = vsel %vm9202_vm10, %v9709_v30, %v2410_v57  ;;  %v2377_v46 = vrot.slane %v2281_v10, 1 }
 0x159   : > { %7249 = vmatmul.mubr.bf16.vlgmr.msra.gmra.mrb[64].mxu1 %v2504_v19  ;;  %v2408_v19 = vsel %vm13301_vm12, %v2372_v37, %v2373_v21  ;;  %vm13303_vm12 = vmmov %vm13297_vm8  ;;  %v2457_v37 = vpack.c.bf16 %v9614_v45, %v2427_v4  ;;  %v2285_v4 = vunpack.c.l.bf16 %v9757_v24 }
 0x15a   : > { %7252 = vmatprep.mubr.bf16.mxu1 %v2505_v31  ;;  %v2280_v31 = vunpack.c.h.bf16 %v9688_v50  ;;  %v9732_v0 = vsel %vm13303_vm12, %v2369_v59, %v2370_v9  ;;  %v2484_v60 = vsel %vm9224_vm11, %v9717_v35, %v2408_v19  ;;  %v2374_v59 = vrot.slane %v2278_v54, 1  ;;  %vm13306_vm8 = vmmov %vm13293_vm7 }
 0x15b   : > { %v2375_v9 = vrot.slane %v2279_v22, 1  ;;  %v2352_v19 = vsel %vm13293_vm7, %v9595_v7, %v9620_v3  ;;  %vm13307_vm13 = vmmov %vm13303_vm12  ;;  %v2282_v22 = vunpack.c.h.bf16 %v9698_v61  ;;  %v2284_v3 = vunpack.c.h.bf16 %v9753_v47 }
 0x15c   : > { %v9750_v5 = vrot.slane %v2280_v31, 7  ;;  %v2376_v57 = vrot.slane %v2280_v31, 1  ;;  %vm13308_vm12 = vmmov %vm13293_vm7 }
 0x15d   : > { %2849 = vmatmul.mubr.bf16.gmra.mrb[100].mxu0 %v2456_v14  ;;  %v9744_v14 = vrot.slane %v2277_v34, 7  ;;  %v2508_v34 = vpack.c.bf16 %v2482_v13, %v9732_v0  ;;  %v2406_v45 = vsel %vm13307_vm13, %v2374_v59, %v2375_v9  ;;  %vm13309_vm15 = vmmov %vm13307_vm13  ;;  %v13310_v13 = vld [vmem:[#allocation22_spill] sm:$0xff] }
 0x15e   : > { %2856 = vmatprep.mubr.bf16.mxu0 %v9557_v44  ;;  %v9746_v44 = vrot.slane %v2278_v54, 7  ;;  %v9779_v31 = vsel %vm13308_vm12, %v9748_v39, %v9750_v5  ;;  %v2404_v7 = vsel %vm13309_vm15, %v2376_v57, %v2377_v46  ;;  %vm13311_vm7 = vnez %v13310_v13 }
 0x15f   : > { %vm13315_vm15 = vcmp.lt.s32.totalorder %v8413_v20, 1  ;;  %v2380_v13 = vrot.slane %v2284_v3, 1 }
 0x160   : > { %v9769_v54 = vsel %vm13306_vm8, %v9744_v14, %v9746_v44  ;;  %vm13312_vm8 = vmmov %vm13307_vm13  ;;  %vm13313_vm13 = vnez %v13208_v23 }
 0x161   : > { %7253 = vmatmul.mubr.bf16.gmra.mrb[68].mxu1 %v2506_v62  ;;  %v2509_v62 = vpack.c.bf16 %v2484_v60, %v9739_v29  ;;  %v2429_v60 = vsel %vm13311_vm7, %v9665_v16, %v2352_v19  ;;  %v9790_v8 = vsel %vm13312_vm8, %v2373_v21, %v2374_v59  ;;  %v2486_v58 = vsel %vm13313_vm13, %v9769_v54, %v2406_v45  ;;  %vm13314_vm12 = vmmov %vm13312_vm8  ;;  %v13316_v21 = vld [vmem:[#allocation39_spill] sm:$0xff] }
 0x162   : > { %7256 = vmatprep.mubr.bf16.mxu1 %v2507_v55  ;;  %v2283_v55 = vunpack.c.l.bf16 %v9753_v47  ;;  %v9798_v28 = vsel %vm13314_vm12, %v2375_v9, %v2376_v57  ;;  %v2350_v16 = vsel %vm13315_vm15, %v9622_v11, %v9644_v6  ;;  %vm13317_vm8 = vnez %v13316_v21  ;;  %v6336_v23 = vpop.f32.mrb[0].mxu0  ;;  %v9818_v6 = vld [vmem:[%s8403_s5 + $0x70] sm:$0xff]  }
 0x163   : > { %v9809_v59 = vrot.slane %v2282_v22, 7  ;;  %v2378_v19 = vrot.slane %v2282_v22, 1  ;;  %v9813_v57 = vrot.slane %v2284_v3, 7  ;;  %v9815_v11 = vrot.slane %v2285_v4, 1 }
 0x164   : > { %v2379_v45 = vrot.slane %v2283_v55, 1  ;;  %v9811_v9 = vrot.slane %v2283_v55, 7  ;;  %v2510_v21 = vpack.c.bf16 %v2486_v58, %v9790_v8  ;;  %vm13320_vm12 = vnez %v13319_v56  ;;  %v9827_v55 = vld [vmem:[%s8403_s5 + $0x78] sm:$0xff]   ;;  %v6472_v18 = vpop.f32.mrb[0].mxu1 }
 0x165   : > { %2857 = vmatmul.mubr.bf16.gmra.mrb[104].mxu0 %v2457_v37  ;;  %v9804_v37 = vrot.slane %v2281_v10, 7  ;;  %13318 = vst [vmem:[#allocation48_spill] sm:$0xff] %v9813_v57  ;;  %v6337_v10 = vpop.f32.mrb[1].mxu0  ;;  %13321 = vst [vmem:[#allocation52_spill] sm:$0xff] %v9827_v55  ;;  %v2288_v1 = vunpack.c.h.bf16 %v9818_v6  ;;  %v2289_v2 = vunpack.c.l.bf16 %v9827_v55 }
 0x166   : > { %2864 = vmatprep.mubr.bf16.mxu0 %v9560_v25  ;;  %v2488_v25 = vsel %vm13317_vm8, %v9779_v31, %v2404_v7  ;;  %v6339_v7 = vpop.f32.mrb[2].mxu0  ;;  %v9829_v3 = vadd.f32 %v6337_v10, %v6336_v23  ;;  %vm13323_vm8 = vcmp.lt.s32.totalorder %v8413_v20, 7 }
 0x167   : > { %v2511_v22 = vpack.c.bf16 %v2488_v25, %v9798_v28  ;;  %v6340_v38 = vpop.f32.mrb[3].mxu0  ;;  %v2402_v58 = vsel %vm13323_vm8, %v2378_v19, %v2379_v45  ;;  %v2287_v25 = vunpack.c.l.bf16 %v9818_v6  ;;  %vm13325_vm13 = vmmov %vm13323_vm8 }
 0x168   : > { %13322 = vst [vmem:[#allocation26_spill] sm:$0xff] %v9829_v3  ;;  %v9852_v3 = vadd.f32 %v6340_v38, %v6339_v7  ;;  %v13329_v38 = vld [vmem:[#allocation35_spill] sm:$0xff] }
 0x169   : > { %7257 = vmatmul.mubr.bf16.gmra.mrb[72].mxu1 %v2508_v34  ;;  %v2458_v34 = vpack.c.bf16 %v9652_v49, %v2429_v60  ;;  %v9835_v49 = vsel %vm13315_vm15, %v9804_v37, %v9809_v59  ;;  %v2286_v60 = vunpack.c.h.bf16 %v9757_v24  ;;  %v9860_v24 = vsel %vm13323_vm8, %v2377_v46, %v2378_v19 }
 0x16a   : > { %7260 = vmatprep.mubr.bf16.mxu1 %v2509_v62  ;;  %v2431_v62 = vsel %vm13320_vm12, %v9692_v41, %v2350_v16  ;;  %v6473_v41 = vpop.f32.mrb[1].mxu1  ;;  %vm13324_vm12 = vmmov %vm13315_vm15  ;;  %v2400_v16 = vsel %vm13325_vm13, %v2380_v13, %v9815_v11  ;;  %13327 = vst [vmem:[#allocation43_spill] sm:$0xff] %v9852_v3  ;;  %vm13330_vm13 = vnez %v13329_v38  ;;  %v9878_v46 = vrot.slane %v2285_v4, 7  ;;  %v13338_v38 = vld [vmem:[#allocation30_spill] sm:$0xff] }
 0x16b   : > { %v9845_v23 = vsel %vm13324_vm12, %v9811_v9, %v9813_v57  ;;  %v9850_v10 = vadd.f32 %v6473_v41, %v6472_v18  ;;  %v6475_v56 = vpop.f32.mrb[2].mxu1  ;;  %v2459_v42 = vpack.c.bf16 %v9674_v27, %v2431_v62  ;;  %v2490_v18 = vsel %vm13330_vm13, %v9835_v49, %v2402_v58  ;;  %vm13331_vm12 = vmmov %vm13323_vm8 }
 0x16c   : > { %v6476_v12 = vpop.f32.mrb[3].mxu1  ;;  %vm13334_vm8 = vcmp.lt.s32.totalorder %v8413_v20, 1  ;;  %v2382_v19 = vrot.slane %v2286_v60, 1  ;;  %v2383_v7 = vrot.slane %v2287_v25, 1  ;;  %v2384_v58 = vrot.slane %v2288_v1, 1 }
 0x16d   : > { %13326 = vst [vmem:[#allocation53_spill] sm:$0xff] %v9850_v10  ;;  %2865 = vmatmul.mubr.bf16.gmra.mrb[108].mxu0 %v2458_v34  ;;  %v9862_v57 = vadd.f32 %v6476_v12, %v6475_v56  ;;  %v9869_v34 = vsel %vm13331_vm12, %v2379_v45, %v2380_v13  ;;  %v2348_v12 = vsel %vm13334_vm8, %v9646_v48, %v9679_v15  ;;  %v6342_v56 = vpop.f32.mrb[4].mxu0  ;;  %v9882_v13 = vrot.slane %v2287_v25, 7  ;;  %v6478_v48 = vpop.f32.mrb[4].mxu1  ;;  %vm13343_vm13 = vmmov %vm13334_vm8 }
 0x16e   : > { %2872 = vmatprep.mubr.bf16.mxu0 %v9585_v43  ;;  %v13332_v43 = vld [vmem:[#allocation24_spill] sm:$0xff]  ;;  %v6343_v62 = vpop.f32.mrb[5].mxu0  ;;  %v9884_v45 = vrot.slane %v2288_v1, 7  ;;  %v9886_v41 = vrot.slane %v2289_v2, 1  ;;  %vm13339_vm12 = vnez %v13338_v38 }
 0x16f   : > { %13328 = vst [vmem:[#allocation61_spill] sm:$0xff] %v9862_v57  ;;  %vm13333_vm15 = vnez %v13332_v43  ;;  %v9889_v43 = vld [vmem:[%s8403_s5 + $0x80] sm:$0xff]   ;;  %v9891_v15 = vadd.f32 %v6343_v62, %v6342_v56  ;;  %v2433_v25 = vsel %vm13339_vm12, %v9732_v0, %v2348_v12  ;;  %v6479_v57 = vpop.f32.mrb[5].mxu1  ;;  %v2290_v12 = vunpack.c.h.bf16 %v9827_v55 }
 0x170   : > { %v2492_v27 = vsel %vm13333_vm15, %v9845_v23, %v2400_v16  ;;  %13335 = vst [vmem:[#allocation55_spill] sm:$0xff] %v9884_v45  ;;  %v6345_v16 = vpop.f32.mrb[6].mxu0  ;;  %13336 = vst [vmem:[#allocation67_spill] sm:$0xff] %v9889_v43  ;;  %vm13340_vm15 = vcmp.lt.s32.totalorder %v8413_v20, 7  ;;  %v9906_v62 = vadd.f32 %v6479_v57, %v6478_v48  ;;  %v6481_v3 = vpop.f32.mrb[6].mxu1  ;;  %v9914_v0 = vsel %vm13343_vm13, %v9882_v13, %v9884_v45 }
 0x171   : > { %7261 = vmatmul.mubr.bf16.gmra.mrb[76].mxu1 %v2510_v21  ;;  %v9880_v21 = vrot.slane %v2286_v60, 7  ;;  %13337 = vst [vmem:[#allocation68_spill] sm:$0xff] %v9891_v15  ;;  %v6346_v4 = vpop.f32.mrb[7].mxu0  ;;  %v2513_v60 = vpack.c.bf16 %v2492_v27, %v9869_v34  ;;  %v2398_v56 = vsel %vm13340_vm15, %v2382_v19, %v2383_v7  ;;  %vm13344_vm12 = vmmov %vm13340_vm15  ;;  %v2291_v38 = vunpack.c.l.bf16 %v9889_v43  ;;  %v6482_v57 = vpop.f32.mrb[7].mxu1 }
 0x172   : > { %7264 = vmatprep.mubr.bf16.mxu1 %v2511_v22  ;;  %v2512_v22 = vpack.c.bf16 %v2490_v18, %v9860_v24  ;;  %13341 = vst [vmem:[#allocation70_spill] sm:$0xff] %v9906_v62  ;;  %v9908_v18 = vadd.f32 %v6346_v4, %v6345_v16  ;;  %v2396_v27 = vsel %vm13344_vm12, %v2384_v58, %v9886_v41  ;;  %v2292_v16 = vunpack.c.h.bf16 %v9889_v43  ;;  %vm13346_vm13 = vmmov %vm13344_vm12  ;;  %v13348_v62 = vld [vmem:[#allocation33_spill] sm:$0xff] }
 0x173   : > { %v9902_v1 = vsel %vm13334_vm8, %v9878_v46, %v9880_v21  ;;  %v9924_v48 = vadd.f32 %v6482_v57, %v6481_v3  ;;  %v2460_v4 = vpack.c.bf16 %v9709_v30, %v2433_v25  ;;  %v9930_v10 = vsel %vm13346_vm13, %v9815_v11, %v2382_v19  ;;  %vm13347_vm15 = vmmov %vm13334_vm8  ;;  %v13351_v30 = vld [vmem:[#allocation29_spill] sm:$0xff] }
 0x174   : > { %13342 = vst [vmem:[#allocation16_spill] sm:$0xff] %v9908_v18  ;;  %v2346_v18 = vsel %vm13347_vm15, %v9681_v52, %v9683_v26  ;;  %vm13349_vm12 = vnez %v13348_v62  ;;  %vm13350_vm8 = vmmov %vm13346_vm13  ;;  %vm13352_vm11 = vnez %v13351_v30  ;;  %v9946_v19 = vrot.slane %v2289_v2, 7 }
 0x175   : > { %2873 = vmatmul.mubr.bf16.gmra.mrb[112].mxu0 %v2459_v42  ;;  %v2293_v42 = vunpack.c.l.bf16 %v9549_v40  ;;  %13345 = vst [vmem:[#allocation66_spill] sm:$0xff] %v9924_v48  ;;  %v2494_v3 = vsel %vm13349_vm12, %v9902_v1, %v2398_v56  ;;  %v2496_v11 = vsel %vm13352_vm11, %v9914_v0, %v2396_v27  ;;  %v9948_v57 = vrot.slane %v2290_v12, 7  ;;  %vm13355_vm11 = vmmov %vm13347_vm15 }
 0x176   : > { %2880 = vmatprep.mubr.bf16.mxu0 %v9600_v51  ;;  %v6348_v51 = vpop.f32.mrb[8].mxu0  ;;  %v2386_v52 = vrot.slane %v2290_v12, 1  ;;  %v2387_v26 = vrot.slane %v2291_v38, 1  ;;  %v9952_v62 = vrot.slane %v2292_v16, 7  ;;  %v2388_v56 = vrot.slane %v2292_v16, 1 }
 0x177   : > { %v6349_v25 = vpop.f32.mrb[9].mxu0  ;;  %v2389_v15 = vrot.slane %v2293_v42, 1  ;;  %v2514_v27 = vpack.c.bf16 %v2494_v3, %v9930_v10 }
 0x178   : > { %v6351_v48 = vpop.f32.mrb[10].mxu0  ;;  %v2394_v3 = vsel %vm13350_vm8, %v2386_v52, %v2387_v26 }
 0x179   : > { %7265 = vmatmul.mubr.bf16.gmra.mrb[80].mxu1 %v2512_v22  ;;  %v9941_v22 = vsel %vm13350_vm8, %v2383_v7, %v2384_v58  ;;  %v6484_v7 = vpop.f32.mrb[8].mxu1  ;;  %v9954_v58 = vadd.f32 %v6349_v25, %v6348_v51  ;;  %v6352_v43 = vpop.f32.mrb[11].mxu0  ;;  %v9969_v51 = vsel %vm13347_vm15, %v9946_v19, %v9948_v57  ;;  %vm13358_vm15 = vmmov %vm13350_vm8 }
 0x17a   : > { %7268 = vmatprep.mubr.bf16.mxu1 %v2513_v60  ;;  %v9950_v60 = vrot.slane %v2291_v38, 7  ;;  %v6485_v2 = vpop.f32.mrb[9].mxu1  ;;  %v2515_v30 = vpack.c.bf16 %v2496_v11, %v9941_v22  ;;  %v9960_v45 = vadd.f32 %v6352_v43, %v6351_v48  ;;  %v13353_v38 = vld [vmem:[#allocation32_spill] sm:$0xff]  ;;  %v6354_v48 = vpop.f32.mrb[12].mxu0 }
 0x17b   : > { %v9958_v55 = vadd.f32 %v6485_v2, %v6484_v7  ;;  %v6487_v12 = vpop.f32.mrb[10].mxu1  ;;  %vm13354_vm13 = vnez %v13353_v38  ;;  %v2498_v7 = vsel %vm9405_vm5, %v9969_v51, %v2394_v3  ;;  %v6355_v2 = vpop.f32.mrb[13].mxu0 }
 0x17c   : > { %v2435_v16 = vsel %vm13354_vm13, %v9739_v29, %v2346_v18  ;;  %v6488_v11 = vpop.f32.mrb[11].mxu1  ;;  %v9978_v43 = vsel %vm13355_vm11, %v9950_v60, %v9952_v62  ;;  %vm13356_vm13 = vmmov %vm13350_vm8 }
 0x17d   : > { %2881 = vmatmul.mubr.bf16.gmra.mrb[116].mxu0 %v2460_v4  ;;  %v2392_v29 = vsel %vm13356_vm13, %v2388_v56, %v2389_v15  ;;  %v9982_v18 = vadd.f32 %v6488_v11, %v6487_v12  ;;  %v2461_v4 = vpack.c.bf16 %v9717_v35, %v2435_v16  ;;  %vm13360_vm11 = vmmov %vm13350_vm8  ;;  %v10000_v12 = vrot.slane %v2293_v42, 7 }
 0x17e   : > { %2888 = vmatprep.mubr.bf16.mxu0 %v9630_v36  ;;  %v9988_v36 = vsel %vm13358_vm15, %v9886_v41, %v2386_v52  ;;  %v9995_v38 = vsel %vm13360_vm11, %v2387_v26, %v2388_v56  ;;  %v13362_v35 = vunpack.c.h.bf16 %v9549_v40  ;;  %v6357_v41 = vpop.f32.mrb[14].mxu0  ;;  %v6490_v52 = vpop.f32.mrb[12].mxu1  ;;  %v10004_v11 = vadd.f32 %v6355_v2, %v6354_v48  ;;  %vm13365_vm15 = vmmov %vm13360_vm11 }
 0x17f   : > { %13357 = vst [vmem:[#allocation50_spill] sm:$0xff] %v9982_v18  ;;  %v6358_v25 = vpop.f32.mrb[15].mxu0  ;;  %v2516_v3 = vpack.c.bf16 %v2498_v7, %v9988_v36  ;;  %vm13363_vm13 = vcmp.lt.s32.totalorder %v8413_v20, 1  ;;  %v6491_v56 = vpop.f32.mrb[13].mxu1 }
 0x180   : > { %v2390_v16 = vrot.slane %v13362_v35, 1  ;;  %v2344_v26 = vsel %vm13363_vm13, %v9685_v32, %v9744_v14  ;;  %v10012_v42 = vadd.f32 %v6491_v56, %v6490_v52  ;;  %v10014_v18 = vadd.f32 %v6358_v25, %v6357_v41  ;;  %vm13364_vm8 = vmmov %vm13363_vm13  ;;  %v13366_v14 = vld [vmem:[#allocation36_spill] sm:$0xff] }
 0x181   : > { %7269 = vmatmul.mubr.bf16.gmra.mrb[84].mxu1 %v2514_v27  ;;  %v6493_v27 = vpop.f32.mrb[14].mxu1  ;;  %v10020_v48 = vsel %vm13364_vm8, %v10000_v12, %v9567_v33  ;;  %vm13367_vm11 = vnez %v13366_v14  ;;  %vm13368_vm13 = vmmov %vm13365_vm15  ;;  %vm13369_vm8 = vnez %v13257_v53 }
 0x182   : > { %7272 = vmatprep.mubr.bf16.mxu1 %v2515_v30  ;;  %v2500_v30 = vsel %vm9423_vm9, %v9978_v43, %v2392_v29  ;;  %v2422_v7 = vsel %vm13365_vm15, %v2390_v16, %v9562_v17  ;;  %v6494_v32 = vpop.f32.mrb[15].mxu1  ;;  %v2437_v2 = vsel %vm13367_vm11, %v9790_v8, %v2344_v26  ;;  %v10033_v33 = vsel %vm13368_vm13, %v2389_v15, %v2390_v16 }
 0x183   : > { %v2517_v29 = vpack.c.bf16 %v2500_v30, %v9995_v38  ;;  %v10029_v25 = vadd.f32 %v6494_v32, %v6493_v27  ;;  %v2502_v17 = vsel %vm13369_vm8, %v10020_v48, %v2422_v7  ;;  %vm13370_vm15 = vcmp.lt.s32.totalorder %v8413_v20, 1 }
 0x184   : > { %v6496_v41 = vpop.f32.mrb[16].mxu1  ;;  %v2518_v27 = vpack.c.bf16 %v2502_v17, %v10033_v33  ;;  %v2342_v15 = vsel %vm13370_vm15, %v9746_v44, %v9748_v39 }
 0x185   : > { %2889 = vmatmul.mubr.bf16.gmra.mrb[120].mxu0 %v2461_v4  ;;  %v6360_v4 = vpop.f32.mrb[16].mxu0  ;;  %v6497_v16 = vpop.f32.mrb[17].mxu1 }
 0x186   : > { %2896 = vmatprep.mubr.bf16.mxu0 %v9642_v63  ;;  %v6361_v30 = vpop.f32.mrb[17].mxu0  ;;  %v2462_v63 = vpack.c.bf16 %v9769_v54, %v2437_v2  ;;  %v6499_v26 = vpop.f32.mrb[18].mxu1 }
 0x187   : > { %v6363_v35 = vpop.f32.mrb[18].mxu0  ;;  %v10039_v52 = vadd.f32 %v6361_v30, %v6360_v4  ;;  %v6500_v54 = vpop.f32.mrb[19].mxu1 }
 0x188   : > { %v6364_v8 = vpop.f32.mrb[19].mxu0  ;;  %v10054_v32 = vadd.f32 %v6500_v54, %v6499_v26 }
 0x189   : > { %7273 = vmatmul.mubr.bf16.gmra.mrb[88].mxu1 %v2516_v3  ;;  %v10046_v3 = vadd.f32 %v6497_v16, %v6496_v41  ;;  %v10048_v56 = vadd.f32 %v6364_v8, %v6363_v35 }
 0x18a   : > { %7276 = vmatprep.mubr.bf16.mxu1 %v2517_v29  ;;  %v13371_v29 = vld [vmem:[#allocation42_spill] sm:$0xff]  ;;  %v6366_v2 = vpop.f32.mrb[20].mxu0 }
 0x18b   : > { %vm13372_vm13 = vnez %v13371_v29  ;;  %v6367_v4 = vpop.f32.mrb[21].mxu0 }
 0x18c   : > { %v2439_v7 = vsel %vm13372_vm13, %v9798_v28, %v2342_v15  ;;  %v6369_v39 = vpop.f32.mrb[22].mxu0  ;;  %v6502_v17 = vpop.f32.mrb[20].mxu1  ;;  %v10057_v30 = vadd.f32 %v6367_v4, %v6366_v2 }
 0x18d   : > { %2897 = vmatmul.mubr.bf16.gmra.mrb[124].mxu0 %v2462_v63  ;;  %v2463_v44 = vpack.c.bf16 %v9779_v31, %v2439_v7  ;;  %v6370_v35 = vpop.f32.mrb[23].mxu0  ;;  %v6503_v63 = vpop.f32.mrb[21].mxu1  ;;  %v13373_v31 = vld [vmem:[#allocation44_spill] sm:$0xff] }
 0x18e   : > { %2904 = vmatprep.mubr.bf16.mxu0 %v9688_v50  ;;  %v2340_v50 = vsel %vm13370_vm15, %v9750_v5, %v9804_v37  ;;  %v10063_v41 = vadd.f32 %v6503_v63, %v6502_v17  ;;  %v6505_v28 = vpop.f32.mrb[22].mxu1  ;;  %v10065_v8 = vadd.f32 %v6370_v35, %v6369_v39  ;;  %vm13374_vm8 = vnez %v13373_v31 }
 0x18f   : > { %v2441_v15 = vsel %vm13374_vm8, %v9860_v24, %v2340_v50 }
 0x190   : > { %v2464_v5 = vpack.c.bf16 %v9835_v49, %v2441_v15  ;;  %v13375_v49 = vld [vmem:[#allocation45_spill] sm:$0xff] }
 0x191   : > { %7277 = vmatmul.mubr.bf16.gmra.mrb[92].mxu1 %v2518_v27  ;;  %v6506_v27 = vpop.f32.mrb[23].mxu1  ;;  %vm13376_vm8 = vnez %v13375_v49 }
 0x192   : > { %v10071_v16 = vadd.f32 %v6506_v27, %v6505_v28  ;;  %v6372_v26 = vpop.f32.mrb[24].mxu0 }
 0x193   : > { %v6373_v54 = vpop.f32.mrb[25].mxu0 }
 0x194   : > { %v6375_v37 = vpop.f32.mrb[26].mxu0  ;;  %v6508_v7 = vpop.f32.mrb[24].mxu1  ;;  %v10074_v2 = vadd.f32 %v6373_v54, %v6372_v26 }
 0x195   : > { %2905 = vmatmul.mubr.bf16.gmra.mrb[128].mxu0 %v2463_v44  ;;  %v6376_v4 = vpop.f32.mrb[27].mxu0  ;;  %v6509_v44 = vpop.f32.mrb[25].mxu1 }
 0x196   : > { %2912 = vmatprep.mubr.bf16.mxu0 %v9698_v61  ;;  %v2338_v61 = vsel %vm13370_vm15, %v9809_v59, %v9811_v9  ;;  %v10080_v39 = vadd.f32 %v6509_v44, %v6508_v7  ;;  %v6511_v24 = vpop.f32.mrb[26].mxu1  ;;  %v10082_v17 = vadd.f32 %v6376_v4, %v6375_v37  ;;  %v13378_v44 = vld [vmem:[#allocation49_spill] sm:$0xff] }
 0x197   : > { %v6512_v35 = vpop.f32.mrb[27].mxu1  ;;  %v2443_v50 = vsel %vm13376_vm8, %v9869_v34, %v2338_v61 }
 0x198   : > { %v10088_v63 = vadd.f32 %v6512_v35, %v6511_v24  ;;  %v2465_v59 = vpack.c.bf16 %v9845_v23, %v2443_v50  ;;  %v13379_v23 = vld [vmem:[#allocation37_spill] sm:$0xff] }
 0x199   : > { %vm13380_vm8 = vnez %v13379_v23 }
 0x19a   : > { %v6378_v28 = vpop.f32.mrb[28].mxu0 }
 0x19b   : > { %v6379_v27 = vpop.f32.mrb[29].mxu0 }
 0x19c   : > { %v6381_v9 = vpop.f32.mrb[30].mxu0  ;;  %v6514_v15 = vpop.f32.mrb[28].mxu1  ;;  %v10091_v26 = vadd.f32 %v6379_v27, %v6378_v28 }
 0x19d   : > { %2913 = vmatmul.mubr.bf16.gmra.mrb[132].mxu0 %v2464_v5  ;;  %v6382_v54 = vpop.f32.mrb[31].mxu0  ;;  %v13377_v5 = vld [vmem:[#allocation48_spill] sm:$0xff]  ;;  %v6515_v37 = vpop.f32.mrb[29].mxu1 }
 0x19e   : > { %2920 = vmatprep.mubr.bf16.mxu0 %v9753_v47  ;;  %v2336_v47 = vsel %vm13370_vm15, %v13377_v5, %v9878_v46  ;;  %v10097_v7 = vadd.f32 %v6515_v37, %v6514_v15  ;;  %v6517_v34 = vpop.f32.mrb[30].mxu1  ;;  %v10099_v4 = vadd.f32 %v6382_v54, %v6381_v9 }
 0x19f   : > { %v6518_v61 = vpop.f32.mrb[31].mxu1  ;;  %v2445_v24 = vsel %vm13380_vm8, %v9930_v10, %v2336_v47 }
 0x1a0   : > { %v10105_v35 = vadd.f32 %v6518_v61, %v6517_v34  ;;  %v2466_v46 = vpack.c.bf16 %v9902_v1, %v2445_v24 }
 0x1a2   : > { %v6384_v50 = vpop.f32.mrb[32].mxu0 }
 0x1a3   : > { %v6385_v28 = vpop.f32.mrb[33].mxu0 }
 0x1a4   : > { %v10108_v27 = vadd.f32 %v6385_v28, %v6384_v50  ;;  %v6387_v15 = vpop.f32.mrb[34].mxu0  ;;  %v6520_v5 = vpop.f32.mrb[32].mxu1 }
 0x1a5   : > { %2921 = vmatmul.mubr.bf16.gmra.mrb[136].mxu0 %v2465_v59  ;;  %v6388_v9 = vpop.f32.mrb[35].mxu0  ;;  %v2334_v59 = vsel %vm13370_vm15, %v9880_v21, %v9882_v13  ;;  %v6521_v54 = vpop.f32.mrb[33].mxu1 }
 0x1a6   : > { %2928 = vmatprep.mubr.bf16.mxu0 %v13378_v44  ;;  %v10114_v37 = vadd.f32 %v6388_v9, %v6387_v15  ;;  %v10116_v10 = vadd.f32 %v6521_v54, %v6520_v5  ;;  %v6523_v47 = vpop.f32.mrb[34].mxu1  ;;  %v2447_v61 = vsel %vm9473_vm6, %v9941_v22, %v2334_v59 }
 0x1a7   : > { %v6524_v34 = vpop.f32.mrb[35].mxu1  ;;  %v2467_v21 = vpack.c.bf16 %v9914_v0, %v2447_v61  ;;  %v13384_v0 = vld [vmem:[#allocation47_spill] sm:$0xff] }
 0x1a8   : > { %v10122_v44 = vadd.f32 %v6524_v34, %v6523_v47  ;;  %v13383_v34 = vld [vmem:[#allocation52_spill] sm:$0xff]  ;;  %vm13385_vm6 = vnez %v13384_v0 }
 0x1aa   : > { %v6390_v24 = vpop.f32.mrb[36].mxu0 }
 0x1ab   : > { %v6391_v50 = vpop.f32.mrb[37].mxu0 }
 0x1ac   : > { %v10125_v13 = vadd.f32 %v6391_v50, %v6390_v24  ;;  %v6393_v28 = vpop.f32.mrb[38].mxu0 }
 0x1ad   : > { %2929 = vmatmul.mubr.bf16.gmra.mrb[140].mxu0 %v2466_v46  ;;  %v6394_v5 = vpop.f32.mrb[39].mxu0  ;;  %v13382_v46 = vld [vmem:[#allocation55_spill] sm:$0xff] }
 0x1ae   : > { %2936 = vmatprep.mubr.bf16.mxu0 %v9818_v6  ;;  %v2332_v6 = vsel %vm13370_vm15, %v13382_v46, %v9946_v19  ;;  %v10131_v54 = vadd.f32 %v6394_v5, %v6393_v28 }
 0x1af   : > { %v2449_v61 = vsel %vm13385_vm6, %v9988_v36, %v2332_v6 }
 0x1b0   : > { %v2468_v19 = vpack.c.bf16 %v9969_v51, %v2449_v61  ;;  %v13387_v51 = vld [vmem:[#allocation56_spill] sm:$0xff] }
 0x1b1   : > { %v6526_v15 = vpop.f32.mrb[36].mxu1  ;;  %vm13388_vm6 = vnez %v13387_v51 }
 0x1b2   : > { %v6527_v9 = vpop.f32.mrb[37].mxu1  ;;  %v6396_v50 = vpop.f32.mrb[40].mxu0 }
 0x1b3   : > { %v10133_v22 = vadd.f32 %v6527_v9, %v6526_v15  ;;  %v6529_v59 = vpop.f32.mrb[38].mxu1  ;;  %v6397_v1 = vpop.f32.mrb[41].mxu0 }
 0x1b4   : > { %v6530_v47 = vpop.f32.mrb[39].mxu1  ;;  %v10142_v46 = vadd.f32 %v6397_v1, %v6396_v50  ;;  %v6399_v28 = vpop.f32.mrb[42].mxu0 }
 0x1b5   : > { %2937 = vmatmul.mubr.bf16.gmra.mrb[144].mxu0 %v2467_v21  ;;  %v10139_v24 = vadd.f32 %v6530_v47, %v6529_v59  ;;  %v6400_v5 = vpop.f32.mrb[43].mxu0  ;;  %v2330_v21 = vsel %vm13370_vm15, %v9948_v57, %v9950_v60  ;;  %v13386_v47 = vld [vmem:[#allocation67_spill] sm:$0xff] }
 0x1b6   : > { %2944 = vmatprep.mubr.bf16.mxu0 %v13383_v34  ;;  %v10148_v34 = vadd.f32 %v6400_v5, %v6399_v28  ;;  %v2451_v1 = vsel %vm13388_vm6, %v9995_v38, %v2330_v21 }
 0x1b7   : > { %v2469_v57 = vpack.c.bf16 %v9978_v43, %v2451_v1  ;;  %v13389_v43 = vld [vmem:[#allocation71_spill] sm:$0xff] }
 0x1b8   : > { %vm13390_vm6 = vnez %v13389_v43 }
 0x1bc   : > { %v6532_v15 = vpop.f32.mrb[40].mxu1 }
 0x1bd   : > { %v6533_v9 = vpop.f32.mrb[41].mxu1  ;;  %2945 = vmatmul.mubr.bf16.gmra.mrb[148].mxu0 %v2468_v19  ;;  %v2328_v19 = vsel %vm13370_vm15, %v9952_v62, %v10000_v12 }
 0x1be   : > { %v10150_v36 = vadd.f32 %v6533_v9, %v6532_v15  ;;  %v6535_v6 = vpop.f32.mrb[42].mxu1  ;;  %2952 = vmatprep.mubr.bf16.mxu0 %v13386_v47 }
 0x1bf   : > { %v6536_v59 = vpop.f32.mrb[43].mxu1 }
 0x1c0   : > { %v10156_v61 = vadd.f32 %v6536_v59, %v6535_v6  ;;  %v6402_v50 = vpop.f32.mrb[44].mxu0 }
 0x1c1   : > { %v6403_v0 = vpop.f32.mrb[45].mxu0 }
 0x1c2   : > { %v10159_v60 = vadd.f32 %v6403_v0, %v6402_v50  ;;  %v6405_v28 = vpop.f32.mrb[46].mxu0  ;;  %v2453_v0 = vsel %vm13390_vm6, %v10033_v33, %v2328_v19  ;;  %vm13436_vm6 = vmmov %vm13370_vm15 }
 0x1c3   : > { %v6406_v5 = vpop.f32.mrb[47].mxu0  ;;  %v2470_v62 = vpack.c.bf16 %v10020_v48, %v2453_v0 }
 0x1c4   : > { %v6538_v15 = vpop.f32.mrb[44].mxu1  ;;  %v10165_v47 = vadd.f32 %v6406_v5, %v6405_v28 }
 0x1c5   : > { %v6539_v9 = vpop.f32.mrb[45].mxu1  ;;  %2953 = vmatmul.mubr.bf16.gmra.mrb[152].mxu0 %v2469_v57 }
 0x1c6   : > { %v10167_v38 = vadd.f32 %v6539_v9, %v6538_v15  ;;  %v6541_v21 = vpop.f32.mrb[46].mxu1  ;;  %2960 = vmatprep.mubr.bf16.mxu0 %v9549_v40 }
 0x1c7   : > { %v6542_v6 = vpop.f32.mrb[47].mxu1 }
 0x1c8   : > { %v10173_v59 = vadd.f32 %v6542_v6, %v6541_v21  ;;  %v6408_v1 = vpop.f32.mrb[48].mxu0 }
 0x1c9   : > { %v6409_v50 = vpop.f32.mrb[49].mxu0 }
 0x1ca   : > { %v10176_v12 = vadd.f32 %v6409_v50, %v6408_v1  ;;  %v6411_v28 = vpop.f32.mrb[50].mxu0 }
 0x1cb   : > { %v6412_v5 = vpop.f32.mrb[51].mxu0 }
 0x1cc   : > { %v6544_v15 = vpop.f32.mrb[48].mxu1  ;;  %v10178_v57 = vadd.f32 %v6412_v5, %v6411_v28 }
 0x1cd   : > { %v6545_v9 = vpop.f32.mrb[49].mxu1  ;;  %2961 = vmatmul.mubr.bf16.gmra.mrb[156].mxu0 %v2470_v62 }
 0x1ce   : > { %13391 = vst [vmem:[#allocation63_spill] sm:$0xff] %v10178_v57  ;;  %v10180_v51 = vadd.f32 %v6545_v9, %v6544_v15  ;;  %v6547_v40 = vpop.f32.mrb[50].mxu1 }
 0x1cf   : > { %v6548_v43 = vpop.f32.mrb[51].mxu1 }
 0x1d0   : > { %v10182_v33 = vadd.f32 %v6548_v43, %v6547_v40  ;;  %v6414_v19 = vpop.f32.mrb[52].mxu0 }
 0x1d1   : > { %v6415_v21 = vpop.f32.mrb[53].mxu0 }
 0x1d2   : > { %13392 = vst [vmem:[#allocation28_spill] sm:$0xff] %v10182_v33  ;;  %v10184_v6 = vadd.f32 %v6415_v21, %v6414_v19  ;;  %v6417_v48 = vpop.f32.mrb[54].mxu0 }
 0x1d3   : > { %v6418_v1 = vpop.f32.mrb[55].mxu0 }
 0x1d4   : > { %v6550_v0 = vpop.f32.mrb[52].mxu1  ;;  %v10186_v23 = vadd.f32 %v6418_v1, %v6417_v48 }
 0x1d5   : > { %v6551_v50 = vpop.f32.mrb[53].mxu1 }
 0x1d6   : > { %v10188_v49 = vadd.f32 %v6551_v50, %v6550_v0  ;;  %v6553_v28 = vpop.f32.mrb[54].mxu1 }
 0x1d7   : > { %v6554_v15 = vpop.f32.mrb[55].mxu1 }
 0x1d8   : > { %v10190_v5 = vadd.f32 %v6554_v15, %v6553_v28  ;;  %v6420_v62 = vpop.f32.mrb[56].mxu0 }
 0x1d9   : > { %v6421_v9 = vpop.f32.mrb[57].mxu0 }
 0x1da   : > { %13393 = vst [vmem:[#allocation57_spill] sm:$0xff] %v10190_v5  ;;  %v10192_v43 = vadd.f32 %v6421_v9, %v6420_v62  ;;  %v6423_v40 = vpop.f32.mrb[58].mxu0  ;;  %v13404_v5 = vld [vmem:[#allocation16_spill] sm:$0xff] }
 0x1db   : > { %v6424_v19 = vpop.f32.mrb[59].mxu0 }
 0x1dc   : > { %13394 = vst [vmem:[#allocation64_spill] sm:$0xff] %v10192_v43  ;;  %v6556_v53 = vpop.f32.mrb[56].mxu1  ;;  %v10194_v31 = vadd.f32 %v6424_v19, %v6423_v40 }
 0x1dd   : > { %v6557_v21 = vpop.f32.mrb[57].mxu1 }
 0x1de   : > { %13395 = vst [vmem:[#allocation60_spill] sm:$0xff] %v10194_v31  ;;  %v10196_v14 = vadd.f32 %v6557_v21, %v6556_v53  ;;  %v6559_v48 = vpop.f32.mrb[58].mxu1  ;;  %v13401_v31 = vld [vmem:[#allocation68_spill] sm:$0xff] }
 0x1df   : > { %v6560_v1 = vpop.f32.mrb[59].mxu1 }
 0x1e0   : > { %13396 = vst [vmem:[#allocation51_spill] sm:$0xff] %v10196_v14  ;;  %v10198_v0 = vadd.f32 %v6560_v1, %v6559_v48  ;;  %v6426_v50 = vpop.f32.mrb[60].mxu0 }
 0x1e1   : > { %v6427_v29 = vpop.f32.mrb[61].mxu0 }
 0x1e2   : > { %13397 = vst [vmem:[#allocation65_spill] sm:$0xff] %v10198_v0  ;;  %v10200_v28 = vadd.f32 %v6427_v29, %v6426_v50  ;;  %v6429_v15 = vpop.f32.mrb[62].mxu0  ;;  %v13402_v0 = vld [vmem:[#allocation26_spill] sm:$0xff] }
 0x1e3   : > { %v6430_v62 = vpop.f32.mrb[63].mxu0  ;;  %v13403_v50 = vld [vmem:[#allocation70_spill] sm:$0xff] }
 0x1e4   : > { %13398 = vst [vmem:[#allocation58_spill] sm:$0xff] %v10200_v28  ;;  %v6562_v20 = vpop.f32.mrb[60].mxu1  ;;  %v10202_v43 = vadd.f32 %v6430_v62, %v6429_v15  ;;  %v13405_v62 = vld [vmem:[#allocation53_spill] sm:$0xff] }
 0x1e5   : > { %v6563_v9 = vpop.f32.mrb[61].mxu1 }
 0x1e6   : > { %13399 = vst [vmem:[#allocation59_spill] sm:$0xff] %v10202_v43  ;;  %v10204_v33 = vadd.f32 %v6563_v9, %v6562_v20  ;;  %v6565_v40 = vpop.f32.mrb[62].mxu1  ;;  %v13406_v9 = vld [vmem:[#allocation43_spill] sm:$0xff] }
 0x1e7   : > { %v6566_v19 = vpop.f32.mrb[63].mxu1 }
 0x1e8   : > { %v10206_v53 = vadd.f32 %v6566_v19, %v6565_v40  ;;  %v7154_v21 = vpop.f32.mrb[64].mxu0  ;;  %v13407_v40 = vld [vmem:[#allocation66_spill] sm:$0xff] }
 0x1e9   : > { %v1647_v48 = vadd.f32 %v7154_v21, %v13401_v31  ;;  %v1638_v1 = vpop.f32.mrb[65].mxu0 }
 0x1ea   : > { %13400 = vst [vmem:[#allocation62_spill] sm:$0xff] %v10206_v53  ;;  %v1639_v14 = vadd.f32 %v13402_v0, %v1638_v1  ;;  %v7155_v29 = vpop.f32.mrb[66].mxu0  ;;  %v13408_v53 = vld [vmem:[#allocation61_spill] sm:$0xff] }
 0x1eb   : > { %v10211_v28 = vadd.f32 %v13403_v50, %v1647_v48  ;;  %v1650_v57 = vadd.f32 %v7155_v29, %v13404_v5  ;;  %v1641_v15 = vpop.f32.mrb[67].mxu0 }
 0x1ec   : > { %v10215_v20 = vadd.f32 %v13405_v62, %v1639_v14  ;;  %v1642_v43 = vadd.f32 %v13406_v9, %v1641_v15 }
 0x1ed   : > { %v10219_v19 = vadd.f32 %v13407_v40, %v1650_v57 }
 0x1ee   : > { %v10222_v31 = vadd.f32 %v13408_v53, %v1642_v43  ;;  %v13409_v53 = vld [vmem:[#allocation50_spill] sm:$0xff] }
 0x1f0   : > { %v7158_v21 = vpop.f32.mrb[68].mxu0 }
 0x1f1   : > { %v1663_v0 = vadd.f32 %v7158_v21, %v10004_v11  ;;  %v1654_v1 = vpop.f32.mrb[69].mxu0 }
 0x1f2   : > { %v1655_v48 = vadd.f32 %v9954_v58, %v1654_v1  ;;  %v7159_v50 = vpop.f32.mrb[70].mxu0 }
 0x1f3   : > { %v10227_v5 = vadd.f32 %v10012_v42, %v1663_v0  ;;  %v1666_v14 = vadd.f32 %v7159_v50, %v10014_v18  ;;  %v1657_v29 = vpop.f32.mrb[71].mxu0 }
 0x1f4   : > { %v10231_v15 = vadd.f32 %v9958_v55, %v1655_v48  ;;  %v1658_v57 = vadd.f32 %v9960_v45, %v1657_v29 }
 0x1f5   : > { %v10235_v43 = vadd.f32 %v10029_v25, %v1666_v14 }
 0x1f6   : > { %v10238_v11 = vadd.f32 %v13409_v53, %v1658_v57 }
 0x1f8   : > { %v7162_v62 = vpop.f32.mrb[72].mxu0 }
 0x1f9   : > { %v1679_v58 = vadd.f32 %v7162_v62, %v10057_v30  ;;  %v1670_v9 = vpop.f32.mrb[73].mxu0 }
 0x1fa   : > { %v1671_v42 = vadd.f32 %v10039_v52, %v1670_v9  ;;  %v7163_v40 = vpop.f32.mrb[74].mxu0 }
 0x1fb   : > { %v10243_v18 = vadd.f32 %v10063_v41, %v1679_v58  ;;  %v1682_v55 = vadd.f32 %v7163_v40, %v10065_v8  ;;  %v1673_v21 = vpop.f32.mrb[75].mxu0 }
 0x1fc   : > { %v10247_v45 = vadd.f32 %v10046_v3, %v1671_v42  ;;  %v1674_v25 = vadd.f32 %v10048_v56, %v1673_v21 }
 0x1fd   : > { %v10251_v0 = vadd.f32 %v10071_v16, %v1682_v55 }
 0x1fe   : > { %v10254_v30 = vadd.f32 %v10054_v32, %v1674_v25 }
 0x200   : > { %v7166_v1 = vpop.f32.mrb[76].mxu0 }
 0x201   : > { %v1695_v52 = vadd.f32 %v7166_v1, %v10091_v26  ;;  %v1686_v48 = vpop.f32.mrb[77].mxu0 }
 0x202   : > { %v1687_v41 = vadd.f32 %v10074_v2, %v1686_v48  ;;  %v7167_v50 = vpop.f32.mrb[78].mxu0  ;;  %v7924_v48 = vld [vmem:[#allocation8 + $0xc0] sm:$0xff]  }
 0x203   : > { %v10259_v8 = vadd.f32 %v10097_v7, %v1695_v52  ;;  %v1698_v3 = vadd.f32 %v7167_v50, %v10099_v4  ;;  %v1689_v14 = vpop.f32.mrb[79].mxu0  ;;  %v13411_v50 = vld [vmem:[#allocation57_spill] sm:$0xff] }
 0x204   : > { %v10263_v56 = vadd.f32 %v10080_v39, %v1687_v41  ;;  %v1690_v16 = vadd.f32 %v10082_v17, %v1689_v14  ;;  %v7925_v41 = vld [vmem:[#allocation8 + $0x140] sm:$0xff]  }
 0x205   : > { %v10267_v32 = vadd.f32 %v10105_v35, %v1698_v3  ;;  %v13412_v3 = vld [vmem:[#allocation28_spill] sm:$0xff]  ;;  %7280 = vmatprep.subr.bf16.mxu1 %v7925_v41 }
 0x206   : > { %v10270_v26 = vadd.f32 %v10088_v63, %v1690_v16  ;;  %7281 = vmatpush3.bf16.msra.mxu1 %v7925_v41  ;;  %v13414_v16 = vld [vmem:[#allocation64_spill] sm:$0xff] }
 0x208   : > { %v7170_v29 = vpop.f32.mrb[80].mxu0 }
 0x209   : > { %v1711_v2 = vadd.f32 %v7170_v29, %v10125_v13  ;;  %v1702_v57 = vpop.f32.mrb[81].mxu0 }
 0x20a   : > { %v1703_v7 = vadd.f32 %v10108_v27, %v1702_v57  ;;  %v7171_v53 = vpop.f32.mrb[82].mxu0 }
 0x20b   : > { %v10275_v4 = vadd.f32 %v10133_v22, %v1711_v2  ;;  %v1714_v39 = vadd.f32 %v7171_v53, %v10131_v54  ;;  %v1705_v62 = vpop.f32.mrb[83].mxu0 }
 0x20c   : > { %v10279_v17 = vadd.f32 %v10116_v10, %v1703_v7  ;;  %v1706_v35 = vadd.f32 %v10114_v37, %v1705_v62  ;;  %v13415_v7 = vld [vmem:[#allocation59_spill] sm:$0xff] }
 0x20d   : > { %v10283_v63 = vadd.f32 %v10139_v24, %v1714_v39  ;;  %v13416_v62 = vld [vmem:[#allocation51_spill] sm:$0xff] }
 0x20e   : > { %v10286_v13 = vadd.f32 %v10122_v44, %v1706_v35 }
 0x210   : > { %v7174_v58 = vpop.f32.mrb[84].mxu0 }
 0x211   : > { %v1727_v27 = vadd.f32 %v7174_v58, %v10159_v60  ;;  %v1718_v9 = vpop.f32.mrb[85].mxu0  ;;  %v13417_v58 = vld [vmem:[#allocation60_spill] sm:$0xff] }
 0x212   : > { %v1719_v22 = vadd.f32 %v10142_v46, %v1718_v9  ;;  %v7175_v42 = vpop.f32.mrb[86].mxu0  ;;  %v7926_v9 = vld [vmem:[#allocation8 + $0x148] sm:$0xff]  }
 0x213   : > { %v10291_v54 = vadd.f32 %v10167_v38, %v1727_v27  ;;  %v1730_v10 = vadd.f32 %v7175_v42, %v10165_v47  ;;  %v1721_v40 = vpop.f32.mrb[87].mxu0  ;;  %7282 = vmatprep.subr.bf16.mxu1 %v7926_v9 }
 0x214   : > { %v10295_v37 = vadd.f32 %v10150_v36, %v1719_v22  ;;  %v1722_v24 = vadd.f32 %v10148_v34, %v1721_v40  ;;  %v13418_v22 = vld [vmem:[#allocation62_spill] sm:$0xff]  ;;  %7283 = vmatpush3.bf16.msra.mxu1 %v7926_v9 }
 0x215   : > { %v10299_v44 = vadd.f32 %v10173_v59, %v1730_v10  ;;  %v13410_v59 = vld [vmem:[#allocation63_spill] sm:$0xff]  ;;  %v13419_v10 = vld [vmem:[#allocation65_spill] sm:$0xff] }
 0x216   : > { %v10302_v60 = vadd.f32 %v10156_v61, %v1722_v24  ;;  %v7923_v61 = vld [vmem:[#allocation8 + $0x100] sm:$0xff]  }
 0x217   : > { %6728 = vmatprep.subr.bf16.mxu0 %v7923_v61 }
 0x218   : > { %v7178_v55 = vpop.f32.mrb[88].mxu0  ;;  %6729 = vmatpush3.bf16.msra.mxu0 %v7924_v48 }
 0x219   : > { %v1743_v46 = vadd.f32 %v7178_v55, %v10184_v6  ;;  %v1734_v21 = vpop.f32.mrb[89].mxu0 }
 0x21a   : > { %v1735_v38 = vadd.f32 %v10176_v12, %v1734_v21  ;;  %v7179_v25 = vpop.f32.mrb[90].mxu0 }
 0x21b   : > { %v10307_v47 = vadd.f32 %v10188_v49, %v1743_v46  ;;  %v1746_v36 = vadd.f32 %v7179_v25, %v10186_v23  ;;  %v1737_v1 = vpop.f32.mrb[91].mxu0  ;;  %v13413_v23 = vld [vmem:[#allocation58_spill] sm:$0xff] }
 0x21c   : > { %v10311_v34 = vadd.f32 %v10180_v51, %v1735_v38  ;;  %v1738_v52 = vadd.f32 %v13410_v59, %v1737_v1 }
 0x21d   : > { %v10315_v6 = vadd.f32 %v13411_v50, %v1746_v36 }
 0x21e   : > { %v10318_v12 = vadd.f32 %v13412_v3, %v1738_v52 }
 0x220   : > { %v7182_v49 = vpop.f32.mrb[92].mxu0 }
 0x221   : > { %v1759_v14 = vadd.f32 %v7182_v49, %v13413_v23  ;;  %v1750_v51 = vpop.f32.mrb[93].mxu0 }
 0x222   : > { %v1751_v29 = vadd.f32 %v13414_v16, %v1750_v51  ;;  %v7183_v2 = vpop.f32.mrb[94].mxu0 }
 0x223   : > { %v10323_v57 = vadd.f32 %v10204_v33, %v1759_v14  ;;  %v1762_v53 = vadd.f32 %v7183_v2, %v13415_v7  ;;  %v1753_v39 = vpop.f32.mrb[95].mxu0 }
 0x224   : > { %v10327_v35 = vadd.f32 %v13416_v62, %v1751_v29  ;;  %v1754_v27 = vadd.f32 %v13417_v58, %v1753_v39 }
 0x225   : > { %v10331_v42 = vadd.f32 %v13418_v22, %v1762_v53 }
 0x226   : > { %v10334_v40 = vadd.f32 %v13419_v10, %v1754_v27 }
 0x228   : > { %v6608_v24 = vpop.f32.mrb[96].mxu0 }
 0x229   : > { %v6609_v33 = vpop.f32.mrb[97].mxu0 }
 0x22a   : > { %v6610_v46 = vadd.f32 %v6609_v33, %v6608_v24  ;;  %v6611_v21 = vpop.f32.mrb[98].mxu0 }
 0x22b   : > { %v6612_v25 = vpop.f32.mrb[99].mxu0 }
 0x22c   : > { %v7250_v55 = vpop.f32.mrb[64].mxu1  ;;  %v7430_v36 = vadd.f32 %v6610_v46, %v10215_v20  ;;  %v6613_v59 = vadd.f32 %v6612_v25, %v6611_v21 }
 0x22d   : > { %v3003_v38 = vpop.f32.mrb[65].mxu1 }
 0x22e   : > { %v7251_v1 = vpop.f32.mrb[66].mxu1  ;;  %v10337_v61 = vadd.f32 %v7430_v36, %v3003_v38  ;;  %v7438_v48 = vadd.f32 %v6613_v59, %v10222_v31 }
 0x22f   : > { %v3006_v52 = vpop.f32.mrb[67].mxu1 }
 0x230   : > { %v10340_v41 = vadd.f32 %v7438_v48, %v3006_v52  ;;  %v6614_v50 = vpop.f32.mrb[100].mxu0 }
 0x231   : > { %v6615_v3 = vpop.f32.mrb[101].mxu0 }
 0x232   : > { %v6616_v23 = vadd.f32 %v6615_v3, %v6614_v50  ;;  %v6617_v14 = vpop.f32.mrb[102].mxu0 }
 0x233   : > { %v6618_v16 = vpop.f32.mrb[103].mxu0 }
 0x234   : > { %v7254_v49 = vpop.f32.mrb[68].mxu1  ;;  %v7426_v29 = vadd.f32 %v6616_v23, %v10211_v28  ;;  %v6619_v20 = vadd.f32 %v6618_v16, %v6617_v14  ;;  %v3200_v14 = vmul.f32 %v10340_v41, %v10340_v41 }
 0x235   : > { %v3019_v51 = vpop.f32.mrb[69].mxu1 }
 0x236   : > { %v7255_v2 = vpop.f32.mrb[70].mxu1  ;;  %v10343_v53 = vadd.f32 %v7426_v29, %v7250_v55  ;;  %v7434_v39 = vadd.f32 %v6619_v20, %v10219_v19  ;;  %v3199_v29 = vmul.f32 %v10337_v61, %v10337_v61 }
 0x237   : > { %v3022_v7 = vpop.f32.mrb[71].mxu1 }
 0x238   : > { %v10346_v62 = vadd.f32 %v7434_v39, %v7251_v1  ;;  %v6620_v31 = vpop.f32.mrb[104].mxu0  ;;  %v3201_v20 = vmul.f32 %v10343_v53, %v10343_v53 }
 0x239   : > { %v6621_v58 = vpop.f32.mrb[105].mxu0 }
 0x23a   : > { %v6622_v9 = vadd.f32 %v6621_v58, %v6620_v31  ;;  %v6623_v22 = vpop.f32.mrb[106].mxu0  ;;  %v3231_v31 = vadd.f32 %v3200_v14, %v3199_v29 }
 0x23b   : > { %v6624_v24 = vpop.f32.mrb[107].mxu0 }
 0x23c   : > { %v10348_v27 = vpop.f32.mrb[72].mxu1  ;;  %v7446_v33 = vadd.f32 %v6622_v9, %v10231_v15  ;;  %v6625_v46 = vadd.f32 %v6624_v24, %v6623_v22  ;;  %v3232_v24 = vadd.f32 %v3231_v31, %v3201_v20 }
 0x23d   : > { %v3035_v10 = vpop.f32.mrb[73].mxu1 }
 0x23e   : > { %v10351_v28 = vpop.f32.mrb[74].mxu1  ;;  %v10353_v55 = vadd.f32 %v7446_v33, %v3019_v51  ;;  %v7454_v19 = vadd.f32 %v6625_v46, %v10238_v11  ;;  %v3202_v33 = vmul.f32 %v10346_v62, %v10346_v62 }
 0x23f   : > { %v3038_v21 = vpop.f32.mrb[75].mxu1 }
 0x240   : > { %v10356_v38 = vadd.f32 %v7454_v19, %v3022_v7  ;;  %v6626_v25 = vpop.f32.mrb[108].mxu0  ;;  %v3233_v29 = vadd.f32 %v3232_v24, %v3202_v33 }
 0x241   : > { %v6627_v36 = vpop.f32.mrb[109].mxu0 }
 0x242   : > { %v6628_v59 = vadd.f32 %v6627_v36, %v6626_v25  ;;  %v6629_v52 = vpop.f32.mrb[110].mxu0  ;;  %v3204_v31 = vmul.f32 %v10356_v38, %v10356_v38 }
 0x243   : > { %v6630_v50 = vpop.f32.mrb[111].mxu0 }
 0x244   : > { %v10358_v1 = vpop.f32.mrb[76].mxu1  ;;  %v7442_v15 = vadd.f32 %v6628_v59, %v10227_v5  ;;  %v6631_v23 = vadd.f32 %v6630_v50, %v6629_v52  ;;  %v3162_v5 = vadd.f32 %v10340_v41, %v10337_v61  ;;  %v3203_v59 = vmul.f32 %v10353_v55, %v10353_v55  ;;  %v7927_v50 = vld [vmem:[#allocation8 + $0x108] sm:$0xff]  }
 0x245   : > { %v10360_v48 = vpop.f32.mrb[77].mxu1  ;;  %6730 = vmatprep.subr.bf16.mxu0 %v7927_v50 }
 0x246   : > { %v10363_v3 = vpop.f32.mrb[78].mxu1  ;;  %v10369_v51 = vadd.f32 %v7442_v15, %v7254_v49  ;;  %v7450_v16 = vadd.f32 %v6631_v23, %v10235_v43  ;;  %v3163_v9 = vadd.f32 %v10343_v53, %v3162_v5 }
 0x247   : > { %v10367_v11 = vpop.f32.mrb[79].mxu1 }
 0x248   : > { %v10378_v7 = vadd.f32 %v7450_v16, %v7255_v2  ;;  %v6632_v39 = vpop.f32.mrb[112].mxu0  ;;  %v3164_v15 = vadd.f32 %v10346_v62, %v3163_v9  ;;  %v7928_v16 = vld [vmem:[#allocation8 + $0xc8] sm:$0xff]   ;;  %v3205_v24 = vmul.f32 %v10369_v51, %v10369_v51 }
 0x249   : > { %v6633_v58 = vpop.f32.mrb[113].mxu0  ;;  %6731 = vmatpush3.bf16.msra.mxu0 %v7928_v16  ;;  %v7935_v16 = vld [vmem:[#allocation8 + $0x118] sm:$0xff]  }
 0x24a   : > { %13420 = vst [vmem:[#allocation69_spill] sm:$0xff] %v10378_v7  ;;  %v6634_v22 = vadd.f32 %v6633_v58, %v6632_v39  ;;  %v6635_v43 = vpop.f32.mrb[114].mxu0  ;;  %v3234_v39 = vadd.f32 %v3233_v29, %v3203_v59 }
 0x24b   : > { %v6636_v19 = vpop.f32.mrb[115].mxu0 }
 0x24c   : > { %v10381_v49 = vpop.f32.mrb[80].mxu1  ;;  %v7462_v25 = vadd.f32 %v6634_v22, %v10247_v45  ;;  %v6637_v36 = vadd.f32 %v6636_v19, %v6635_v43  ;;  %v3165_v45 = vadd.f32 %v10353_v55, %v3164_v15  ;;  %v7931_v22 = vld [vmem:[#allocation8 + $0x110] sm:$0xff]   ;;  %v3235_v15 = vadd.f32 %v3234_v39, %v3204_v31 }
 0x24d   : > { %v10385_v46 = vpop.f32.mrb[81].mxu1  ;;  %v7932_v19 = vld [vmem:[#allocation8 + $0xd0] sm:$0xff]   ;;  %6732 = vmatprep.subr.bf16.mxu0 %v7931_v22  ;;  %v7936_v22 = vld [vmem:[#allocation8 + $0xd8] sm:$0xff]  }
 0x24e   : > { %v10388_v2 = vpop.f32.mrb[82].mxu1  ;;  %v10395_v23 = vadd.f32 %v7462_v25, %v3035_v10  ;;  %v7470_v14 = vadd.f32 %v6637_v36, %v10254_v30  ;;  %v7929_v30 = vld [vmem:[#allocation8 + $0x150] sm:$0xff]   ;;  %v3166_v25 = vadd.f32 %v10356_v38, %v3165_v45  ;;  %6733 = vmatpush3.bf16.msra.mxu0 %v7932_v19  ;;  %v7930_v45 = vld [vmem:[#allocation8 + $0x158] sm:$0xff]  }
 0x24f   : > { %v10392_v52 = vpop.f32.mrb[83].mxu1  ;;  %7284 = vmatprep.subr.bf16.mxu1 %v7929_v30  ;;  %6734 = vmatprep.subr.bf16.mxu0 %v7935_v16 }
 0x250   : > { %13421 = vst [vmem:[#allocation72_spill] sm:$0xff] %v10395_v23  ;;  %v10399_v20 = vadd.f32 %v7470_v14, %v3038_v21  ;;  %v6638_v5 = vpop.f32.mrb[116].mxu0  ;;  %7285 = vmatpush3.bf16.msra.mxu1 %v7929_v30  ;;  %v3167_v29 = vadd.f32 %v10369_v51, %v3166_v25  ;;  %v7937_v30 = vld [vmem:[#allocation8 + $0x120] sm:$0xff]  }
 0x251   : > { %v6639_v58 = vpop.f32.mrb[117].mxu0  ;;  %7286 = vmatprep.subr.bf16.mxu1 %v7930_v45  ;;  %v7933_v25 = vld [vmem:[#allocation8 + $0x160] sm:$0xff]  }
 0x252   : > { %v6640_v10 = vadd.f32 %v6639_v58, %v6638_v5  ;;  %v6641_v43 = vpop.f32.mrb[118].mxu0  ;;  %6735 = vmatpush3.bf16.msra.mxu0 %v7936_v22 }
 0x253   : > { %v6642_v21 = vpop.f32.mrb[119].mxu0  ;;  %6736 = vmatprep.subr.bf16.mxu0 %v7937_v30 }
 0x254   : > { %v10403_v9 = vpop.f32.mrb[84].mxu1  ;;  %v7458_v36 = vadd.f32 %v6640_v10, %v10243_v18  ;;  %v6643_v50 = vadd.f32 %v6642_v21, %v6641_v43  ;;  %v3236_v18 = vadd.f32 %v3235_v15, %v3205_v24  ;;  %v3206_v10 = vmul.f32 %v10378_v7, %v10378_v7  ;;  %7287 = vmatpush3.bf16.msra.mxu1 %v7930_v45 }
 0x255   : > { %v10407_v33 = vpop.f32.mrb[85].mxu1  ;;  %v3207_v43 = vmul.f32 %v10395_v23, %v10395_v23  ;;  %7288 = vmatprep.subr.bf16.mxu1 %v7933_v25 }
 0x256   : > { %v10411_v59 = vpop.f32.mrb[86].mxu1  ;;  %v10417_v5 = vadd.f32 %v7458_v36, %v10348_v27  ;;  %v7466_v58 = vadd.f32 %v6643_v50, %v10251_v0  ;;  %v3168_v0 = vadd.f32 %v10378_v7, %v3167_v29  ;;  %v7938_v36 = vld [vmem:[#allocation8 + $0xe0] sm:$0xff]   ;;  %v3237_v50 = vadd.f32 %v3236_v18, %v3206_v10  ;;  %v7940_v18 = vld [vmem:[#allocation8 + $0x128] sm:$0xff]  }
 0x257   : > { %v10413_v14 = vpop.f32.mrb[87].mxu1  ;;  %6737 = vmatpush3.bf16.msra.mxu0 %v7938_v36 }
 0x258   : > { %v10423_v39 = vadd.f32 %v7466_v58, %v10351_v28  ;;  %v6644_v31 = vpop.f32.mrb[120].mxu0  ;;  %v3169_v16 = vadd.f32 %v10395_v23, %v3168_v0  ;;  %v3238_v29 = vadd.f32 %v3237_v50, %v3207_v43  ;;  %7289 = vmatpush3.bf16.msra.mxu1 %v7933_v25  ;;  %v7934_v0 = vld [vmem:[#allocation8 + $0x168] sm:$0xff]   ;;  %6738 = vmatprep.subr.bf16.mxu0 %v7940_v18  ;;  %v7939_v23 = vld [vmem:[#allocation8 + $0x170] sm:$0xff]  }
 0x259   : > { %v6645_v27 = vpop.f32.mrb[121].mxu0  ;;  %7290 = vmatprep.subr.bf16.mxu1 %v7934_v0  ;;  %v7943_v18 = vld [vmem:[#allocation8 + $0xf0] sm:$0xff]  }
 0x25a   : > { %v6646_v24 = vadd.f32 %v6645_v27, %v6644_v31  ;;  %v6647_v21 = vpop.f32.mrb[122].mxu0  ;;  %v3208_v31 = vmul.f32 %v10399_v20, %v10399_v20  ;;  %v3170_v43 = vadd.f32 %v10399_v20, %v3169_v16 }
 0x25b   : > { %v6648_v15 = vpop.f32.mrb[123].mxu0 }
 0x25c   : > { %v10428_v19 = vpop.f32.mrb[88].mxu1  ;;  %v7478_v58 = vadd.f32 %v6646_v24, %v10263_v56  ;;  %v6649_v45 = vadd.f32 %v6648_v15, %v6647_v21  ;;  %v7941_v56 = vld [vmem:[#allocation8 + $0xe8] sm:$0xff]   ;;  %v3209_v24 = vmul.f32 %v10417_v5, %v10417_v5  ;;  %v3239_v25 = vadd.f32 %v3238_v29, %v3208_v31  ;;  %7291 = vmatpush3.bf16.msra.mxu1 %v7934_v0 }
 0x25d   : > { %v10430_v28 = vpop.f32.mrb[89].mxu1  ;;  %6739 = vmatpush3.bf16.msra.mxu0 %v7941_v56  ;;  %7292 = vmatprep.subr.bf16.mxu1 %v7939_v23 }
 0x25e   : > { %v10434_v22 = vpop.f32.mrb[90].mxu1  ;;  %v10441_v10 = vadd.f32 %v7478_v58, %v10360_v48  ;;  %v7486_v30 = vadd.f32 %v6649_v45, %v10270_v26  ;;  %v7942_v48 = vld [vmem:[#allocation8 + $0x130] sm:$0xff]   ;;  %v3171_v26 = vadd.f32 %v10417_v5, %v3170_v43  ;;  %v3240_v7 = vadd.f32 %v3239_v25, %v3209_v24  ;;  %v7945_v43 = vld [vmem:[#allocation8 + $0x138] sm:$0xff]  }
 0x25f   : > { %v10438_v27 = vpop.f32.mrb[91].mxu1  ;;  %6740 = vmatprep.subr.bf16.mxu0 %v7942_v48  ;;  %v7946_v48 = vld [vmem:[#allocation8 + $0xf8] sm:$0xff]  }
 0x260   : > { %v10448_v21 = vadd.f32 %v7486_v30, %v10367_v11  ;;  %v6650_v36 = vpop.f32.mrb[124].mxu0  ;;  %v3210_v30 = vmul.f32 %v10423_v39, %v10423_v39  ;;  %7293 = vmatpush3.bf16.msra.mxu1 %v7939_v23  ;;  %v3172_v24 = vadd.f32 %v10423_v39, %v3171_v26 }
 0x261   : > { %v6651_v50 = vpop.f32.mrb[125].mxu0  ;;  %6741 = vmatpush3.bf16.msra.mxu0 %v7943_v18 }
 0x262   : > { %v6652_v58 = vadd.f32 %v6651_v50, %v6650_v36  ;;  %v6653_v45 = vpop.f32.mrb[126].mxu0  ;;  %v3211_v36 = vmul.f32 %v10441_v10, %v10441_v10  ;;  %6742 = vmatprep.subr.bf16.mxu0 %v7945_v43 }
 0x263   : > { %v6654_v11 = vpop.f32.mrb[127].mxu0 }
 0x264   : > { %v10451_v15 = vpop.f32.mrb[92].mxu1  ;;  %v7474_v29 = vadd.f32 %v6652_v58, %v10259_v8  ;;  %v6655_v0 = vadd.f32 %v6654_v11, %v6653_v45  ;;  %v7944_v8 = vld [vmem:[#allocation8 + $0x178] sm:$0xff]   ;;  %v3241_v58 = vadd.f32 %v3240_v7, %v3210_v30  ;;  %v3173_v45 = vadd.f32 %v10441_v10, %v3172_v24  ;;  %v10479_v24 = vld [vmem:[#allocation8 + $0x80] sm:$0xff]  }
 0x265   : > { %v10453_v16 = vpop.f32.mrb[93].mxu1  ;;  %7294 = vmatprep.subr.bf16.mxu1 %v7944_v8  ;;  %6743 = vmatpush3.bf16.msra.mxu0 %v7946_v48 }
 0x266   : > { %v10458_v31 = vpop.f32.mrb[94].mxu1  ;;  %v10466_v25 = vadd.f32 %v7474_v29, %v10358_v1  ;;  %v7482_v50 = vadd.f32 %v6655_v0, %v10267_v32  ;;  %7295 = vmatpush3.bf16.msra.mxu1 %v7944_v8  ;;  %v3242_v11 = vadd.f32 %v3241_v58, %v3211_v36  ;;  %v3212_v1 = vmul.f32 %v10448_v21, %v10448_v21 }
 0x267   : > { %v10460_v56 = vpop.f32.mrb[95].mxu1  ;;  %v3174_v43 = vadd.f32 %v10448_v21, %v3173_v45  ;;  %7328 = vmatprep.subr.bf16.mxu1 %v10479_v24 }
 0x268   : > { %v10471_v18 = vadd.f32 %v7482_v50, %v10363_v3  ;;  %v6656_v23 = vpop.f32.mrb[128].mxu0  ;;  %v3213_v7 = vmul.f32 %v10466_v25, %v10466_v25  ;;  %v3243_v50 = vadd.f32 %v3242_v11, %v3212_v1 }
 0x269   : > { %v6657_v26 = vpop.f32.mrb[129].mxu0  ;;  %v3175_v8 = vadd.f32 %v10466_v25, %v3174_v43 }
 0x26a   : > { %v6658_v29 = vadd.f32 %v6657_v26, %v6656_v23  ;;  %v6659_v32 = vpop.f32.mrb[130].mxu0  ;;  %v3244_v58 = vadd.f32 %v3243_v50, %v3213_v7  ;;  %v3214_v45 = vmul.f32 %v10471_v18, %v10471_v18 }
 0x26b   : > { %v6660_v0 = vpop.f32.mrb[131].mxu0  ;;  %v3176_v11 = vadd.f32 %v10471_v18, %v3175_v8 }
 0x26c   : > { %v7494_v3 = vadd.f32 %v6658_v29, %v10279_v17  ;;  %v6661_v30 = vadd.f32 %v6660_v0, %v6659_v32 }
 0x26e   : > { %v10483_v36 = vadd.f32 %v7494_v3, %v10385_v46  ;;  %v7502_v48 = vadd.f32 %v6661_v30, %v10286_v13  ;;  %v3245_v13 = vadd.f32 %v3244_v58, %v3214_v45 }
 0x270   : > { %v10490_v23 = vadd.f32 %v7502_v48, %v10392_v52  ;;  %v6662_v17 = vpop.f32.mrb[132].mxu0  ;;  %v3215_v1 = vmul.f32 %v10483_v36, %v10483_v36  ;;  %v3177_v0 = vadd.f32 %v10483_v36, %v3176_v11 }
 0x271   : > { %v6663_v26 = vpop.f32.mrb[133].mxu0 }
 0x272   : > { %v6664_v46 = vadd.f32 %v6663_v26, %v6662_v17  ;;  %v6665_v29 = vpop.f32.mrb[134].mxu0  ;;  %v3246_v3 = vadd.f32 %v3245_v13, %v3215_v1  ;;  %v3216_v52 = vmul.f32 %v10490_v23, %v10490_v23  ;;  %v3178_v8 = vadd.f32 %v10490_v23, %v3177_v0 }
 0x273   : > { %v6666_v32 = vpop.f32.mrb[135].mxu0 }
 0x274   : > { %v7490_v43 = vadd.f32 %v6664_v46, %v10275_v4  ;;  %v6667_v7 = vadd.f32 %v6666_v32, %v6665_v29  ;;  %v3247_v17 = vadd.f32 %v3246_v3, %v3216_v52 }
 0x276   : > { %v10500_v30 = vadd.f32 %v7490_v43, %v10381_v49  ;;  %v7498_v50 = vadd.f32 %v6667_v7, %v10283_v63 }
 0x278   : > { %v3217_v48 = vmul.f32 %v10500_v30, %v10500_v30  ;;  %v10507_v58 = vadd.f32 %v7498_v50, %v10388_v2  ;;  %v6668_v45 = vpop.f32.mrb[136].mxu0  ;;  %v3179_v26 = vadd.f32 %v10500_v30, %v3178_v8 }
 0x279   : > { %v6669_v4 = vpop.f32.mrb[137].mxu0 }
 0x27a   : > { %v6670_v11 = vadd.f32 %v6669_v4, %v6668_v45  ;;  %v6671_v1 = vpop.f32.mrb[138].mxu0  ;;  %v3248_v49 = vadd.f32 %v3247_v17, %v3217_v48  ;;  %v3218_v63 = vmul.f32 %v10507_v58, %v10507_v58  ;;  %v3180_v13 = vadd.f32 %v10507_v58, %v3179_v26 }
 0x27b   : > { %v6672_v46 = vpop.f32.mrb[139].mxu0 }
 0x27c   : > { %v7510_v29 = vadd.f32 %v6670_v11, %v10295_v37  ;;  %v6673_v32 = vadd.f32 %v6672_v46, %v6671_v1  ;;  %v3249_v43 = vadd.f32 %v3248_v49, %v3218_v63 }
 0x27e   : > { %v10515_v2 = vadd.f32 %v7510_v29, %v10407_v33  ;;  %v7518_v0 = vadd.f32 %v6673_v32, %v10302_v60 }
 0x280   : > { %v3181_v7 = vadd.f32 %v10515_v2, %v3180_v13  ;;  %v3219_v3 = vmul.f32 %v10515_v2, %v10515_v2  ;;  %v10522_v52 = vadd.f32 %v7518_v0, %v10413_v14  ;;  %v6674_v50 = vpop.f32.mrb[140].mxu0 }
 0x281   : > { %v6675_v8 = vpop.f32.mrb[141].mxu0 }
 0x282   : > { %v3250_v37 = vadd.f32 %v3249_v43, %v3219_v3  ;;  %v3182_v48 = vadd.f32 %v10522_v52, %v3181_v7  ;;  %v3220_v33 = vmul.f32 %v10522_v52, %v10522_v52  ;;  %v6676_v45 = vadd.f32 %v6675_v8, %v6674_v50  ;;  %v6677_v4 = vpop.f32.mrb[142].mxu0 }
 0x283   : > { %v6678_v60 = vpop.f32.mrb[143].mxu0 }
 0x284   : > { %v3251_v17 = vadd.f32 %v3250_v37, %v3220_v33  ;;  %v7506_v26 = vadd.f32 %v6676_v45, %v10291_v54  ;;  %v6679_v11 = vadd.f32 %v6678_v60, %v6677_v4 }
 0x286   : > { %v10529_v1 = vadd.f32 %v7506_v26, %v10403_v9  ;;  %v7514_v14 = vadd.f32 %v6679_v11, %v10299_v44 }
 0x288   : > { %v3183_v46 = vadd.f32 %v10529_v1, %v3182_v48  ;;  %v3221_v49 = vmul.f32 %v10529_v1, %v10529_v1  ;;  %v10536_v63 = vadd.f32 %v7514_v14, %v10411_v59  ;;  %v6680_v29 = vpop.f32.mrb[144].mxu0 }
 0x289   : > { %v6681_v32 = vpop.f32.mrb[145].mxu0 }
 0x28a   : > { %v3252_v13 = vadd.f32 %v3251_v17, %v3221_v49  ;;  %v3184_v0 = vadd.f32 %v10536_v63, %v3183_v46  ;;  %v3222_v54 = vmul.f32 %v10536_v63, %v10536_v63  ;;  %v6682_v9 = vadd.f32 %v6681_v32, %v6680_v29  ;;  %v6683_v43 = vpop.f32.mrb[146].mxu0 }
 0x28b   : > { %v6684_v7 = vpop.f32.mrb[147].mxu0 }
 0x28c   : > { %v3253_v44 = vadd.f32 %v3252_v13, %v3222_v54  ;;  %v7526_v3 = vadd.f32 %v6682_v9, %v10311_v34  ;;  %v6685_v50 = vadd.f32 %v6684_v7, %v6683_v43 }
 0x28e   : > { %v10543_v8 = vadd.f32 %v7526_v3, %v10430_v28  ;;  %v7534_v59 = vadd.f32 %v6685_v50, %v10318_v12 }
 0x290   : > { %v3185_v37 = vadd.f32 %v10543_v8, %v3184_v0  ;;  %v3223_v48 = vmul.f32 %v10543_v8, %v10543_v8  ;;  %v10550_v33 = vadd.f32 %v7534_v59, %v10438_v27  ;;  %v6686_v45 = vpop.f32.mrb[148].mxu0 }
 0x291   : > { %v6687_v4 = vpop.f32.mrb[149].mxu0 }
 0x292   : > { %v3254_v60 = vadd.f32 %v3253_v44, %v3223_v48  ;;  %v3186_v17 = vadd.f32 %v10550_v33, %v3185_v37  ;;  %v3224_v34 = vmul.f32 %v10550_v33, %v10550_v33  ;;  %v6688_v28 = vadd.f32 %v6687_v4, %v6686_v45  ;;  %v6689_v26 = vpop.f32.mrb[150].mxu0 }
 0x293   : > { %v6690_v11 = vpop.f32.mrb[151].mxu0 }
 0x294   : > { %v3255_v12 = vadd.f32 %v3254_v60, %v3224_v34  ;;  %v7522_v14 = vadd.f32 %v6688_v28, %v10307_v47  ;;  %v6691_v46 = vadd.f32 %v6690_v11, %v6689_v26 }
 0x296   : > { %v10557_v49 = vadd.f32 %v7522_v14, %v10428_v19  ;;  %v7530_v27 = vadd.f32 %v6691_v46, %v10315_v6  ;;  %v7955_v46 = vld [vmem:[#allocation8 + $0x40] sm:$0xff]  }
 0x297   : > { %6864 = vmatprep.subr.bf16.mxu0 %v7955_v46 }
 0x298   : > { %v3187_v29 = vadd.f32 %v10557_v49, %v3186_v17  ;;  %v3225_v32 = vmul.f32 %v10557_v49, %v10557_v49  ;;  %v10564_v13 = vadd.f32 %v7530_v27, %v10434_v22  ;;  %v6692_v0 = vpop.f32.mrb[152].mxu0 }
 0x299   : > { %v6693_v54 = vpop.f32.mrb[153].mxu0 }
 0x29a   : > { %v3256_v9 = vadd.f32 %v3255_v12, %v3225_v32  ;;  %v3188_v43 = vadd.f32 %v10564_v13, %v3187_v29  ;;  %v3226_v47 = vmul.f32 %v10564_v13, %v10564_v13  ;;  %v6694_v19 = vadd.f32 %v6693_v54, %v6692_v0  ;;  %v6695_v7 = vpop.f32.mrb[154].mxu0 }
 0x29b   : > { %v6696_v44 = vpop.f32.mrb[155].mxu0 }
 0x29c   : > { %v3257_v6 = vadd.f32 %v3256_v9, %v3226_v47  ;;  %v7542_v3 = vadd.f32 %v6694_v19, %v10327_v35  ;;  %v6697_v50 = vadd.f32 %v6696_v44, %v6695_v7 }
 0x29e   : > { %v10571_v59 = vadd.f32 %v7542_v3, %v10453_v16  ;;  %v7550_v22 = vadd.f32 %v6697_v50, %v10334_v40 }
 0x2a0   : > { %v3189_v37 = vadd.f32 %v10571_v59, %v3188_v43  ;;  %v3227_v48 = vmul.f32 %v10571_v59, %v10571_v59  ;;  %v10578_v45 = vadd.f32 %v7550_v22, %v10460_v56  ;;  %v6698_v4 = vpop.f32.mrb[156].mxu0 }
 0x2a1   : > { %v6699_v60 = vpop.f32.mrb[157].mxu0 }
 0x2a2   : > { %v3258_v17 = vadd.f32 %v3257_v6, %v3227_v48  ;;  %v3190_v34 = vadd.f32 %v10578_v45, %v3189_v37  ;;  %v3228_v35 = vmul.f32 %v10578_v45, %v10578_v45  ;;  %v6700_v16 = vadd.f32 %v6699_v60, %v6698_v4  ;;  %v6701_v28 = vpop.f32.mrb[158].mxu0 }
 0x2a3   : > { %v6702_v26 = vpop.f32.mrb[159].mxu0 }
 0x2a4   : > { %v3259_v40 = vadd.f32 %v3258_v17, %v3228_v35  ;;  %v7538_v11 = vadd.f32 %v6700_v16, %v10323_v57  ;;  %v6703_v12 = vadd.f32 %v6702_v26, %v6701_v28 }
 0x2a6   : > { %v10585_v14 = vadd.f32 %v7538_v11, %v10451_v15  ;;  %v7546_v56 = vadd.f32 %v6703_v12, %v10331_v42 }
 0x2a8   : > { %v3191_v27 = vadd.f32 %v10585_v14, %v3190_v34  ;;  %v3229_v29 = vmul.f32 %v10585_v14, %v10585_v14  ;;  %v7547_v32 = vadd.f32 %v7546_v56, %v10458_v31 }
 0x2aa   : > { %v3260_v0 = vadd.f32 %v3259_v40, %v3229_v29  ;;  %v3192_v54 = vadd.f32 %v7547_v32, %v3191_v27  ;;  %v3230_v9 = vmul.f32 %v7547_v32, %v7547_v32 }
 0x2ac   : > { %v3193_v43 = vrot.slane %v3192_v54, 4  ;;  %v3261_v57 = vadd.f32 %v3260_v0, %v3230_v9 }
 0x2ae   : > { %v3194_v47 = vadd.f32 %v3193_v43, %v3192_v54  ;;  %v3262_v19 = vrot.slane %v3261_v57, 4 }
 0x2b0   : > { %v3195_v15 = vrot.slane %v3194_v47, 2  ;;  %v3263_v7 = vadd.f32 %v3262_v19, %v3261_v57 }
 0x2b2   : > { %v3196_v44 = vadd.f32 %v3195_v15, %v3194_v47  ;;  %v3264_v42 = vrot.slane %v3263_v7, 2 }
 0x2b4   : > { %v3197_v6 = vrot.slane %v3196_v44, 1  ;;  %v3265_v3 = vadd.f32 %v3264_v42, %v3263_v7 }
 0x2b6   : > { %v3198_v50 = vadd.f32 %v3197_v6, %v3196_v44  ;;  %v3266_v22 = vrot.slane %v3265_v3, 1 }
 0x2b8   : > { %v3267_v37 = vadd.f32 %v3266_v22, %v3265_v3  ;;  %v10592_v48 = vmul.f32 0.00390625, %v3198_v50 }
 0x2ba   : > { %v3269_v31 = vmul.f32 0.00390625, %v3267_v37  ;;  %v3270_v4 = vmul.f32 %v10592_v48, %v10592_v48  ;;  %v3304_v60 = vsub.f32 %v7547_v32, %v10592_v48  ;;  %v3293_v16 = vsub.f32 %v10515_v2, %v10592_v48 }
 0x2bb   : > { %v3294_v28 = vsub.f32 %v10522_v52, %v10592_v48  ;;  %v3295_v26 = vsub.f32 %v10529_v1, %v10592_v48  ;;  %v3296_v40 = vsub.f32 %v10536_v63, %v10592_v48  ;;  %v3297_v11 = vsub.f32 %v10543_v8, %v10592_v48 }
 0x2bc   : > { %v3271_v17 = vsub.f32 %v3269_v31, %v3270_v4  ;;  %v3298_v12 = vsub.f32 %v10550_v33, %v10592_v48  ;;  %v3299_v56 = vsub.f32 %v10557_v49, %v10592_v48  ;;  %v3300_v2 = vsub.f32 %v10564_v13, %v10592_v48 }
 0x2bd   : > { %v3301_v52 = vsub.f32 %v10571_v59, %v10592_v48  ;;  %v3302_v1 = vsub.f32 %v10578_v45, %v10592_v48  ;;  %v3303_v63 = vsub.f32 %v10585_v14, %v10592_v48  ;;  %v3273_v8 = vsub.f32 %v10337_v61, %v10592_v48  ;;  %v13422_v61 = vld [vmem:[#allocation69_spill] sm:$0xff] }
 0x2be   : > { %v3272_v34 = vmax.f32 %v3271_v17, 0.0  ;;  %v3274_v33 = vsub.f32 %v10340_v41, %v10592_v48  ;;  %v3275_v49 = vsub.f32 %v10343_v53, %v10592_v48  ;;  %v3276_v13 = vsub.f32 %v10346_v62, %v10592_v48  ;;  %v13423_v41 = vld [vmem:[#allocation72_spill] sm:$0xff] }
 0x2bf   : > { %v3277_v59 = vsub.f32 %v10353_v55, %v10592_v48  ;;  %v3278_v45 = vsub.f32 %v10356_v38, %v10592_v48  ;;  %v3279_v14 = vsub.f32 %v10369_v51, %v10592_v48  ;;  %v3280_v46 = vsub.f32 %v13422_v61, %v10592_v48 }
 0x2c0   : > { %v3305_v35 = vadd.f32 1e-05, %v3272_v34  ;;  %v3281_v27 = vsub.f32 %v13423_v41, %v10592_v48  ;;  %v3282_v53 = vsub.f32 %v10399_v20, %v10592_v48  ;;  %v3283_v62 = vsub.f32 %v10417_v5, %v10592_v48 }
 0x2c1   : > { %v3284_v55 = vsub.f32 %v10423_v39, %v10592_v48  ;;  %v3285_v38 = vsub.f32 %v10441_v10, %v10592_v48  ;;  %v3286_v51 = vsub.f32 %v10448_v21, %v10592_v48  ;;  %v3287_v29 = vsub.f32 %v10466_v25, %v10592_v48 }
 0x2c2   : > { %8026 = vrsqrt.f32 %v3305_v35  ;;  %v3288_v32 = vsub.f32 %v10471_v18, %v10592_v48  ;;  %v3289_v20 = vsub.f32 %v10483_v36, %v10592_v48  ;;  %v3290_v5 = vsub.f32 %v10490_v23, %v10592_v48 }
 0x2c3   : > { %v3291_v39 = vsub.f32 %v10500_v30, %v10592_v48  ;;  %v3292_v10 = vsub.f32 %v10507_v58, %v10592_v48 }
 0x2cc   : > { %v8027_v0 = vpop.eup %8026 }
 0x2cd   : > { %v3338_v21 = vmul.f32 %v8027_v0, %v3304_v60  ;;  %v3307_v54 = vmul.f32 %v8027_v0, %v3273_v8  ;;  %v3308_v9 = vmul.f32 %v8027_v0, %v3274_v33  ;;  %v3309_v25 = vmul.f32 %v8027_v0, %v3275_v49 }
 0x2ce   : > { %v3310_v43 = vmul.f32 %v8027_v0, %v3276_v13  ;;  %v3311_v57 = vmul.f32 %v8027_v0, %v3277_v59  ;;  %v3312_v18 = vmul.f32 %v8027_v0, %v3278_v45  ;;  %v3313_v47 = vmul.f32 %v8027_v0, %v3279_v14 }
 0x2cf   : > { %v10659_v19 = vmax.f32 %v3338_v21, 0.0  ;;  %v3314_v36 = vmul.f32 %v8027_v0, %v3280_v46  ;;  %v3315_v15 = vmul.f32 %v8027_v0, %v3281_v27  ;;  %v3316_v7 = vmul.f32 %v8027_v0, %v3282_v53 }
 0x2d0   : > { %v3317_v23 = vmul.f32 %v8027_v0, %v3283_v62  ;;  %v3318_v44 = vmul.f32 %v8027_v0, %v3284_v55  ;;  %v3319_v42 = vmul.f32 %v8027_v0, %v3285_v38  ;;  %v3320_v30 = vmul.f32 %v8027_v0, %v3286_v51 }
 0x2d1   : > { %13424 = vst [vmem:[#allocation21_spill] sm:$0xff] %v10659_v19  ;;  %v10662_v6 = vrot.slane %v10659_v19, 7  ;;  %v3321_v58 = vmul.f32 %v8027_v0, %v3287_v29  ;;  %v3322_v3 = vmul.f32 %v8027_v0, %v3288_v32  ;;  %v3323_v50 = vmul.f32 %v8027_v0, %v3289_v20 }
 0x2d2   : > { %v3324_v22 = vmul.f32 %v8027_v0, %v3290_v5  ;;  %v3325_v37 = vmul.f32 %v8027_v0, %v3291_v39  ;;  %v3326_v48 = vmul.f32 %v8027_v0, %v3292_v10  ;;  %v3327_v31 = vmul.f32 %v8027_v0, %v3293_v16 }
 0x2d3   : > { %13425 = vst [vmem:[#allocation23_spill] sm:$0xff] %v10662_v6  ;;  %v3328_v4 = vmul.f32 %v8027_v0, %v3294_v28  ;;  %v3329_v60 = vmul.f32 %v8027_v0, %v3295_v26  ;;  %v3330_v17 = vmul.f32 %v8027_v0, %v3296_v40  ;;  %v3331_v34 = vmul.f32 %v8027_v0, %v3297_v11 }
 0x2d4   : > { %v3332_v35 = vmul.f32 %v8027_v0, %v3298_v12  ;;  %v3333_v8 = vmul.f32 %v8027_v0, %v3299_v56  ;;  %v3334_v33 = vmul.f32 %v8027_v0, %v3300_v2  ;;  %v3335_v49 = vmul.f32 %v8027_v0, %v3301_v52 }
 0x2d5   : > { %v3336_v13 = vmul.f32 %v8027_v0, %v3302_v1  ;;  %v3337_v59 = vmul.f32 %v8027_v0, %v3303_v63  ;;  %v10664_v45 = vmax.f32 %v3307_v54, 0.0  ;;  %v10666_v14 = vmax.f32 %v3308_v9, 0.0 }
 0x2d6   : > { %v10668_v61 = vmax.f32 %v3309_v25, 0.0  ;;  %v10670_v46 = vmax.f32 %v3310_v43, 0.0  ;;  %v10672_v41 = vmax.f32 %v3311_v57, 0.0  ;;  %v10674_v16 = vmax.f32 %v3312_v18, 0.0 }
 0x2d7   : > { %v10676_v28 = vmax.f32 %v3313_v47, 0.0  ;;  %v10678_v26 = vmax.f32 %v3314_v36, 0.0  ;;  %v10680_v40 = vmax.f32 %v3315_v15, 0.0  ;;  %v10682_v11 = vmax.f32 %v3316_v7, 0.0 }
 0x2d8   : > { %v10684_v12 = vmax.f32 %v3317_v23, 0.0  ;;  %v10686_v56 = vmax.f32 %v3318_v44, 0.0  ;;  %v10688_v2 = vmax.f32 %v3319_v42, 0.0  ;;  %v10690_v52 = vmax.f32 %v3320_v30, 0.0  ;;  %v13450_v44 = vld [vmem:[#allocation73_spill] sm:$0xff] }
 0x2d9   : > { %v10692_v1 = vmax.f32 %v3321_v58, 0.0  ;;  %v10694_v63 = vmax.f32 %v3322_v3, 0.0  ;;  %v10696_v27 = vmax.f32 %v3323_v50, 0.0  ;;  %v10698_v53 = vmax.f32 %v3324_v22, 0.0 }
 0x2da   : > { %v10700_v62 = vmax.f32 %v3325_v37, 0.0  ;;  %v10702_v55 = vmax.f32 %v3326_v48, 0.0  ;;  %v10704_v38 = vmax.f32 %v3327_v31, 0.0  ;;  %v10706_v51 = vmax.f32 %v3328_v4, 0.0  ;;  %v13433_v4 = vld [vmem:[#allocation13_spill] sm:$0xff] }
 0x2db   : > { %v10708_v29 = vmax.f32 %v3329_v60, 0.0  ;;  %v10710_v32 = vmax.f32 %v3330_v17, 0.0  ;;  %v10712_v0 = vmax.f32 %v3331_v34, 0.0  ;;  %v10714_v20 = vmax.f32 %v3332_v35, 0.0 }
 0x2dc   : > { %v10716_v5 = vmax.f32 %v3333_v8, 0.0  ;;  %v10718_v39 = vmax.f32 %v3334_v33, 0.0  ;;  %v10720_v10 = vmax.f32 %v3335_v49, 0.0  ;;  %v10722_v21 = vmax.f32 %v3336_v13, 0.0 }
 0x2dd   : > { %13426 = vst [vmem:[#allocation54_spill] sm:$0xff] %v10712_v0  ;;  %v10724_v54 = vmax.f32 %v3337_v59, 0.0  ;;  %v10727_v9 = vrot.slane %v10668_v61, 7  ;;  %v10730_v25 = vrot.slane %v10670_v46, 7  ;;  %v10733_v43 = vrot.slane %v10664_v45, 7 }
 0x2de   : > { %v3458_v57 = vrot.slane %v10666_v14, 7  ;;  %v12927_v18 = vrot.slane %v10672_v41, 7  ;;  %v12926_v47 = vrot.slane %v10674_v16, 7  ;;  %v12930_v15 = vrot.slane %v10678_v26, 7 }
 0x2df   : > { %13427 = vst [vmem:[#allocation48_spill] sm:$0xff] %v10724_v54  ;;  %13428 = vst [vmem:[#allocation49_spill] sm:$0xff] %v10727_v9  ;;  %v10761_v13 = vrot.slane %v10720_v10, 7  ;;  %v10764_v59 = vrot.slane %v10722_v21, 7  ;;  %v10770_v17 = vsel %vm13370_vm15, %v10727_v9, %v10730_v25  ;;  %v10773_v35 = vrot.slane %v10670_v46, 1 }
 0x2e0   : > { %13429 = vst [vmem:[#allocation55_spill] sm:$0xff] %v10730_v25  ;;  %13430 = vst [vmem:[#allocation52_spill] sm:$0xff] %v10733_v43  ;;  %v10776_v8 = vrot.slane %v10664_v45, 1  ;;  %v3522_v33 = vrot.slane %v10666_v14, 1  ;;  %v3525_v49 = vrot.slane %v10672_v41, 1  ;;  %v10782_v34 = vpack.c.bf16 %v10666_v14, %v10664_v45 }
 0x2e1   : > { %13431 = vst [vmem:[#allocation67_spill] sm:$0xff] %v10761_v13  ;;  %13432 = vst [vmem:[#allocation68_spill] sm:$0xff] %v10764_v59  ;;  %v10787_v60 = vsel %vm13436_vm6, %v10733_v43, %v3458_v57  ;;  %v10794_v31 = vrot.slane %v10668_v61, 1  ;;  %vm13440_vm8 = vcmp.lt.s32.totalorder %v13433_v4, 7  ;;  %v10803_v45 = vpack.c.bf16 %v10670_v46, %v10668_v61 }
 0x2e2   : > { %13434 = vst [vmem:[#allocation26_spill] sm:$0xff] %v10770_v17  ;;  %13435 = vst [vmem:[#allocation70_spill] sm:$0xff] %v10782_v34  ;;  %v10799_v22 = vsel %vm13440_vm8, %v10776_v8, %v3522_v33  ;;  %4061 = vmatprep.mubr.bf16.mxu0 %v10782_v34  ;;  %v3526_v23 = vrot.slane %v10674_v16, 1  ;;  %v3527_v36 = vrot.slane %v10676_v28, 1  ;;  %v7956_v34 = vld [vmem:[#allocation8] sm:$0xff]  }
 0x2e3   : > { %13437 = vst [vmem:[#allocation16_spill] sm:$0xff] %v10787_v60  ;;  %vm13438_vm15 = vmmov %vm13436_vm6 }
 0x2e4   : > { %v3734_v48 = vsel %vm13438_vm15, %v10662_v6, %v10733_v43  ;;  %13439 = vst [vmem:[#allocation53_spill] sm:$0xff] %v10794_v31  ;;  %13441 = vst [vmem:[#allocation43_spill] sm:$0xff] %v10799_v22  ;;  %v10816_v37 = vsel %vm13438_vm15, %v12927_v18, %v12926_v47  ;;  %vm13451_vm15 = vnez %v13450_v44  ;;  %v13468_v47 = vrot.slane %v10682_v11, 7 }
 0x2e5   : > { %13442 = vst [vmem:[#allocation66_spill] sm:$0xff] %v10803_v45  ;;  %vm13443_vm6 = vmmov %vm13440_vm8  ;;  %v3740_v61 = vsel %vm8431_vm2, %v10799_v22, %v3734_v48  ;;  %v10931_v44 = vpack.c.bf16 %v10678_v26, %v10676_v28  ;;  %v13487_v43 = vrot.slane %v10688_v2, 7 }
 0x2e6   : > { %v10808_v14 = vsel %vm13443_vm6, %v10773_v35, %v3525_v49  ;;  %13445 = vst [vmem:[#allocation50_spill] sm:$0xff] %v10816_v37  ;;  %vm13447_vm8 = vmmov %vm13443_vm6  ;;  %v3578_v50 = vsel %vm13443_vm6, %v3522_v33, %v10794_v31  ;;  %v3772_v58 = vpack.c.bf16 %v10787_v60, %v3740_v61 }
 0x2e7   : > { %13444 = vst [vmem:[#allocation61_spill] sm:$0xff] %v10808_v14  ;;  %v10826_v46 = vsel %vm13447_vm8, %v10794_v31, %v10773_v35  ;;  %v3791_v30 = vsel %vm9107_vm1, %v10770_v17, %v10808_v14  ;;  %v3634_v48 = vsel %vm9107_vm1, %v10787_v60, %v3578_v50  ;;  %v3789_v42 = vsel %vm13451_vm15, %v10787_v60, %v3578_v50 }
 0x2e8   : > { %13448 = vst [vmem:[#allocation63_spill] sm:$0xff] %v10826_v46  ;;  %v3821_v18 = vpack.c.bf16 %v3791_v30, %v10826_v46  ;;  %v10844_v7 = vpack.c.bf16 %v3634_v48, %v10799_v22  ;;  %v3820_v33 = vpack.c.bf16 %v3789_v42, %v10799_v22  ;;  %4062 = vmatmul.mubr.bf16.vlgmr.msra.gmra.mrb[160].mxu0 %v3772_v58  ;;  %vm13453_vm8 = vcmp.lt.s32.totalorder %v13433_v4, 1  ;;  %v7948_v58 = vld [vmem:[#allocation8 + $0x88] sm:$0xff]  }
 0x2e9   : > { %v10852_v61 = vsel %vm13453_vm8, %v3458_v57, %v10727_v9  ;;  %v10856_v50 = vpack.c.bf16 %v10674_v16, %v10672_v41  ;;  %v13456_v30 = vrot.slane %v10676_v28, 7  ;;  %vm13457_vm6 = vmmov %vm13453_vm8  ;;  %v3528_v48 = vrot.slane %v10678_v26, 1  ;;  %4069 = vmatprep.mubr.bf16.mxu0 %v10803_v45  ;;  %6865 = vmatpush3.bf16.msra.mxu0 %v7956_v34  ;;  %13477 = vst [vmem:[#allocation72_spill] sm:$0xff] %v10931_v44 }
 0x2ea   : > { %13452 = vst [vmem:[#allocation57_spill] sm:$0xff] %v10844_v7  ;;  %13454 = vst [vmem:[#allocation28_spill] sm:$0xff] %v10852_v61  ;;  %7296 = vmatprep.mubr.bf16.mxu1 %v3820_v33  ;;  %vm13459_vm8 = vcmp.lt.s32.totalorder %v13433_v4, 7  ;;  %v7949_v7 = vld [vmem:[#allocation8 + $0x90] sm:$0xff]   ;;  %v13490_v9 = vrot.slane %v10676_v28, 7  ;;  %v13491_v31 = vrot.slane %v10674_v16, 7 }
 0x2eb   : > { %13455 = vst [vmem:[#allocation58_spill] sm:$0xff] %v10856_v50  ;;  %v10864_v42 = vsel %vm13457_vm6, %v13456_v30, %v12930_v15  ;;  %v10870_v57 = vsel %vm13459_vm8, %v3526_v23, %v3527_v36  ;;  %vm13460_vm2 = vmmov %vm13459_vm8  ;;  %v3742_v30 = vsel %vm8453_vm3, %v10826_v46, %v10852_v61  ;;  %v3529_v15 = vrot.slane %v10680_v40, 1  ;;  %7297 = vmatmul.mubr.bf16.vlgmr.msra.gmra.mrb[96].mxu1 %v3821_v18  ;;  %v7961_v61 = vld [vmem:[#allocation8 + $0x48] sm:$0xff]  }
 0x2ec   : > { %13458 = vst [vmem:[#allocation64_spill] sm:$0xff] %v10864_v42  ;;  %v10874_v3 = vsel %vm13460_vm2, %v3525_v49, %v3526_v23  ;;  %v3793_v45 = vsel %vm9140_vm0, %v10816_v37, %v10870_v57  ;;  %v5044_v14 = vsel %vm9107_vm1, %v10816_v37, %v10870_v57  ;;  %v3773_v23 = vpack.c.bf16 %v10770_v17, %v3742_v30  ;;  %vm13466_vm6 = vmmov %vm13460_vm2 }
 0x2ed   : > { %13461 = vst [vmem:[#allocation59_spill] sm:$0xff] %v10874_v3  ;;  %v10892_v49 = vsel %vm13460_vm2, %v3527_v36, %v3528_v48  ;;  %v3822_v46 = vpack.c.bf16 %v3793_v45, %v10874_v3  ;;  %v10896_v18 = vpack.c.bf16 %v5044_v14, %v10874_v3  ;;  %7329 = vmatpush3.bf16.msra.mxu1 %v10479_v24  ;;  %v13469_v30 = vrot.slane %v10680_v40, 7 }
 0x2ee   : > { %13464 = vst [vmem:[#allocation51_spill] sm:$0xff] %v10892_v49  ;;  %v10901_v33 = vsel %vm13466_vm6, %v3528_v48, %v3529_v15  ;;  %vm13470_vm1 = vcmp.lt.s32.totalorder %v13433_v4, 1  ;;  %7330 = vmatprep.subr.bf16.mxu1 %v7948_v58  ;;  %v3530_v24 = vrot.slane %v10682_v11, 1  ;;  %v13473_v48 = vrot.slane %v10672_v41, 7  ;;  %6866 = vmatprep.subr.bf16.mxu0 %v7961_v61 }
 0x2ef   : > { %13465 = vst [vmem:[#allocation60_spill] sm:$0xff] %v10896_v18  ;;  %13467 = vst [vmem:[#allocation62_spill] sm:$0xff] %v10901_v33  ;;  %v10909_v36 = vsel %vm13470_vm1, %v13469_v30, %v13468_v47  ;;  %v3795_v14 = vsel %vm9169_vm14, %v10864_v42, %v10901_v33  ;;  %v3531_v18 = vrot.slane %v10684_v12, 1  ;;  %7300 = vmatprep.mubr.bf16.mxu1 %v3822_v46  ;;  %v13478_v41 = vrot.slane %v10686_v56, 7 }
 0x2f0   : > { %13471 = vst [vmem:[#allocation65_spill] sm:$0xff] %v10909_v36  ;;  %vm13474_vm8 = vmmov %vm13470_vm1  ;;  %v3823_v47 = vpack.c.bf16 %v3795_v14, %v10892_v49  ;;  %v13479_v17 = vrot.slane %v10684_v12, 7  ;;  %v3532_v30 = vrot.slane %v10686_v56, 1  ;;  %4070 = vmatmul.mubr.bf16.gmra.mrb[164].mxu0 %v3773_v23  ;;  %v13502_v28 = vrot.slane %v10694_v63, 7 }
 0x2f1   : > { %v10922_v60 = vsel %vm13474_vm8, %v10730_v25, %v13473_v48  ;;  %vm13480_vm2 = vmmov %vm13470_vm1  ;;  %v10943_v34 = vsel %vm13466_vm6, %v3530_v24, %v3531_v18  ;;  %7331 = vmatpush3.bf16.msra.mxu1 %v7948_v58  ;;  %v3535_v58 = vrot.slane %v10692_v1, 1  ;;  %4077 = vmatprep.mubr.bf16.mxu0 %v10856_v50  ;;  %v13514_v33 = vrot.slane %v10678_v26, 7 }
 0x2f2   : > { %13475 = vst [vmem:[#allocation69_spill] sm:$0xff] %v10922_v60  ;;  %v3744_v22 = vsel %vm8519_vm4, %v10874_v3, %v10922_v60  ;;  %v10939_v48 = vsel %vm13480_vm2, %v13479_v17, %v13478_v41  ;;  %13481 = vst [vmem:[#allocation13_spill] sm:$0xff] %v10943_v34  ;;  %v13484_v60 = vld [vmem:[#allocation20_spill] sm:$0xff]  ;;  %v3533_v17 = vrot.slane %v10688_v2, 1  ;;  %v13486_v41 = vrot.slane %v10690_v52, 7  ;;  %7332 = vmatprep.subr.bf16.mxu1 %v7949_v7  ;;  %v13517_v3 = vld [vmem:[#allocation27_spill] sm:$0xff] }
 0x2f3   : > { %vm13482_vm1 = vmmov %vm13466_vm6  ;;  %v3774_v14 = vpack.c.bf16 %v10816_v37, %v3744_v22  ;;  %vm13485_vm8 = vnez %v13484_v60  ;;  %v3534_v22 = vrot.slane %v10690_v52, 1  ;;  %7301 = vmatmul.mubr.bf16.gmra.mrb[100].mxu1 %v3823_v47  ;;  %vm13542_vm3 = vcmp.lt.s32.totalorder %v13433_v4, 1  ;;  %v13543_v37 = vld [vmem:[#allocation35_spill] sm:$0xff] }
 0x2f4   : > { %v10947_v46 = vsel %vm13482_vm1, %v3529_v15, %v3530_v24  ;;  %v3797_v25 = vsel %vm13485_vm8, %v10909_v36, %v10943_v34  ;;  %v10962_v15 = vsel %vm13480_vm2, %v13487_v43, %v13486_v41  ;;  %vm13488_vm6 = vmmov %vm13482_vm1  ;;  %v7950_v41 = vld [vmem:[#allocation8 + $0x98] sm:$0xff]   ;;  %v7962_v34 = vld [vmem:[#allocation8 + $0x8] sm:$0xff]  }
 0x2f5   : > { %13483 = vst [vmem:[#allocation74_spill] sm:$0xff] %v10947_v46  ;;  %v3824_v61 = vpack.c.bf16 %v3797_v25, %v10947_v46  ;;  %v10968_v24 = vsel %vm13488_vm6, %v3531_v18, %v3532_v30  ;;  %vm13492_vm1 = vmmov %vm13480_vm2  ;;  %7333 = vmatpush3.bf16.msra.mxu1 %v7949_v7  ;;  %v3537_v18 = vrot.slane %v10696_v27, 1  ;;  %v7951_v7 = vld [vmem:[#allocation8 + $0xa0] sm:$0xff]   ;;  %6867 = vmatpush3.bf16.msra.mxu0 %v7962_v34  ;;  %v7968_v34 = vld [vmem:[#allocation8 + $0x10] sm:$0xff]  }
 0x2f6   : > { %13489 = vst [vmem:[#allocation75_spill] sm:$0xff] %v10968_v24  ;;  %v10977_v43 = vsel %vm13492_vm1, %v13491_v31, %v13490_v9  ;;  %vm13494_vm2 = vmmov %vm13488_vm6  ;;  %v10994_v9 = vpack.c.bf16 %v10682_v11, %v10680_v40  ;;  %v7967_v31 = vld [vmem:[#allocation8 + $0x50] sm:$0xff]   ;;  %7334 = vmatprep.subr.bf16.mxu1 %v7950_v41 }
 0x2f7   : > { %13493 = vst [vmem:[#allocation76_spill] sm:$0xff] %v10977_v43  ;;  %v10982_v25 = vsel %vm13494_vm2, %v3532_v30, %v3533_v17  ;;  %vm13496_vm6 = vmmov %vm13494_vm2  ;;  %v3746_v16 = vsel %vm13311_vm7, %v10892_v49, %v10977_v43  ;;  %v13503_v43 = vrot.slane %v10692_v1, 7  ;;  %7304 = vmatprep.mubr.bf16.mxu1 %v3824_v61  ;;  %6868 = vmatprep.subr.bf16.mxu0 %v7967_v31 }
 0x2f8   : > { %13495 = vst [vmem:[#allocation77_spill] sm:$0xff] %v10982_v25  ;;  %v10986_v23 = vsel %vm13496_vm6, %v3533_v17, %v3534_v22  ;;  %13498 = vst [vmem:[#allocation78_spill] sm:$0xff] %v10994_v9  ;;  %v3799_v30 = vsel %vm9202_vm10, %v10939_v48, %v10982_v25  ;;  %v11005_v50 = vpack.c.bf16 %v10864_v42, %v3746_v16  ;;  %v13505_v25 = vld [vmem:[#allocation31_spill] sm:$0xff]  ;;  %v3536_v16 = vrot.slane %v10694_v63, 1 }
 0x2f9   : > { %vm13500_vm1 = vmmov %vm13494_vm2  ;;  %vm13504_vm2 = vcmp.lt.s32.totalorder %v13433_v4, 1  ;;  %v3825_v47 = vpack.c.bf16 %v3799_v30, %v10968_v24  ;;  %vm13506_vm6 = vnez %v13505_v25  ;;  %v13507_v42 = vrot.slane %v10698_v53, 7  ;;  %7335 = vmatpush3.bf16.msra.mxu1 %v7950_v41  ;;  %4078 = vmatmul.mubr.bf16.gmra.mrb[168].mxu0 %v3774_v14 }
 0x2fa   : > { %v11002_v17 = vsel %vm13500_vm1, %v3534_v22, %v3535_v58  ;;  %v11013_v49 = vsel %vm13504_vm2, %v13503_v43, %v13502_v28  ;;  %v13508_v43 = vrot.slane %v10696_v27, 7  ;;  %vm13509_vm1 = vmmov %vm13504_vm2  ;;  %v3538_v28 = vrot.slane %v10698_v53, 1  ;;  %7336 = vmatprep.subr.bf16.mxu1 %v7951_v7  ;;  %4085 = vmatprep.mubr.bf16.mxu0 %v10931_v44 }
 0x2fb   : > { %13501 = vst [vmem:[#allocation79_spill] sm:$0xff] %v11002_v17  ;;  %v3801_v22 = vsel %vm13506_vm6, %v10962_v15, %v11002_v17  ;;  %v3539_v30 = vrot.slane %v10700_v62, 1  ;;  %vm13510_vm2 = vcmp.lt.s32.totalorder %v13433_v4, 7  ;;  %v13513_v25 = vrot.slane %v10680_v40, 7  ;;  %6869 = vmatpush3.bf16.msra.mxu0 %v7968_v34  ;;  %7305 = vmatmul.mubr.bf16.gmra.mrb[104].mxu1 %v3825_v47  ;;  %v7975_v34 = vld [vmem:[#allocation8 + $0x60] sm:$0xff]  }
 0x2fc   : > { %v3826_v60 = vpack.c.bf16 %v3801_v22, %v10986_v23  ;;  %v11029_v61 = vsel %vm13509_vm1, %v13508_v43, %v13507_v42  ;;  %v11035_v17 = vsel %vm13510_vm2, %v3536_v16, %v3537_v18  ;;  %vm13512_vm7 = vmmov %vm13510_vm2  ;;  %v11051_v43 = vpack.c.bf16 %v10686_v56, %v10684_v12 }
 0x2fd   : > { %13511 = vst [vmem:[#allocation80_spill] sm:$0xff] %v11035_v17  ;;  %v11039_v22 = vsel %vm13512_vm7, %v3535_v58, %v3536_v16  ;;  %v11047_v42 = vsel %vm13509_vm1, %v13514_v33, %v13513_v25  ;;  %vm13518_vm2 = vnez %v13517_v3  ;;  %v11059_v40 = vsel %vm13512_vm7, %v3538_v28, %v3539_v30  ;;  %vm13520_vm4 = vmmov %vm13512_vm7  ;;  %v13521_v33 = vld [vmem:[#allocation25_spill] sm:$0xff]  ;;  %v13523_v16 = vld [vmem:[#allocation39_spill] sm:$0xff]  ;;  %7337 = vmatpush3.bf16.msra.mxu1 %v7951_v7 }
 0x2fe   : > { %13515 = vst [vmem:[#allocation81_spill] sm:$0xff] %v11047_v42  ;;  %13516 = vst [vmem:[#allocation82_spill] sm:$0xff] %v11051_v43  ;;  %v3803_v58 = vsel %vm13518_vm2, %v11013_v49, %v11035_v17  ;;  %v11063_v26 = vsel %vm13520_vm4, %v3537_v18, %v3538_v28  ;;  %vm13522_vm1 = vnez %v13521_v33  ;;  %vm13524_vm0 = vnez %v13523_v16  ;;  %7308 = vmatprep.mubr.bf16.mxu1 %v3826_v60  ;;  %v13547_v60 = vld [vmem:[#allocation24_spill] sm:$0xff] }
 0x2ff   : > { %13519 = vst [vmem:[#allocation83_spill] sm:$0xff] %v11059_v40  ;;  %v3748_v25 = vsel %vm13522_vm1, %v10947_v46, %v11047_v42  ;;  %v11070_v31 = vpack.c.bf16 %v3803_v58, %v11039_v22  ;;  %v3805_v17 = vsel %vm13524_vm0, %v11029_v61, %v11059_v40  ;;  %v13525_v18 = vrot.slane %v10702_v55, 7  ;;  %v7952_v46 = vld [vmem:[#allocation8 + $0xa8] sm:$0xff]  }
 0x300   : > { %v11077_v3 = vpack.c.bf16 %v10909_v36, %v3748_v25  ;;  %v13526_v28 = vrot.slane %v10700_v62, 7  ;;  %vm13527_vm4 = vcmp.lt.s32.totalorder %v13433_v4, 1  ;;  %v11088_v58 = vpack.c.bf16 %v3805_v17, %v11063_v26  ;;  %7338 = vmatprep.subr.bf16.mxu1 %v7952_v46 }
 0x301   : > { %v3540_v42 = vrot.slane %v10702_v55, 1  ;;  %v3541_v40 = vrot.slane %v10704_v38, 1  ;;  %v13528_v41 = vrot.slane %v10706_v51, 7  ;;  %v13529_v25 = vrot.slane %v10704_v38, 7  ;;  %vm13530_vm7 = vmmov %vm13527_vm4  ;;  %7339 = vmatpush3.bf16.msra.mxu1 %v7952_v46  ;;  %4086 = vmatmul.mubr.bf16.gmra.mrb[172].mxu0 %v11005_v50 }
 0x302   : > { %v11085_v33 = vsel %vm13527_vm4, %v13526_v28, %v13525_v18  ;;  %v7973_v18 = vld [vmem:[#allocation8 + $0x58] sm:$0xff]   ;;  %v3542_v14 = vrot.slane %v10706_v51, 1  ;;  %v3543_v17 = vrot.slane %v10708_v29, 1  ;;  %v13531_v28 = vrot.slane %v10684_v12, 7  ;;  %4093 = vmatprep.mubr.bf16.mxu0 %v10994_v9 }
 0x303   : > { %v11098_v16 = vsel %vm13530_vm7, %v13529_v25, %v13528_v41  ;;  %v13532_v36 = vrot.slane %v10682_v11, 7  ;;  %v11113_v41 = vpack.c.bf16 %v10690_v52, %v10688_v2  ;;  %v7974_v25 = vld [vmem:[#allocation8 + $0x18] sm:$0xff]   ;;  %vm13535_vm7 = vcmp.lt.s32.totalorder %v13433_v4, 7  ;;  %v13538_v11 = vld [vmem:[#allocation30_spill] sm:$0xff]  ;;  %6870 = vmatprep.subr.bf16.mxu0 %v7973_v18  ;;  %7309 = vmatmul.mubr.bf16.gmra.mrb[108].mxu1 %v11070_v31 }
 0x304   : > { %v11117_v44 = vsel %vm13535_vm7, %v3540_v42, %v3541_v40  ;;  %vm13537_vm1 = vmmov %vm13535_vm7  ;;  %6871 = vmatpush3.bf16.msra.mxu0 %v7974_v25  ;;  %v7979_v25 = vld [vmem:[#allocation8 + $0x68] sm:$0xff]   ;;  %7312 = vmatprep.mubr.bf16.mxu1 %v11088_v58 }
 0x305   : > { %v11109_v45 = vsel %vm13527_vm4, %v13532_v36, %v13531_v28  ;;  %13534 = vst [vmem:[#allocation85_spill] sm:$0xff] %v11113_v41  ;;  %13536 = vst [vmem:[#allocation86_spill] sm:$0xff] %v11117_v44  ;;  %v11121_v12 = vsel %vm13537_vm1, %v3539_v30, %v3540_v42  ;;  %vm13539_vm4 = vnez %v13538_v11  ;;  %v13540_v28 = vrot.slane %v10710_v32, 7  ;;  %6872 = vmatprep.subr.bf16.mxu0 %v7975_v34 }
 0x306   : > { %13533 = vst [vmem:[#allocation84_spill] sm:$0xff] %v11109_v45  ;;  %v3750_v36 = vsel %vm13539_vm4, %v10968_v24, %v11109_v45  ;;  %v13541_v41 = vrot.slane %v10708_v29, 7  ;;  %vm13544_vm1 = vnez %v13543_v37  ;;  %v11141_v42 = vsel %vm13535_vm7, %v3542_v14, %v3543_v17  ;;  %vm13546_vm4 = vmmov %vm13535_vm7  ;;  %v7953_v24 = vld [vmem:[#allocation8 + $0xb0] sm:$0xff]  }
 0x307   : > { %v3807_v30 = vsel %vm13544_vm1, %v11085_v33, %v11117_v44  ;;  %13545 = vst [vmem:[#allocation87_spill] sm:$0xff] %v11141_v42  ;;  %v11145_v11 = vsel %vm13546_vm4, %v3541_v40, %v3542_v14  ;;  %v3544_v45 = vrot.slane %v10710_v32, 1  ;;  %v11156_v44 = vpack.c.bf16 %v10939_v48, %v3750_v36  ;;  %vm13553_vm15 = vmmov %vm13546_vm4  ;;  %7340 = vmatprep.subr.bf16.mxu1 %v7953_v24 }
 0x308   : > { %v11133_v47 = vsel %vm13542_vm3, %v13541_v41, %v13540_v28  ;;  %v11149_v41 = vpack.c.bf16 %v3807_v30, %v11121_v12  ;;  %vm13548_vm3 = vnez %v13547_v60  ;;  %v3545_v37 = vrot.slane %v10712_v0, 1  ;;  %v7976_v60 = vld [vmem:[#allocation8 + $0x20] sm:$0xff]   ;;  %7341 = vmatpush3.bf16.msra.mxu1 %v7953_v24 }
 0x309   : > { %v3809_v28 = vsel %vm13548_vm3, %v11098_v16, %v11141_v42  ;;  %13549 = vst [vmem:[#allocation88_spill] sm:$0xff] %v11156_v44  ;;  %v11164_v40 = vsel %vm13546_vm4, %v3543_v17, %v3544_v45  ;;  %v13550_v14 = vrot.slane %v10714_v20, 7  ;;  %v13551_v30 = vrot.slane %v10712_v0, 7  ;;  %6873 = vmatpush3.bf16.msra.mxu0 %v7976_v60  ;;  %v7981_v60 = vld [vmem:[#allocation8 + $0x70] sm:$0xff]  }
 0x30a   : > { %v11160_v7 = vpack.c.bf16 %v3809_v28, %v11145_v11  ;;  %vm13552_vm7 = vcmp.lt.s32.totalorder %v13433_v4, 1  ;;  %v3546_v42 = vrot.slane %v10714_v20, 1  ;;  %v11177_v18 = vsel %vm13553_vm15, %v3544_v45, %v3545_v37  ;;  %6874 = vmatprep.subr.bf16.mxu0 %v7979_v25  ;;  %4094 = vmatmul.mubr.bf16.gmra.mrb[176].mxu0 %v11077_v3  ;;  %v13596_v3 = vld [vmem:[#allocation46_spill] sm:$0xff] }
 0x30b   : > { %v11172_v36 = vsel %vm13552_vm7, %v13551_v30, %v13550_v14  ;;  %13554 = vst [vmem:[#allocation89_spill] sm:$0xff] %v11177_v18  ;;  %v3547_v28 = vrot.slane %v10716_v5, 1  ;;  %v13555_v17 = vrot.slane %v10688_v2, 7  ;;  %v13556_v44 = vrot.slane %v10686_v56, 7  ;;  %vm13557_vm4 = vmmov %vm13552_vm7  ;;  %v13561_v56 = vld [vmem:[#allocation32_spill] sm:$0xff]  ;;  %4101 = vmatprep.mubr.bf16.mxu0 %v11051_v43  ;;  %7313 = vmatmul.mubr.bf16.gmra.mrb[112].mxu1 %v11149_v41 }
 0x30c   : > { %v11190_v14 = vpack.c.bf16 %v10694_v63, %v10692_v1  ;;  %v3811_v30 = vsel %vm13349_vm12, %v11133_v47, %v11177_v18  ;;  %v11198_v2 = vsel %vm13553_vm15, %v3545_v37, %v3546_v42  ;;  %vm13562_vm7 = vnez %v13561_v56  ;;  %7316 = vmatprep.mubr.bf16.mxu1 %v11160_v7 }
 0x30d   : > { %v11186_v0 = vsel %vm13557_vm4, %v13556_v44, %v13555_v17  ;;  %v13563_v17 = vrot.slane %v10718_v39, 7  ;;  %v13564_v34 = vrot.slane %v10716_v5, 7  ;;  %v11214_v18 = vpack.c.bf16 %v3811_v30, %v11164_v40 }
 0x30e   : > { %13558 = vst [vmem:[#allocation90_spill] sm:$0xff] %v11186_v0  ;;  %13559 = vst [vmem:[#allocation91_spill] sm:$0xff] %v11190_v14  ;;  %v3752_v44 = vsel %vm13562_vm7, %v10986_v23, %v11186_v0  ;;  %v11218_v37 = vsel %vm13553_vm15, %v3546_v42, %v3547_v28  ;;  %v3548_v56 = vrot.slane %v10718_v39, 1  ;;  %v7954_v0 = vld [vmem:[#allocation8 + $0xb8] sm:$0xff]   ;;  %v11230_v30 = vrot.slane %v10720_v10, 1 }
 0x30f   : > { %v11210_v14 = vsel %vm13557_vm4, %v13564_v34, %v13563_v17  ;;  %13565 = vst [vmem:[#allocation92_spill] sm:$0xff] %v11218_v37  ;;  %v11221_v46 = vpack.c.bf16 %v10962_v15, %v3752_v44  ;;  %v13567_v17 = vld [vmem:[#allocation29_spill] sm:$0xff]  ;;  %vm13570_vm15 = vcmp.lt.s32.totalorder %v13433_v4, 1  ;;  %v11239_v44 = vrot.slane %v10722_v21, 1  ;;  %v7980_v34 = vld [vmem:[#allocation8 + $0x28] sm:$0xff]   ;;  %7342 = vmatprep.subr.bf16.mxu1 %v7954_v0 }
 0x310   : > { %vm13568_vm4 = vnez %v13567_v17  ;;  %13569 = vst [vmem:[#allocation94_spill] sm:$0xff] %v11230_v30  ;;  %v11236_v42 = vsel %vm13570_vm15, %v10761_v13, %v10764_v59  ;;  %vm13572_vm7 = vcmp.lt.s32.totalorder %v13433_v4, 7  ;;  %v13573_v17 = vrot.slane %v10692_v1, 7  ;;  %6875 = vmatpush3.bf16.msra.mxu0 %v7980_v34  ;;  %7343 = vmatpush3.bf16.msra.mxu1 %v7954_v0 }
 0x311   : > { %13566 = vst [vmem:[#allocation93_spill] sm:$0xff] %v11221_v46  ;;  %v3813_v50 = vsel %vm13568_vm4, %v11172_v36, %v11218_v37  ;;  %13571 = vst [vmem:[#allocation95_spill] sm:$0xff] %v11239_v44  ;;  %v11247_v46 = vsel %vm13572_vm7, %v3547_v28, %v3548_v56  ;;  %v3735_v37 = vrot.slane %v10724_v54, 1  ;;  %v13574_v59 = vrot.slane %v10690_v52, 7  ;;  %6876 = vmatprep.subr.bf16.mxu0 %v7981_v60  ;;  %v7982_v60 = vld [vmem:[#allocation8 + $0x30] sm:$0xff]  }
 0x312   : > { %v11243_v9 = vpack.c.bf16 %v3813_v50, %v11198_v2  ;;  %vm13576_vm4 = vmmov %vm13572_vm7  ;;  %v13589_v34 = vrot.slane %v10696_v27, 7 }
 0x313   : > { %v11256_v13 = vsel %vm13570_vm15, %v13574_v59, %v13573_v17  ;;  %v11262_v31 = vsel %vm13576_vm4, %v3548_v56, %v11230_v30  ;;  %vm13578_vm7 = vmmov %vm13576_vm4  ;;  %v11282_v56 = vsel %vm13576_vm4, %v11239_v44, %v3735_v37  ;;  %7317 = vmatmul.mubr.bf16.gmra.mrb[116].mxu1 %v11214_v18 }
 0x314   : > { %13575 = vst [vmem:[#allocation96_spill] sm:$0xff] %v11256_v13  ;;  %13577 = vst [vmem:[#allocation97_spill] sm:$0xff] %v11262_v31  ;;  %v11268_v1 = vsel %vm13578_vm7, %v11230_v30, %v11239_v44  ;;  %v3599_v59 = vsel %vm13372_vm13, %v11039_v22, %v11256_v13  ;;  %v3815_v25 = vsel %vm9405_vm5, %v11210_v14, %v11262_v31  ;;  %6877 = vmatpush3.bf16.msra.mxu0 %v7982_v60  ;;  %v13702_v30 = vld [vmem:[#allocation73_spill] sm:$0xff] }
 0x315   : > { %13581 = vst [vmem:[#allocation98_spill] sm:$0xff] %v11282_v56  ;;  %v11285_v17 = vpack.c.bf16 %v11013_v49, %v3599_v59  ;;  %v3754_v50 = vsel %vm13367_vm11, %v11039_v22, %v11256_v13  ;;  %v11292_v28 = vpack.c.bf16 %v3815_v25, %v11247_v46  ;;  %v3817_v31 = vsel %vm9423_vm9, %v11236_v42, %v11282_v56  ;;  %vm13588_vm7 = vmmov %vm13576_vm4  ;;  %v13686_v58 = vld [vmem:[#allocation91_spill] sm:$0xff] }
 0x316   : > { %v11299_v44 = vpack.c.bf16 %v11013_v49, %v3754_v50  ;;  %v11303_v59 = vpack.c.bf16 %v10698_v53, %v10696_v27  ;;  %v11306_v24 = vpack.c.bf16 %v3817_v31, %v11268_v1  ;;  %v13586_v25 = vrot.slane %v10724_v54, 7  ;;  %vm13591_vm4 = vmmov %vm13570_vm15  ;;  %v13594_v27 = vld [vmem:[#allocation44_spill] sm:$0xff]  ;;  %7320 = vmatprep.mubr.bf16.mxu1 %v11243_v9 }
 0x317   : > { %13582 = vst [vmem:[#allocation99_spill] sm:$0xff] %v11285_v17  ;;  %v7957_v17 = vld [vmem:[#allocation8 + $0x1c0] sm:$0xff]   ;;  %v11316_v56 = vrot.slane %v10659_v19, 1  ;;  %v11322_v50 = vsel %vm13588_vm7, %v10773_v35, %v10776_v8  ;;  %v13590_v31 = vrot.slane %v10694_v63, 7  ;;  %vm13597_vm11 = vnez %v13596_v3 }
 0x318   : > { %13585 = vst [vmem:[#allocation100_spill] sm:$0xff] %v11303_v59  ;;  %v11313_v13 = vsel %vm13570_vm15, %v13586_v25, %v10662_v6  ;;  %v11334_v25 = vpack.c.bf16 %v10702_v55, %v10700_v62  ;;  %vm13593_vm15 = vmmov %vm13588_vm7  ;;  %7000 = vmatprep.subr.bf16.mxu1 %v7957_v17  ;;  %v13604_v17 = vld [vmem:[#allocation45_spill] sm:$0xff]  ;;  %v13614_v6 = vld [vmem:[#allocation64_spill] sm:$0xff] }
 0x319   : > { %13587 = vst [vmem:[#allocation101_spill] sm:$0xff] %v11316_v56  ;;  %v11330_v59 = vsel %vm13591_vm4, %v13590_v31, %v13589_v34  ;;  %v11340_v35 = vsel %vm13593_vm15, %v3735_v37, %v11316_v56  ;;  %v3739_v63 = vsel %vm13588_vm7, %v11316_v56, %v10776_v8  ;;  %vm13595_vm4 = vnez %v13594_v27  ;;  %v7985_v31 = vld [vmem:[#allocation8 + $0x78] sm:$0xff]   ;;  %v13611_v56 = vld [vmem:[#allocation59_spill] sm:$0xff] }
 0x31a   : > { %13592 = vst [vmem:[#allocation102_spill] sm:$0xff] %v11334_v25  ;;  %v3601_v0 = vsel %vm13595_vm4, %v11063_v26, %v11330_v59  ;;  %v3819_v34 = vsel %vm13597_vm11, %v11313_v13, %v3739_v63  ;;  %v3756_v8 = vsel %vm13372_vm13, %v11063_v26, %v11330_v59  ;;  %v13600_v63 = vrot.slane %v10700_v62, 7  ;;  %6878 = vmatprep.subr.bf16.mxu0 %v7985_v31 }
 0x31b   : > { %v11355_v37 = vpack.c.bf16 %v11029_v61, %v3601_v0  ;;  %v11363_v19 = vpack.c.bf16 %v3819_v34, %v11340_v35  ;;  %v11366_v43 = vpack.c.bf16 %v11029_v61, %v3756_v8  ;;  %v13601_v0 = vrot.slane %v10698_v53, 7  ;;  %v13607_v53 = vld [vmem:[#allocation50_spill] sm:$0xff]  ;;  %v13632_v8 = vld [vmem:[#allocation75_spill] sm:$0xff]  ;;  %7321 = vmatmul.mubr.bf16.gmra.mrb[120].mxu1 %v11292_v28 }
 0x31c   : > { %vm13602_vm15 = vcmp.lt.s32.totalorder %v13433_v4, 1  ;;  %vm13605_vm7 = vnez %v13604_v17  ;;  %v11387_v62 = vpack.c.bf16 %v10706_v51, %v10704_v38  ;;  %v13635_v17 = vrot.slane %v10706_v51, 7  ;;  %v13642_v51 = vld [vmem:[#allocation79_spill] sm:$0xff]  ;;  %7324 = vmatprep.mubr.bf16.mxu1 %v11306_v24 }
 0x31d   : > { %13598 = vst [vmem:[#allocation46_spill] sm:$0xff] %v11355_v37  ;;  %13599 = vst [vmem:[#allocation103_spill] sm:$0xff] %v11366_v43  ;;  %v11374_v37 = vsel %vm13602_vm15, %v13601_v0, %v13600_v63  ;;  %v3638_v63 = vsel %vm9169_vm14, %v13607_v53, %v10870_v57  ;;  %v13613_v43 = vld [vmem:[#allocation62_spill] sm:$0xff]  ;;  %v13618_v57 = vrot.slane %v10704_v38, 7 }
 0x31e   : > { %13603 = vst [vmem:[#allocation104_spill] sm:$0xff] %v11374_v37  ;;  %v3603_v41 = vsel %vm13605_vm7, %v11121_v12, %v11374_v37  ;;  %v3758_v34 = vsel %vm13595_vm4, %v11121_v12, %v11374_v37  ;;  %13606 = vst [vmem:[#allocation105_spill] sm:$0xff] %v11387_v62  ;;  %v11400_v25 = vpack.c.bf16 %v3638_v63, %v13611_v56  ;;  %v13616_v62 = vld [vmem:[#allocation51_spill] sm:$0xff] }
 0x31f   : > { %v11394_v7 = vpack.c.bf16 %v11085_v33, %v3603_v41  ;;  %v11397_v0 = vpack.c.bf16 %v11085_v33, %v3758_v34  ;;  %v3640_v52 = vsel %vm13485_vm8, %v13614_v6, %v13613_v43  ;;  %v13619_v41 = vrot.slane %v10702_v55, 7 }
 0x320   : > { %13612 = vst [vmem:[#allocation59_spill] sm:$0xff] %v11400_v25  ;;  %v11407_v37 = vpack.c.bf16 %v3640_v52, %v13616_v62  ;;  %v11419_v63 = vpack.c.bf16 %v10710_v32, %v10708_v29  ;;  %v13622_v25 = vld [vmem:[#allocation65_spill] sm:$0xff]  ;;  %v13634_v43 = vrot.slane %v10708_v29, 7 }
 0x321   : > { %13609 = vst [vmem:[#allocation50_spill] sm:$0xff] %v11394_v7  ;;  %13610 = vst [vmem:[#allocation106_spill] sm:$0xff] %v11397_v0  ;;  %v11415_v34 = vsel %vm13602_vm15, %v13619_v41, %v13618_v57  ;;  %v13621_v7 = vld [vmem:[#allocation13_spill] sm:$0xff]  ;;  %v13626_v57 = vld [vmem:[#allocation74_spill] sm:$0xff] }
 0x322   : > { %13617 = vst [vmem:[#allocation64_spill] sm:$0xff] %v11407_v37  ;;  %13620 = vst [vmem:[#allocation51_spill] sm:$0xff] %v11419_v63  ;;  %v3642_v60 = vsel %vm9202_vm10, %v13622_v25, %v13621_v7  ;;  %v13624_v52 = vld [vmem:[#allocation37_spill] sm:$0xff]  ;;  %v3760_v55 = vsel %vm13605_vm7, %v11145_v11, %v11415_v34 }
 0x323   : > { %vm13625_vm8 = vnez %v13624_v52  ;;  %v11434_v41 = vpack.c.bf16 %v3642_v60, %v13626_v57  ;;  %v13628_v63 = vld [vmem:[#allocation77_spill] sm:$0xff]  ;;  %v11444_v27 = vpack.c.bf16 %v11098_v16, %v3760_v55  ;;  %v11455_v60 = vsel %vm13602_vm15, %v13635_v17, %v13634_v43  ;;  %v13640_v55 = vld [vmem:[#allocation54_spill] sm:$0xff]  ;;  %v13648_v52 = vld [vmem:[#allocation80_spill] sm:$0xff]  ;;  %7325 = vmatmul.mubr.bf16.gmra.mrb[124].mxu1 %v11363_v19 }
 0x324   : > { %v3605_v38 = vsel %vm13625_vm8, %v11145_v11, %v11415_v34  ;;  %v3644_v0 = vsel %vm13506_vm6, %v10939_v48, %v13628_v63  ;;  %13636 = vst [vmem:[#allocation108_spill] sm:$0xff] %v11455_v60  ;;  %v11468_v29 = vpack.c.bf16 %v10714_v20, %v13640_v55  ;;  %v3646_v17 = vsel %vm13518_vm2, %v10962_v15, %v13642_v51 }
 0x325   : > { %13627 = vst [vmem:[#allocation65_spill] sm:$0xff] %v11434_v41  ;;  %v11441_v31 = vpack.c.bf16 %v11098_v16, %v3605_v38  ;;  %13631 = vst [vmem:[#allocation107_spill] sm:$0xff] %v11444_v27  ;;  %v11447_v7 = vpack.c.bf16 %v3644_v0, %v13632_v8  ;;  %v13637_v41 = vld [vmem:[#allocation88_spill] sm:$0xff]  ;;  %v13638_v38 = vld [vmem:[#allocation41_spill] sm:$0xff]  ;;  %v3762_v0 = vsel %vm13625_vm8, %v11164_v40, %v11455_v60 }
 0x326   : > { %4102 = vmatmul.mubr.bf16.gmra.mrb[180].mxu0 %v13637_v41  ;;  %vm13639_vm6 = vnez %v13638_v38  ;;  %13641 = vst [vmem:[#allocation88_spill] sm:$0xff] %v11468_v29  ;;  %v7986_v41 = vld [vmem:[#allocation8 + $0x38] sm:$0xff]   ;;  %v11479_v37 = vpack.c.bf16 %v11133_v47, %v3762_v0  ;;  %v11482_v63 = vpack.c.bf16 %v3646_v17, %v10986_v23  ;;  %v11502_v17 = vpack.c.bf16 %v10718_v39, %v10716_v5  ;;  %v13744_v38 = vld [vmem:[#allocation23_spill] sm:$0xff] }
 0x327   : > { %13630 = vst [vmem:[#allocation74_spill] sm:$0xff] %v11441_v31  ;;  %13633 = vst [vmem:[#allocation75_spill] sm:$0xff] %v11447_v7  ;;  %v3607_v31 = vsel %vm13639_vm6, %v11164_v40, %v11455_v60  ;;  %v13644_v7 = vld [vmem:[#allocation85_spill] sm:$0xff]  ;;  %v3648_v60 = vsel %vm13524_vm0, %v11013_v49, %v13648_v52  ;;  %v13664_v29 = vrot.slane %v10716_v5, 7  ;;  %6879 = vmatpush3.bf16.msra.mxu0 %v7986_v41 }
 0x328   : > { %4109 = vmatprep.mubr.bf16.mxu0 %v13644_v7  ;;  %v11476_v27 = vpack.c.bf16 %v11133_v47, %v3607_v31  ;;  %13646 = vst [vmem:[#allocation54_spill] sm:$0xff] %v11479_v37  ;;  %13647 = vst [vmem:[#allocation79_spill] sm:$0xff] %v11482_v63  ;;  %v11490_v43 = vpack.c.bf16 %v3648_v60, %v11039_v22  ;;  %v13651_v7 = vrot.slane %v13640_v55, 7  ;;  %v13652_v31 = vrot.slane %v10710_v32, 7  ;;  %v13656_v60 = vld [vmem:[#allocation47_spill] sm:$0xff] }
 0x329   : > { %13653 = vst [vmem:[#allocation109_spill] sm:$0xff] %v11502_v17  ;;  %vm13657_vm0 = vnez %v13656_v60  ;;  %v11551_v5 = vpack.c.bf16 %v10722_v21, %v10720_v10  ;;  %v13710_v17 = vld [vmem:[#allocation69_spill] sm:$0xff] }
 0x32a   : > { %13645 = vst [vmem:[#allocation41_spill] sm:$0xff] %v11476_v27  ;;  %13650 = vst [vmem:[#allocation80_spill] sm:$0xff] %v11490_v43  ;;  %v11498_v0 = vsel %vm13602_vm15, %v13652_v31, %v13651_v7  ;;  %v13654_v27 = vld [vmem:[#allocation83_spill] sm:$0xff]  ;;  %v13659_v31 = vld [vmem:[#allocation86_spill] sm:$0xff] }
 0x32b   : > { %v3650_v18 = vsel %vm13544_vm1, %v11029_v61, %v13654_v27  ;;  %v3609_v32 = vsel %vm13657_vm0, %v11198_v2, %v11498_v0  ;;  %v3764_v7 = vsel %vm13639_vm6, %v11198_v2, %v11498_v0  ;;  %v3652_v43 = vsel %vm13548_vm3, %v11085_v33, %v13659_v31  ;;  %v7958_v60 = vld [vmem:[#allocation8 + $0x180] sm:$0xff]  }
 0x32c   : > { %v11518_v55 = vpack.c.bf16 %v3650_v18, %v11063_v26  ;;  %v11525_v9 = vpack.c.bf16 %v11172_v36, %v3609_v32  ;;  %v11528_v37 = vpack.c.bf16 %v11172_v36, %v3764_v7  ;;  %v11531_v63 = vpack.c.bf16 %v3652_v43, %v11121_v12 }
 0x32d   : > { %v13665_v27 = vrot.slane %v10714_v20, 7  ;;  %v13669_v20 = vld [vmem:[#allocation87_spill] sm:$0xff]  ;;  %vm13703_vm1 = vnez %v13702_v30  ;;  %v13712_v30 = vld [vmem:[#allocation17_spill] sm:$0xff]  ;;  %v5015_v19 = vsel %vm13625_vm8, %v11198_v2, %v11498_v0 }
 0x32e   : > { %13658 = vst [vmem:[#allocation47_spill] sm:$0xff] %v11518_v55  ;;  %13661 = vst [vmem:[#allocation86_spill] sm:$0xff] %v11525_v9  ;;  %v13666_v55 = vld [vmem:[#allocation56_spill] sm:$0xff]  ;;  %v13673_v9 = vld [vmem:[#allocation89_spill] sm:$0xff] }
 0x32f   : > { %13662 = vst [vmem:[#allocation110_spill] sm:$0xff] %v11528_v37  ;;  %13663 = vst [vmem:[#allocation111_spill] sm:$0xff] %v11531_v63  ;;  %v11539_v18 = vsel %vm13602_vm15, %v13665_v27, %v13664_v29  ;;  %vm13667_vm3 = vnez %v13666_v55  ;;  %v3654_v27 = vsel %vm13349_vm12, %v11098_v16, %v13669_v20  ;;  %v13674_v63 = vld [vmem:[#allocation29_spill] sm:$0xff]  ;;  %v13678_v37 = vrot.slane %v10718_v39, 7 }
 0x330   : > { %v3611_v32 = vsel %vm13667_vm3, %v11247_v46, %v11539_v18  ;;  %v3766_v43 = vsel %vm13657_vm0, %v11247_v46, %v11539_v18  ;;  %13668 = vst [vmem:[#allocation56_spill] sm:$0xff] %v11551_v5  ;;  %v11564_v7 = vpack.c.bf16 %v3654_v27, %v11145_v11  ;;  %vm13675_vm15 = vnez %v13674_v63  ;;  %v13677_v5 = vld [vmem:[#allocation67_spill] sm:$0xff] }
 0x331   : > { %v11558_v29 = vpack.c.bf16 %v11210_v14, %v3611_v32  ;;  %v11561_v41 = vpack.c.bf16 %v11210_v14, %v3766_v43  ;;  %v3656_v10 = vsel %vm13675_vm15, %v11133_v47, %v13673_v9  ;;  %vm13679_vm12 = vcmp.lt.s32.totalorder %v13433_v4, 1  ;;  %v13680_v43 = vld [vmem:[#allocation92_spill] sm:$0xff] }
 0x332   : > { %13672 = vst [vmem:[#allocation113_spill] sm:$0xff] %v11564_v7  ;;  %v11571_v21 = vpack.c.bf16 %v3656_v10, %v11164_v40  ;;  %v11578_v32 = vsel %vm13679_vm12, %v13678_v37, %v13677_v5  ;;  %v3658_v27 = vsel %vm9405_vm5, %v11172_v36, %v13680_v43  ;;  %v13682_v7 = vld [vmem:[#allocation71_spill] sm:$0xff]  ;;  %v13690_v43 = vrot.slane %v10724_v54, 7  ;;  %vm13696_vm5 = vmmov %vm13679_vm12 }
 0x333   : > { %13670 = vst [vmem:[#allocation87_spill] sm:$0xff] %v11558_v29  ;;  %13671 = vst [vmem:[#allocation112_spill] sm:$0xff] %v11561_v41  ;;  %v13681_v29 = vld [vmem:[#allocation93_spill] sm:$0xff]  ;;  %vm13683_vm15 = vnez %v13682_v7  ;;  %v3768_v39 = vsel %vm13667_vm3, %v11268_v1, %v11578_v32  ;;  %v11594_v37 = vpack.c.bf16 %v3658_v27, %v11198_v2  ;;  %v13691_v27 = vld [vmem:[#allocation68_spill] sm:$0xff] }
 0x334   : > { %13676 = vst [vmem:[#allocation89_spill] sm:$0xff] %v11571_v21  ;;  %4110 = vmatmul.mubr.bf16.gmra.mrb[184].mxu0 %v13681_v29  ;;  %v3613_v10 = vsel %vm13683_vm15, %v11268_v1, %v11578_v32  ;;  %v13685_v21 = vld [vmem:[#allocation97_spill] sm:$0xff]  ;;  %v11605_v63 = vpack.c.bf16 %v11236_v42, %v3768_v39  ;;  %v13699_v54 = vld [vmem:[#allocation55_spill] sm:$0xff] }
 0x335   : > { %13684 = vst [vmem:[#allocation67_spill] sm:$0xff] %v11594_v37  ;;  %v3660_v41 = vsel %vm9423_vm9, %v11210_v14, %v13685_v21  ;;  %4117 = vmatprep.mubr.bf16.mxu0 %v13686_v58  ;;  %v11602_v29 = vpack.c.bf16 %v11236_v42, %v3613_v10  ;;  %v3733_v37 = vsel %vm13679_vm12, %v13691_v27, %v13690_v43  ;;  %v13692_v10 = vld [vmem:[#allocation53_spill] sm:$0xff]  ;;  %vm13694_vm9 = vcmp.lt.s32.totalorder %v13433_v4, 7  ;;  %vm13700_vm12 = vmmov %vm13696_vm5  ;;  %v13701_v43 = vld [vmem:[#allocation26_spill] sm:$0xff] }
 0x336   : > { %13688 = vst [vmem:[#allocation71_spill] sm:$0xff] %v11605_v63  ;;  %v11608_v45 = vpack.c.bf16 %v3660_v41, %v11247_v46  ;;  %v3770_v58 = vsel %vm13683_vm15, %v11340_v35, %v3733_v37  ;;  %v13695_v63 = vld [vmem:[#allocation49_spill] sm:$0xff]  ;;  %v3632_v21 = vsel %vm13703_vm1, %v13701_v43, %v11322_v50 }
 0x337   : > { %13687 = vst [vmem:[#allocation93_spill] sm:$0xff] %v11602_v29  ;;  %v13693_v29 = vld [vmem:[#allocation95_spill] sm:$0xff]  ;;  %v11627_v41 = vsel %vm13696_vm5, %v13691_v27, %v13695_v63  ;;  %v13711_v50 = vld [vmem:[#allocation61_spill] sm:$0xff] }
 0x338   : > { %13689 = vst [vmem:[#allocation114_spill] sm:$0xff] %v11608_v45  ;;  %v3582_v39 = vsel %vm13694_vm9, %v13693_v29, %v13692_v10  ;;  %13697 = vst [vmem:[#allocation68_spill] sm:$0xff] %v11627_v41  ;;  %v13698_v45 = vld [vmem:[#allocation52_spill] sm:$0xff]  ;;  %v11639_v29 = vpack.c.bf16 %v11313_v13, %v3770_v58  ;;  %v13704_v27 = vld [vmem:[#allocation43_spill] sm:$0xff]  ;;  %vm13713_vm9 = vnez %v13712_v30 }
 0x339   : > { %v3516_v28 = vsel %vm13700_vm12, %v13699_v54, %v13698_v45  ;;  %v3662_v63 = vsel %vm13597_vm11, %v11236_v42, %v3582_v39  ;;  %v13705_v10 = vld [vmem:[#allocation15_spill] sm:$0xff]  ;;  %v13708_v45 = vld [vmem:[#allocation16_spill] sm:$0xff]  ;;  %v3636_v3 = vsel %vm13713_vm9, %v13701_v43, %v13711_v50  ;;  %v13723_v43 = vld [vmem:[#allocation25_spill] sm:$0xff] }
 0x33a   : > { %vm13706_vm5 = vnez %v13705_v10  ;;  %v11648_v54 = vpack.c.bf16 %v3662_v63, %v11268_v1  ;;  %v13716_v63 = vld [vmem:[#allocation19_spill] sm:$0xff]  ;;  %v13751_v30 = vld [vmem:[#allocation77_spill] sm:$0xff] }
 0x33b   : > { %v3585_v41 = vsel %vm13706_vm5, %v13704_v27, %v3516_v28  ;;  %v4995_v58 = vsel %vm13706_vm5, %v13611_v56, %v13710_v17  ;;  %v13715_v28 = vld [vmem:[#allocation76_spill] sm:$0xff]  ;;  %vm13717_vm11 = vnez %v13716_v63  ;;  %v13720_v10 = vld [vmem:[#allocation63_spill] sm:$0xff]  ;;  %vm13724_vm5 = vnez %v13723_v43 }
 0x33c   : > { %13707 = vst [vmem:[#allocation53_spill] sm:$0xff] %v11648_v54  ;;  %v11651_v24 = vpack.c.bf16 %v13708_v45, %v3585_v41  ;;  %v11662_v39 = vpack.c.bf16 %v13607_v53, %v4995_v58  ;;  %v4997_v27 = vsel %vm13717_vm11, %v13616_v62, %v13715_v28  ;;  %v13718_v41 = vld [vmem:[#allocation22_spill] sm:$0xff]  ;;  %v13721_v58 = vld [vmem:[#allocation81_spill] sm:$0xff]  ;;  %4118 = vmatmul.mubr.bf16.gmra.mrb[188].mxu0 %v11299_v44  ;;  %v13731_v44 = vld [vmem:[#allocation32_spill] sm:$0xff] }
 0x33d   : > { %vm13719_vm12 = vnez %v13718_v41  ;;  %v11674_v54 = vpack.c.bf16 %v13614_v6, %v4997_v27 }
 0x33e   : > { %13709 = vst [vmem:[#allocation95_spill] sm:$0xff] %v11651_v24  ;;  %13714 = vst [vmem:[#allocation49_spill] sm:$0xff] %v11662_v39  ;;  %v3589_v45 = vsel %vm13719_vm12, %v13611_v56, %v13710_v17  ;;  %v3663_v24 = vpack.c.bf16 %v3632_v21, %v13720_v10  ;;  %v4999_v39 = vsel %vm13719_vm12, %v13626_v57, %v13721_v58  ;;  %v13725_v17 = vld [vmem:[#allocation84_spill] sm:$0xff]  ;;  %vm13732_vm12 = vnez %v13731_v44 }
 0x33f   : > { %v11677_v50 = vpack.c.bf16 %v13607_v53, %v3589_v45  ;;  %v11684_v63 = vpack.c.bf16 %v13622_v25, %v4999_v39  ;;  %v3591_v56 = vsel %vm13724_vm5, %v13616_v62, %v13715_v28  ;;  %v5001_v21 = vsel %vm13724_vm5, %v13632_v8, %v13725_v17  ;;  %v13726_v53 = vld [vmem:[#allocation30_spill] sm:$0xff] }
 0x340   : > { %vm13727_vm1 = vnez %v13726_v53  ;;  %v11700_v39 = vpack.c.bf16 %v13614_v6, %v3591_v56  ;;  %v11703_v41 = vpack.c.bf16 %v10939_v48, %v5001_v21  ;;  %v13729_v45 = vld [vmem:[#allocation90_spill] sm:$0xff]  ;;  %v3595_v56 = vsel %vm13732_vm12, %v13632_v8, %v13725_v17  ;;  %v13733_v21 = vld [vmem:[#allocation96_spill] sm:$0xff]  ;;  %7344 = vmatprep.mubr.bf16.mxu1 %v3663_v24 }
 0x341   : > { %13722 = vst [vmem:[#allocation52_spill] sm:$0xff] %v11684_v63  ;;  %v3593_v27 = vsel %vm13727_vm1, %v13626_v57, %v13721_v58  ;;  %v5003_v43 = vsel %vm13727_vm1, %v10986_v23, %v13729_v45  ;;  %v13730_v63 = vld [vmem:[#allocation100_spill] sm:$0xff] }
 0x342   : > { %v11706_v28 = vpack.c.bf16 %v13622_v25, %v3593_v27  ;;  %4125 = vmatprep.mubr.bf16.mxu0 %v13730_v63  ;;  %v11714_v58 = vpack.c.bf16 %v10962_v15, %v5003_v43  ;;  %v5005_v27 = vsel %vm13732_vm12, %v11039_v22, %v13733_v21  ;;  %v11730_v43 = vpack.c.bf16 %v10939_v48, %v3595_v56 }
 0x343   : > { %v11733_v63 = vpack.c.bf16 %v11013_v49, %v5005_v27 }
 0x344   : > { %13728 = vst [vmem:[#allocation55_spill] sm:$0xff] %v11706_v28  ;;  %v13734_v28 = vld [vmem:[#allocation36_spill] sm:$0xff] }
 0x345   : > { %vm13735_vm5 = vnez %v13734_v28  ;;  %13736 = vst [vmem:[#allocation43_spill] sm:$0xff] %v11733_v63  ;;  %v5017_v63 = vsel %vm13639_vm6, %v11247_v46, %v11539_v18 }
 0x346   : > { %v3597_v53 = vsel %vm13735_vm5, %v10986_v23, %v13729_v45  ;;  %v5007_v44 = vsel %vm13735_vm5, %v11063_v26, %v11330_v59  ;;  %v13738_v45 = vld [vmem:[#allocation104_spill] sm:$0xff]  ;;  %v11785_v27 = vpack.c.bf16 %v11210_v14, %v5017_v63  ;;  %v13749_v63 = vld [vmem:[#allocation103_spill] sm:$0xff] }
 0x347   : > { %v11736_v17 = vpack.c.bf16 %v10962_v15, %v3597_v53  ;;  %v11743_v21 = vpack.c.bf16 %v11029_v61, %v5007_v44  ;;  %v5009_v56 = vsel %vm13372_vm13, %v11121_v12, %v13738_v45  ;;  %v5011_v53 = vsel %vm13595_vm4, %v11145_v11, %v11415_v34  ;;  %4126 = vmatmul.mubr.bf16.gmra.mrb[192].mxu0 %v13749_v63  ;;  %v13759_v45 = vld [vmem:[#allocation57_spill] sm:$0xff] }
 0x348   : > { %v11758_v59 = vpack.c.bf16 %v11085_v33, %v5009_v56  ;;  %v11761_v24 = vpack.c.bf16 %v11098_v16, %v5011_v53  ;;  %v11771_v34 = vpack.c.bf16 %v11172_v36, %v5015_v19  ;;  %v5021_v56 = vsel %vm13667_vm3, %v11340_v35, %v3733_v37  ;;  %7345 = vmatmul.mubr.bf16.vlgmr.msra.gmra.mrb[96].mxu1 %v13759_v45  ;;  %v13784_v45 = vld [vmem:[#allocation107_spill] sm:$0xff] }
 0x349   : > { %13737 = vst [vmem:[#allocation15_spill] sm:$0xff] %v11736_v17  ;;  %v13741_v17 = vld [vmem:[#allocation108_spill] sm:$0xff]  ;;  %v11791_v53 = vpack.c.bf16 %v11313_v13, %v5021_v56  ;;  %vm13745_vm13 = vcmp.lt.s32.totalorder %v13433_v4, 1  ;;  %7001 = vmatpush3.bf16.msra.mxu1 %v7958_v60  ;;  %vm13777_vm4 = vcmp.lt.s32.totalorder %v13433_v4, 7 }
 0x34a   : > { %v5013_v28 = vsel %vm13605_vm7, %v11164_v40, %v13741_v17  ;;  %v5019_v17 = vsel %vm13657_vm0, %v11268_v1, %v11578_v32  ;;  %v4898_v18 = vsel %vm13745_vm13, %v13744_v38, %v13677_v5  ;;  %v13746_v32 = vld [vmem:[#allocation62_spill] sm:$0xff]  ;;  %v7965_v4 = vld [vmem:[#allocation8 + $0x1d8] sm:$0xff]  }
 0x34b   : > { %v11764_v44 = vpack.c.bf16 %v11133_v47, %v5013_v28  ;;  %v11788_v0 = vpack.c.bf16 %v11236_v42, %v5019_v17  ;;  %v5023_v55 = vsel %vm13683_vm15, %v11268_v1, %v4898_v18  ;;  %v5046_v37 = vsel %vm13713_vm9, %v13614_v6, %v13746_v32  ;;  %v13747_v28 = vld [vmem:[#allocation13_spill] sm:$0xff]  ;;  %v7959_v5 = vld [vmem:[#allocation8 + $0x1c8] sm:$0xff]   ;;  %v13752_v18 = vld [vmem:[#allocation20_spill] sm:$0xff] }
 0x34c   : > { %v5048_v19 = vsel %vm9169_vm14, %v13622_v25, %v13747_v28  ;;  %v3665_v17 = vpack.c.bf16 %v3636_v3, %v13720_v10  ;;  %v11811_v56 = vpack.c.bf16 %v11236_v42, %v5023_v55  ;;  %v11814_v7 = vpack.c.bf16 %v5046_v37, %v13616_v62  ;;  %v13750_v6 = vld [vmem:[#allocation102_spill] sm:$0xff]  ;;  %v13755_v55 = vld [vmem:[#allocation31_spill] sm:$0xff]  ;;  %7002 = vmatprep.subr.bf16.mxu1 %v7959_v5 }
 0x34d   : > { %v11817_v38 = vpack.c.bf16 %v5048_v19, %v13626_v57  ;;  %4133 = vmatprep.mubr.bf16.mxu0 %v13750_v6  ;;  %vm13753_vm0 = vnez %v13752_v18  ;;  %v5052_v32 = vsel %vm9202_vm10, %v10962_v15, %v13642_v51  ;;  %vm13756_vm14 = vnez %v13755_v55  ;;  %v13757_v37 = vld [vmem:[#allocation83_spill] sm:$0xff]  ;;  %v13772_v5 = vld [vmem:[#allocation98_spill] sm:$0xff]  ;;  %v13783_v57 = vld [vmem:[#allocation64_spill] sm:$0xff] }
 0x34e   : > { %v5050_v25 = vsel %vm13753_vm0, %v10939_v48, %v13751_v30  ;;  %v5054_v62 = vsel %vm13756_vm14, %v11013_v49, %v13648_v52  ;;  %v5056_v28 = vsel %vm13518_vm2, %v11029_v61, %v13757_v37  ;;  %v11841_v48 = vpack.c.bf16 %v5052_v32, %v10986_v23  ;;  %7348 = vmatprep.mubr.bf16.mxu1 %v3665_v17  ;;  %v7960_v49 = vld [vmem:[#allocation8 + $0x188] sm:$0xff]   ;;  %v13760_v61 = vld [vmem:[#allocation39_spill] sm:$0xff]  ;;  %v13767_v30 = vld [vmem:[#allocation33_spill] sm:$0xff] }
 0x34f   : > { %v11838_v19 = vpack.c.bf16 %v5050_v25, %v13632_v8  ;;  %v11844_v15 = vpack.c.bf16 %v5054_v62, %v11039_v22  ;;  %v11847_v51 = vpack.c.bf16 %v5056_v28, %v11063_v26  ;;  %vm13761_vm10 = vnez %v13760_v61  ;;  %v13762_v8 = vld [vmem:[#allocation35_spill] sm:$0xff]  ;;  %v13764_v22 = vld [vmem:[#allocation24_spill] sm:$0xff]  ;;  %v13776_v25 = vld [vmem:[#allocation101_spill] sm:$0xff]  ;;  %7003 = vmatpush3.bf16.msra.mxu1 %v7960_v49 }
 0x350   : > { %v5058_v52 = vsel %vm13761_vm10, %v11085_v33, %v13659_v31  ;;  %vm13763_vm8 = vnez %v13762_v8  ;;  %vm13765_vm6 = vnez %v13764_v22  ;;  %v7963_v26 = vld [vmem:[#allocation8 + $0x1d0] sm:$0xff]   ;;  %v13766_v31 = vld [vmem:[#allocation92_spill] sm:$0xff]  ;;  %vm13768_vm2 = vnez %v13767_v30  ;;  %v13778_v32 = vld [vmem:[#allocation38_spill] sm:$0xff] }
 0x351   : > { %v5060_v23 = vsel %vm13763_vm8, %v11098_v16, %v13669_v20  ;;  %v5062_v63 = vsel %vm13765_vm6, %v11133_v47, %v13673_v9  ;;  %v11862_v60 = vpack.c.bf16 %v5058_v52, %v11121_v12  ;;  %v5064_v16 = vsel %vm13768_vm2, %v11172_v36, %v13766_v31  ;;  %v13769_v47 = vld [vmem:[#allocation97_spill] sm:$0xff]  ;;  %v7964_v55 = vld [vmem:[#allocation8 + $0x190] sm:$0xff]   ;;  %7004 = vmatprep.subr.bf16.mxu1 %v7963_v26  ;;  %v7972_v8 = vld [vmem:[#allocation8 + $0x1a8] sm:$0xff]  }
 0x352   : > { %v11865_v17 = vpack.c.bf16 %v5060_v23, %v11145_v11  ;;  %v11868_v33 = vpack.c.bf16 %v5062_v63, %v11164_v40  ;;  %v11875_v20 = vpack.c.bf16 %v5064_v16, %v11198_v2  ;;  %v13770_v9 = vld [vmem:[#allocation29_spill] sm:$0xff]  ;;  %v13773_v11 = vld [vmem:[#allocation40_spill] sm:$0xff]  ;;  %v13775_v40 = vld [vmem:[#allocation94_spill] sm:$0xff]  ;;  %vm13779_vm7 = vnez %v13778_v32 }
 0x353   : > { %vm13771_vm1 = vnez %v13770_v9  ;;  %vm13774_vm3 = vnez %v13773_v11  ;;  %v4962_v3 = vsel %vm13777_vm4, %v13776_v25, %v13775_v40  ;;  %v13781_v37 = vld [vmem:[#allocation105_spill] sm:$0xff]  ;;  %7005 = vmatpush3.bf16.msra.mxu1 %v7964_v55  ;;  %v13785_v49 = vld [vmem:[#allocation51_spill] sm:$0xff]  ;;  %v13788_v63 = vld [vmem:[#allocation54_spill] sm:$0xff] }
 0x354   : > { %v5066_v12 = vsel %vm13771_vm1, %v11210_v14, %v13769_v47  ;;  %v5068_v18 = vsel %vm13774_vm3, %v11236_v42, %v13772_v5  ;;  %v5070_v14 = vsel %vm13779_vm7, %v11313_v13, %v4962_v3  ;;  %v13780_v42 = vld [vmem:[#allocation106_spill] sm:$0xff]  ;;  %7006 = vmatprep.subr.bf16.mxu1 %v7965_v4  ;;  %v7969_v28 = vld [vmem:[#allocation8 + $0x1e0] sm:$0xff]   ;;  %v13787_v52 = vld [vmem:[#allocation75_spill] sm:$0xff] }
 0x355   : > { %v11890_v36 = vpack.c.bf16 %v5066_v12, %v11247_v46  ;;  %v11893_v2 = vpack.c.bf16 %v5068_v18, %v11268_v1  ;;  %v11899_v62 = vpack.c.bf16 %v5070_v14, %v11340_v35  ;;  %4134 = vmatmul.mubr.bf16.gmra.mrb[196].mxu0 %v13780_v42  ;;  %v13782_v46 = vld [vmem:[#allocation59_spill] sm:$0xff]  ;;  %v7966_v1 = vld [vmem:[#allocation8 + $0x198] sm:$0xff]   ;;  %v7970_v13 = vld [vmem:[#allocation8 + $0x1a0] sm:$0xff]  }
 0x356   : > { %4141 = vmatprep.mubr.bf16.mxu0 %v13781_v37  ;;  %7349 = vmatmul.mubr.bf16.gmra.mrb[100].mxu1 %v13782_v46  ;;  %v7971_v35 = vld [vmem:[#allocation8 + $0x1e8] sm:$0xff]   ;;  %v13786_v61 = vld [vmem:[#allocation65_spill] sm:$0xff]  ;;  %v7977_v23 = vld [vmem:[#allocation8 + $0x1f0] sm:$0xff]  }
 0x357   : > { %7352 = vmatprep.mubr.bf16.mxu1 %v13783_v57  ;;  %7007 = vmatpush3.bf16.msra.mxu1 %v7966_v1  ;;  %v7978_v22 = vld [vmem:[#allocation8 + $0x1b0] sm:$0xff]   ;;  %v7983_v26 = vld [vmem:[#allocation8 + $0x1f8] sm:$0xff]   ;;  %v7987_v9 = vld [vmem:[#allocation8 + $0x200] sm:$0xff]  }
 0x358   : > { %7008 = vmatprep.subr.bf16.mxu1 %v7969_v28  ;;  %v13789_v31 = vld [vmem:[#allocation88_spill] sm:$0xff]  ;;  %v13790_v30 = vld [vmem:[#allocation79_spill] sm:$0xff]  ;;  %v13792_v12 = vld [vmem:[#allocation110_spill] sm:$0xff] }
 0x359   : > { %v13791_v16 = vld [vmem:[#allocation80_spill] sm:$0xff]  ;;  %v13793_v5 = vld [vmem:[#allocation109_spill] sm:$0xff]  ;;  %v13794_v11 = vld [vmem:[#allocation47_spill] sm:$0xff] }
 0x35a   : > { %v7984_v47 = vld [vmem:[#allocation8 + $0x1b8] sm:$0xff]   ;;  %v13795_v18 = vld [vmem:[#allocation111_spill] sm:$0xff]  ;;  %v13798_v3 = vld [vmem:[#allocation113_spill] sm:$0xff] }
 0x35b   : > { %7009 = vmatpush3.bf16.msra.mxu1 %v7970_v13  ;;  %v13796_v40 = vld [vmem:[#allocation112_spill] sm:$0xff]  ;;  %v13799_v32 = vld [vmem:[#allocation89_spill] sm:$0xff]  ;;  %v13802_v4 = vld [vmem:[#allocation71_spill] sm:$0xff] }
 0x35c   : > { %7010 = vmatprep.subr.bf16.mxu1 %v7971_v35  ;;  %v13797_v25 = vld [vmem:[#allocation56_spill] sm:$0xff]  ;;  %v13801_v55 = vld [vmem:[#allocation21_spill] sm:$0xff]  ;;  %v13803_v46 = vld [vmem:[#allocation67_spill] sm:$0xff] }
 0x35d   : > { %4142 = vmatmul.mubr.bf16.gmra.mrb[200].mxu0 %v13784_v45  ;;  %v13800_v14 = vld [vmem:[#allocation48_spill] sm:$0xff]  ;;  %v13804_v57 = vld [vmem:[#allocation114_spill] sm:$0xff]  ;;  %v13806_v28 = vld [vmem:[#allocation53_spill] sm:$0xff] }
 0x35e   : > { %4149 = vmatprep.mubr.bf16.mxu0 %v13785_v49  ;;  %7353 = vmatmul.mubr.bf16.gmra.mrb[104].mxu1 %v13786_v61  ;;  %v11923_v42 = vpack.c.bf16 %v13801_v55, %v13800_v14  ;;  %v13805_v1 = vld [vmem:[#allocation66_spill] sm:$0xff]  ;;  %v13807_v13 = vld [vmem:[#allocation68_spill] sm:$0xff] }
 0x35f   : > { %7356 = vmatprep.mubr.bf16.mxu1 %v13787_v52  ;;  %7011 = vmatpush3.bf16.msra.mxu1 %v7972_v8  ;;  %v13808_v45 = vld [vmem:[#allocation14_spill] sm:$0xff]  ;;  %v7994_v14 = vld [vmem:[#allocation8 + $0x238] sm:$0xff]  }
 0x360   : > { %7012 = vmatprep.subr.bf16.mxu1 %v7977_v23  ;;  %vm13809_vm15 = vnez %v13808_v45  ;;  %v13810_v61 = vld [vmem:[#allocation26_spill] sm:$0xff]  ;;  %v13819_v55 = vld [vmem:[#allocation52_spill] sm:$0xff] }
 0x361   : > { %v3583_v35 = vsel %vm13809_vm15, %v13720_v10, %v13807_v13  ;;  %v7988_v8 = vld [vmem:[#allocation8 + $0x208] sm:$0xff]  }
 0x362   : > { %v3615_v52 = vpack.c.bf16 %v13810_v61, %v3583_v35  ;;  %v13811_v23 = vld [vmem:[#allocation70_spill] sm:$0xff] }
 0x363   : > { %7013 = vmatpush3.bf16.msra.mxu1 %v7978_v22  ;;  %v13812_v22 = vld [vmem:[#allocation58_spill] sm:$0xff] }
 0x364   : > { %7014 = vmatprep.subr.bf16.mxu1 %v7983_v26  ;;  %v7990_v26 = vld [vmem:[#allocation8 + $0x218] sm:$0xff]  }
 0x365   : > { %4150 = vmatmul.mubr.bf16.gmra.mrb[204].mxu0 %v13788_v63  ;;  %v13813_v63 = vld [vmem:[#allocation95_spill] sm:$0xff] }
 0x366   : > { %4157 = vmatprep.mubr.bf16.mxu0 %v13789_v31  ;;  %7357 = vmatmul.mubr.bf16.gmra.mrb[108].mxu1 %v13790_v30  ;;  %v13814_v30 = vld [vmem:[#allocation49_spill] sm:$0xff] }
 0x367   : > { %7360 = vmatprep.mubr.bf16.mxu1 %v13791_v16  ;;  %7015 = vmatpush3.bf16.msra.mxu1 %v7984_v47  ;;  %v13815_v16 = vld [vmem:[#allocation72_spill] sm:$0xff] }
 0x368   : > { %7376 = vmatprep.subr.bf16.mxu1 %v7987_v9  ;;  %v13816_v47 = vld [vmem:[#allocation28_spill] sm:$0xff] }
 0x36d   : > { %4158 = vmatmul.mubr.bf16.gmra.mrb[208].mxu0 %v13792_v12 }
 0x36e   : > { %4165 = vmatprep.mubr.bf16.mxu0 %v13793_v5  ;;  %7361 = vmatmul.mubr.bf16.gmra.mrb[112].mxu1 %v13794_v11  ;;  %v3587_v11 = vsel %vm13717_vm11, %v13720_v10, %v13816_v47  ;;  %v13832_v47 = vld [vmem:[#allocation86_spill] sm:$0xff] }
 0x36f   : > { %7364 = vmatprep.mubr.bf16.mxu1 %v13795_v18  ;;  %v3617_v18 = vpack.c.bf16 %v13810_v61, %v3587_v11 }
 0x375   : > { %4166 = vmatmul.mubr.bf16.gmra.mrb[212].mxu0 %v13796_v40  ;;  %v7992_v40 = vld [vmem:[#allocation8 + $0x228] sm:$0xff]  }
 0x376   : > { %4173 = vmatprep.mubr.bf16.mxu0 %v13797_v25  ;;  %7365 = vmatmul.mubr.bf16.gmra.mrb[116].mxu1 %v13798_v3  ;;  %v13818_v3 = vld [vmem:[#allocation78_spill] sm:$0xff] }
 0x377   : > { %7368 = vmatprep.mubr.bf16.mxu1 %v13799_v32  ;;  %v7993_v32 = vld [vmem:[#allocation8 + $0x230] sm:$0xff]  }
 0x37d   : > { %4174 = vmatmul.mubr.bf16.gmra.mrb[216].mxu0 %v13802_v4  ;;  %v13820_v4 = vld [vmem:[#allocation82_spill] sm:$0xff] }
 0x37e   : > { %4181 = vmatprep.mubr.bf16.mxu0 %v11923_v42  ;;  %7369 = vmatmul.mubr.bf16.gmra.mrb[120].mxu1 %v13803_v46  ;;  %v13823_v46 = vld [vmem:[#allocation91_spill] sm:$0xff] }
 0x37f   : > { %7372 = vmatprep.mubr.bf16.mxu1 %v13804_v57  ;;  %v13824_v57 = vld [vmem:[#allocation43_spill] sm:$0xff] }
 0x385   : > { %4182 = vmatmul.mubr.bf16.gmra.mrb[220].mxu0 %v11639_v29  ;;  %v7989_v29 = vld [vmem:[#allocation8 + $0x210] sm:$0xff]  }
 0x386   : > { %4527 = vmatprep.mubr.bf16.mxu0 %v13805_v1  ;;  %7373 = vmatmul.mubr.bf16.gmra.mrb[124].mxu1 %v13806_v28 }
 0x387   : > { %5314 = vmatprep.mubr.bf16.mxu1 %v13805_v1 }
 0x38d   : > { %4528 = vmatmul.mubr.bf16.vlgmr.msra.gmra.mrb[224].mxu0 %v3615_v52 }
 0x38e   : > { %4535 = vmatprep.mubr.bf16.mxu0 %v13811_v23  ;;  %5315 = vmatmul.mubr.bf16.vlgmr.msra.gmra.mrb[128].mxu1 %v3615_v52 }
 0x38f   : > { %5322 = vmatprep.mubr.bf16.mxu1 %v13812_v22  ;;  %7377 = vmatpush3.bf16.msra.mxu1 %v7987_v9  ;;  %v7991_v9 = vld [vmem:[#allocation8 + $0x220] sm:$0xff]  }
 0x390   : > { %7378 = vmatprep.subr.bf16.mxu1 %v7988_v8 }
 0x393   : > { %7379 = vmatpush3.bf16.msra.mxu1 %v7988_v8 }
 0x394   : > { %7380 = vmatprep.subr.bf16.mxu1 %v7989_v29 }
 0x395   : > { %4536 = vmatmul.mubr.bf16.gmra.mrb[228].mxu0 %v13813_v63 }
 0x396   : > { %4543 = vmatprep.mubr.bf16.mxu0 %v13805_v1  ;;  %5323 = vmatmul.mubr.bf16.gmra.mrb[132].mxu1 %v13814_v30  ;;  %v13826_v1 = vld [vmem:[#allocation15_spill] sm:$0xff] }
 0x397   : > { %5330 = vmatprep.mubr.bf16.mxu1 %v13815_v16  ;;  %7381 = vmatpush3.bf16.msra.mxu1 %v7989_v29  ;;  %v13831_v29 = vld [vmem:[#allocation41_spill] sm:$0xff] }
 0x398   : > { %7382 = vmatprep.subr.bf16.mxu1 %v7990_v26 }
 0x39b   : > { %7383 = vmatpush3.bf16.msra.mxu1 %v7990_v26 }
 0x39c   : > { %7384 = vmatprep.subr.bf16.mxu1 %v7991_v9 }
 0x39d   : > { %4544 = vmatmul.mubr.bf16.gmra.mrb[232].mxu0 %v3617_v18 }
 0x39e   : > { %4551 = vmatprep.mubr.bf16.mxu0 %v13812_v22  ;;  %5331 = vmatmul.mubr.bf16.gmra.mrb[136].mxu1 %v11674_v54  ;;  %v13821_v54 = vld [vmem:[#allocation85_spill] sm:$0xff] }
 0x39f   : > { %5338 = vmatprep.mubr.bf16.mxu1 %v13818_v3  ;;  %7385 = vmatpush3.bf16.msra.mxu1 %v7991_v9 }
 0x3a0   : > { %7386 = vmatprep.subr.bf16.mxu1 %v7992_v40 }
 0x3a3   : > { %7387 = vmatpush3.bf16.msra.mxu1 %v7992_v40  ;;  %v13833_v40 = vld [vmem:[#allocation87_spill] sm:$0xff] }
 0x3a4   : > { %7388 = vmatprep.subr.bf16.mxu1 %v7993_v32 }
 0x3a5   : > { %4552 = vmatmul.mubr.bf16.gmra.mrb[236].mxu0 %v11677_v50  ;;  %v13822_v50 = vld [vmem:[#allocation55_spill] sm:$0xff] }
 0x3a6   : > { %4559 = vmatprep.mubr.bf16.mxu0 %v13815_v16  ;;  %5339 = vmatmul.mubr.bf16.gmra.mrb[140].mxu1 %v13819_v55  ;;  %v13835_v55 = vld [vmem:[#allocation73_spill] sm:$0xff] }
 0x3a7   : > { %5346 = vmatprep.mubr.bf16.mxu1 %v13820_v4  ;;  %7389 = vmatpush3.bf16.msra.mxu1 %v7993_v32  ;;  %vm13836_vm9 = vnez %v13835_v55 }
 0x3a8   : > { %7390 = vmatprep.subr.bf16.mxu1 %v7994_v14 }
 0x3ab   : > { %7391 = vmatpush3.bf16.msra.mxu1 %v7994_v14  ;;  %v13834_v14 = vld [vmem:[#allocation61_spill] sm:$0xff] }
 0x3ad   : > { %4560 = vmatmul.mubr.bf16.gmra.mrb[240].mxu0 %v11700_v39  ;;  %v13825_v39 = vld [vmem:[#allocation100_spill] sm:$0xff] }
 0x3ae   : > { %4567 = vmatprep.mubr.bf16.mxu0 %v13818_v3  ;;  %5347 = vmatmul.mubr.bf16.gmra.mrb[144].mxu1 %v11703_v41  ;;  %v13827_v41 = vld [vmem:[#allocation99_spill] sm:$0xff] }
 0x3af   : > { %5354 = vmatprep.mubr.bf16.mxu1 %v13821_v54 }
 0x3b5   : > { %4568 = vmatmul.mubr.bf16.gmra.mrb[244].mxu0 %v13822_v50  ;;  %v13837_v50 = vld [vmem:[#allocation93_spill] sm:$0xff] }
 0x3b6   : > { %4575 = vmatprep.mubr.bf16.mxu0 %v13820_v4  ;;  %5355 = vmatmul.mubr.bf16.gmra.mrb[148].mxu1 %v11714_v58  ;;  %v13828_v58 = vld [vmem:[#allocation46_spill] sm:$0xff]  ;;  %v5042_v4 = vsel %vm13836_vm9, %v13810_v61, %v13834_v14 }
 0x3b7   : > { %5362 = vmatprep.mubr.bf16.mxu1 %v13823_v46 }
 0x3bd   : > { %4576 = vmatmul.mubr.bf16.gmra.mrb[248].mxu0 %v11730_v43  ;;  %v13829_v43 = vld [vmem:[#allocation50_spill] sm:$0xff] }
 0x3be   : > { %4583 = vmatprep.mubr.bf16.mxu0 %v13821_v54  ;;  %5363 = vmatmul.mubr.bf16.gmra.mrb[152].mxu1 %v13824_v57 }
 0x3bf   : > { %5370 = vmatprep.mubr.bf16.mxu1 %v13825_v39 }
 0x3c5   : > { %4584 = vmatmul.mubr.bf16.gmra.mrb[252].mxu0 %v13826_v1 }
 0x3c6   : > { %4591 = vmatprep.mubr.bf16.mxu0 %v13823_v46  ;;  %5371 = vmatmul.mubr.bf16.gmra.mrb[156].mxu1 %v11743_v21  ;;  %v6744_v21 = vpop.f32.mrb[160].mxu0  ;;  %v5073_v46 = vpack.c.bf16 %v5042_v4, %v13720_v10 }
 0x3c7   : > { %5378 = vmatprep.mubr.bf16.mxu1 %v13750_v6 }
 0x3cd   : > { %4592 = vmatmul.mubr.bf16.gmra.mrb[0].mxu0 %v13827_v41 }
 0x3ce   : > { %4599 = vmatprep.mubr.bf16.mxu0 %v13825_v39  ;;  %5379 = vmatmul.mubr.bf16.gmra.mrb[160].mxu1 %v11758_v59  ;;  %v6745_v59 = vpop.f32.mrb[161].mxu0 }
 0x3cf   : > { %5386 = vmatprep.mubr.bf16.mxu1 %v13781_v37  ;;  %v11984_v13 = vadd.f32 %v6745_v59, %v6744_v21  ;;  %v6747_v45 = vpop.f32.mrb[162].mxu0 }
 0x3d0   : > { %v6748_v35 = vpop.f32.mrb[163].mxu0 }
 0x3d1   : > { %v11986_v52 = vadd.f32 %v6748_v35, %v6747_v45 }
 0x3d5   : > { %4600 = vmatmul.mubr.bf16.gmra.mrb[4].mxu0 %v13828_v58  ;;  %v13838_v58 = vld [vmem:[#allocation60_spill] sm:$0xff] }
 0x3d6   : > { %4607 = vmatprep.mubr.bf16.mxu0 %v13750_v6  ;;  %5387 = vmatmul.mubr.bf16.gmra.mrb[164].mxu1 %v11761_v24  ;;  %v13830_v6 = vld [vmem:[#allocation74_spill] sm:$0xff]  ;;  %v6750_v24 = vpop.f32.mrb[164].mxu0 }
 0x3d7   : > { %5394 = vmatprep.mubr.bf16.mxu1 %v13785_v49 }
 0x3dd   : > { %4608 = vmatmul.mubr.bf16.gmra.mrb[8].mxu0 %v13829_v43 }
 0x3de   : > { %4615 = vmatprep.mubr.bf16.mxu0 %v13781_v37  ;;  %5395 = vmatmul.mubr.bf16.gmra.mrb[168].mxu1 %v11764_v44  ;;  %v6751_v44 = vpop.f32.mrb[165].mxu0 }
 0x3df   : > { %5402 = vmatprep.mubr.bf16.mxu1 %v13789_v31  ;;  %v11992_v37 = vadd.f32 %v6751_v44, %v6750_v24  ;;  %v6753_v8 = vpop.f32.mrb[166].mxu0 }
 0x3e0   : > { %v6754_v23 = vpop.f32.mrb[167].mxu0 }
 0x3e1   : > { %v11994_v22 = vadd.f32 %v6754_v23, %v6753_v8 }
 0x3e5   : > { %4616 = vmatmul.mubr.bf16.gmra.mrb[12].mxu0 %v13830_v6 }
 0x3e6   : > { %4623 = vmatprep.mubr.bf16.mxu0 %v13785_v49  ;;  %5403 = vmatmul.mubr.bf16.gmra.mrb[172].mxu1 %v11771_v34  ;;  %v6756_v49 = vpop.f32.mrb[168].mxu0 }
 0x3e7   : > { %5410 = vmatprep.mubr.bf16.mxu1 %v13793_v5  ;;  %v6757_v34 = vpop.f32.mrb[169].mxu0 }
 0x3e8   : > { %v12000_v63 = vadd.f32 %v6757_v34, %v6756_v49  ;;  %v6759_v26 = vpop.f32.mrb[170].mxu0 }
 0x3e9   : > { %v6760_v30 = vpop.f32.mrb[171].mxu0 }
 0x3ea   : > { %v12002_v16 = vadd.f32 %v6760_v30, %v6759_v26 }
 0x3ed   : > { %4624 = vmatmul.mubr.bf16.gmra.mrb[16].mxu0 %v13831_v29 }
 0x3ee   : > { %4631 = vmatprep.mubr.bf16.mxu0 %v13789_v31  ;;  %5411 = vmatmul.mubr.bf16.gmra.mrb[176].mxu1 %v11785_v27  ;;  %v6762_v31 = vpop.f32.mrb[172].mxu0 }
 0x3ef   : > { %5418 = vmatprep.mubr.bf16.mxu1 %v13797_v25  ;;  %v6763_v27 = vpop.f32.mrb[173].mxu0 }
 0x3f0   : > { %v12008_v12 = vadd.f32 %v6763_v27, %v6762_v31  ;;  %v6765_v11 = vpop.f32.mrb[174].mxu0 }
 0x3f1   : > { %v6766_v9 = vpop.f32.mrb[175].mxu0 }
 0x3f2   : > { %v12010_v18 = vadd.f32 %v6766_v9, %v6765_v11 }
 0x3f5   : > { %4632 = vmatmul.mubr.bf16.gmra.mrb[20].mxu0 %v13832_v47 }
 0x3f6   : > { %4639 = vmatprep.mubr.bf16.mxu0 %v13793_v5  ;;  %5419 = vmatmul.mubr.bf16.gmra.mrb[180].mxu1 %v11788_v0  ;;  %v6768_v5 = vpop.f32.mrb[176].mxu0 }
 0x3f7   : > { %5426 = vmatprep.mubr.bf16.mxu1 %v11923_v42  ;;  %v6769_v0 = vpop.f32.mrb[177].mxu0 }
 0x3f8   : > { %v12016_v3 = vadd.f32 %v6769_v0, %v6768_v5  ;;  %v6771_v42 = vpop.f32.mrb[178].mxu0 }
 0x3f9   : > { %v6772_v32 = vpop.f32.mrb[179].mxu0 }
 0x3fa   : > { %v12022_v54 = vadd.f32 %v6772_v32, %v6771_v42 }
 0x3fd   : > { %4640 = vmatmul.mubr.bf16.gmra.mrb[24].mxu0 %v13833_v40 }
 0x3fe   : > { %4647 = vmatprep.mubr.bf16.mxu0 %v13797_v25  ;;  %5427 = vmatmul.mubr.bf16.gmra.mrb[184].mxu1 %v11791_v53  ;;  %v6774_v53 = vpop.f32.mrb[180].mxu0 }
 0x3ff   : > { %5434 = vmatprep.mubr.bf16.mxu1 %v13797_v25  ;;  %v6775_v25 = vpop.f32.mrb[181].mxu0 }
 0x400   : > { %v12027_v57 = vadd.f32 %v6775_v25, %v6774_v53  ;;  %v6777_v39 = vpop.f32.mrb[182].mxu0 }
 0x401   : > { %v6778_v1 = vpop.f32.mrb[183].mxu0 }
 0x402   : > { %v12029_v41 = vadd.f32 %v6778_v1, %v6777_v39 }
 0x405   : > { %4648 = vmatmul.mubr.bf16.gmra.mrb[28].mxu0 %v13837_v50 }
 0x406   : > { %5435 = vmatmul.mubr.bf16.gmra.mrb[188].mxu1 %v11811_v56 }
 0x407   : > { %7392 = vmatprep.mubr.bf16.mxu1 %v5073_v46  ;;  %v6780_v61 = vpop.f32.mrb[184].mxu0 }
 0x408   : > { %v6781_v43 = vpop.f32.mrb[185].mxu0 }
 0x409   : > { %v12033_v21 = vadd.f32 %v6781_v43, %v6780_v61  ;;  %v6783_v10 = vpop.f32.mrb[186].mxu0 }
 0x40a   : > { %v6784_v59 = vpop.f32.mrb[187].mxu0 }
 0x40b   : > { %v12035_v56 = vadd.f32 %v6784_v59, %v6783_v10 }
 0x40e   : > { %7393 = vmatmul.mubr.bf16.vlgmr.msra.gmra.mrb[96].mxu1 %v13838_v58 }
 0x40f   : > { %7396 = vmatprep.mubr.bf16.mxu1 %v11814_v7  ;;  %v6786_v45 = vpop.f32.mrb[188].mxu0 }
 0x410   : > { %v6787_v35 = vpop.f32.mrb[189].mxu0 }
 0x411   : > { %v12039_v6 = vadd.f32 %v6787_v35, %v6786_v45  ;;  %v6789_v24 = vpop.f32.mrb[190].mxu0 }
 0x412   : > { %v6790_v44 = vpop.f32.mrb[191].mxu0 }
 0x413   : > { %v12041_v8 = vadd.f32 %v6790_v44, %v6789_v24 }
 0x416   : > { %7397 = vmatmul.mubr.bf16.gmra.mrb[100].mxu1 %v11817_v38 }
 0x417   : > { %7400 = vmatprep.mubr.bf16.mxu1 %v11838_v19 }
 0x41a   : > { %v6792_v7 = vpop.f32.mrb[192].mxu0 }
 0x41b   : > { %v6793_v23 = vpop.f32.mrb[193].mxu0 }
 0x41c   : > { %v12045_v29 = vadd.f32 %v6793_v23, %v6792_v7  ;;  %v6795_v49 = vpop.f32.mrb[194].mxu0 }
 0x41d   : > { %v6796_v38 = vpop.f32.mrb[195].mxu0 }
 0x41e   : > { %7401 = vmatmul.mubr.bf16.gmra.mrb[104].mxu1 %v11841_v48  ;;  %v12047_v34 = vadd.f32 %v6796_v38, %v6795_v49 }
 0x41f   : > { %7404 = vmatprep.mubr.bf16.mxu1 %v11844_v15 }
 0x426   : > { %7405 = vmatmul.mubr.bf16.gmra.mrb[108].mxu1 %v11847_v51 }
 0x427   : > { %7408 = vmatprep.mubr.bf16.mxu1 %v11862_v60 }
 0x428   : > { %v6798_v19 = vpop.f32.mrb[196].mxu0 }
 0x429   : > { %v6799_v26 = vpop.f32.mrb[197].mxu0 }
 0x42a   : > { %v12051_v30 = vadd.f32 %v6799_v26, %v6798_v19  ;;  %v6801_v47 = vpop.f32.mrb[198].mxu0 }
 0x42b   : > { %v6802_v48 = vpop.f32.mrb[199].mxu0 }
 0x42c   : > { %v12053_v31 = vadd.f32 %v6802_v48, %v6801_v47 }
 0x42e   : > { %7409 = vmatmul.mubr.bf16.gmra.mrb[112].mxu1 %v11865_v17 }
 0x42f   : > { %7412 = vmatprep.mubr.bf16.mxu1 %v11868_v33 }
 0x430   : > { %v6804_v15 = vpop.f32.mrb[200].mxu0 }
 0x431   : > { %v6805_v27 = vpop.f32.mrb[201].mxu0 }
 0x432   : > { %v12057_v11 = vadd.f32 %v6805_v27, %v6804_v15  ;;  %v6807_v9 = vpop.f32.mrb[202].mxu0 }
 0x433   : > { %v6808_v51 = vpop.f32.mrb[203].mxu0 }
 0x434   : > { %v12059_v40 = vadd.f32 %v6808_v51, %v6807_v9 }
 0x436   : > { %7413 = vmatmul.mubr.bf16.gmra.mrb[116].mxu1 %v11875_v20 }
 0x437   : > { %7416 = vmatprep.mubr.bf16.mxu1 %v11890_v36 }
 0x438   : > { %v6810_v60 = vpop.f32.mrb[204].mxu0 }
 0x439   : > { %v6811_v5 = vpop.f32.mrb[205].mxu0 }
 0x43a   : > { %v12063_v0 = vadd.f32 %v6811_v5, %v6810_v60  ;;  %v6813_v42 = vpop.f32.mrb[206].mxu0 }
 0x43b   : > { %v6814_v17 = vpop.f32.mrb[207].mxu0 }
 0x43c   : > { %v12065_v32 = vadd.f32 %v6814_v17, %v6813_v42 }
 0x43e   : > { %7417 = vmatmul.mubr.bf16.gmra.mrb[120].mxu1 %v11893_v2 }
 0x43f   : > { %7420 = vmatprep.mubr.bf16.mxu1 %v11899_v62 }
 0x440   : > { %v6816_v33 = vpop.f32.mrb[208].mxu0 }
 0x441   : > { %v6817_v14 = vpop.f32.mrb[209].mxu0 }
 0x442   : > { %v12069_v55 = vadd.f32 %v6817_v14, %v6816_v33  ;;  %v6819_v4 = vpop.f32.mrb[210].mxu0 }
 0x443   : > { %v6820_v20 = vpop.f32.mrb[211].mxu0 }
 0x444   : > { %v12071_v50 = vadd.f32 %v6820_v20, %v6819_v4 }
 0x446   : > { %7421 = vmatmul.mubr.bf16.gmra.mrb[124].mxu1 %v13806_v28 }
 0x448   : > { %v6822_v36 = vpop.f32.mrb[212].mxu0 }
 0x449   : > { %v6823_v46 = vpop.f32.mrb[213].mxu0 }
 0x44a   : > { %v12074_v53 = vadd.f32 %v6823_v46, %v6822_v36  ;;  %v6825_v25 = vpop.f32.mrb[214].mxu0 }
 0x44b   : > { %v6826_v39 = vpop.f32.mrb[215].mxu0 }
 0x44c   : > { %v12076_v1 = vadd.f32 %v6826_v39, %v6825_v25 }
 0x450   : > { %v6828_v2 = vpop.f32.mrb[216].mxu0 }
 0x451   : > { %v6829_v62 = vpop.f32.mrb[217].mxu0 }
 0x452   : > { %v12078_v58 = vadd.f32 %v6829_v62, %v6828_v2  ;;  %v6831_v61 = vpop.f32.mrb[218].mxu0 }
 0x453   : > { %v6832_v43 = vpop.f32.mrb[219].mxu0 }
 0x454   : > { %v12080_v10 = vadd.f32 %v6832_v43, %v6831_v61 }
 0x458   : > { %v6834_v59 = vpop.f32.mrb[220].mxu0 }
 0x459   : > { %v6835_v45 = vpop.f32.mrb[221].mxu0 }
 0x45a   : > { %v12082_v35 = vadd.f32 %v6835_v45, %v6834_v59  ;;  %v6837_v28 = vpop.f32.mrb[222].mxu0 }
 0x45b   : > { %v6838_v24 = vpop.f32.mrb[223].mxu0 }
 0x45c   : > { %v12084_v44 = vadd.f32 %v6838_v24, %v6837_v28 }
 0x460   : > { %v6880_v7 = vpop.f32.mrb[224].mxu0 }
 0x461   : > { %v6881_v23 = vpop.f32.mrb[225].mxu0  ;;  %v7016_v38 = vpop.f32.mrb[128].mxu1 }
 0x462   : > { %v6882_v49 = vadd.f32 %v6881_v23, %v6880_v7  ;;  %v6883_v19 = vpop.f32.mrb[226].mxu0  ;;  %v7017_v26 = vpop.f32.mrb[129].mxu1 }
 0x463   : > { %v6884_v47 = vpop.f32.mrb[227].mxu0  ;;  %v7018_v15 = vadd.f32 %v7017_v26, %v7016_v38  ;;  %v7019_v9 = vpop.f32.mrb[130].mxu1 }
 0x464   : > { %v7555_v48 = vadd.f32 %v6882_v49, %v11984_v13  ;;  %v6885_v27 = vadd.f32 %v6884_v47, %v6883_v19  ;;  %v7020_v51 = vpop.f32.mrb[131].mxu1 }
 0x465   : > { %v7021_v5 = vadd.f32 %v7020_v51, %v7019_v9 }
 0x466   : > { %v7561_v60 = vadd.f32 %v6885_v27, %v11986_v52  ;;  %v12088_v42 = vadd.f32 %v7555_v48, %v7018_v15 }
 0x468   : > { %v6886_v17 = vpop.f32.mrb[228].mxu0  ;;  %v12090_v33 = vadd.f32 %v7561_v60, %v7021_v5 }
 0x469   : > { %v6887_v14 = vpop.f32.mrb[229].mxu0  ;;  %v7022_v20 = vpop.f32.mrb[132].mxu1 }
 0x46a   : > { %v6888_v4 = vadd.f32 %v6887_v14, %v6886_v17  ;;  %v6889_v36 = vpop.f32.mrb[230].mxu0  ;;  %v7023_v46 = vpop.f32.mrb[133].mxu1 }
 0x46b   : > { %v6890_v25 = vpop.f32.mrb[231].mxu0  ;;  %v7024_v39 = vadd.f32 %v7023_v46, %v7022_v20  ;;  %v7025_v62 = vpop.f32.mrb[134].mxu1 }
 0x46c   : > { %v7552_v13 = vadd.f32 %v6888_v4, %v11992_v37  ;;  %v6891_v2 = vadd.f32 %v6890_v25, %v6889_v36  ;;  %v7026_v61 = vpop.f32.mrb[135].mxu1 }
 0x46d   : > { %v7027_v43 = vadd.f32 %v7026_v61, %v7025_v62 }
 0x46e   : > { %v7558_v52 = vadd.f32 %v6891_v2, %v11994_v22  ;;  %v12094_v59 = vadd.f32 %v7552_v13, %v7024_v39 }
 0x470   : > { %v6892_v45 = vpop.f32.mrb[232].mxu0  ;;  %v12096_v28 = vadd.f32 %v7558_v52, %v7027_v43 }
 0x471   : > { %v6893_v24 = vpop.f32.mrb[233].mxu0  ;;  %v7028_v23 = vpop.f32.mrb[136].mxu1 }
 0x472   : > { %v6894_v7 = vadd.f32 %v6893_v24, %v6892_v45  ;;  %v6895_v49 = vpop.f32.mrb[234].mxu0  ;;  %v7029_v38 = vpop.f32.mrb[137].mxu1 }
 0x473   : > { %v6896_v19 = vpop.f32.mrb[235].mxu0  ;;  %v7030_v26 = vadd.f32 %v7029_v38, %v7028_v23  ;;  %v7031_v48 = vpop.f32.mrb[138].mxu1 }
 0x474   : > { %v7567_v37 = vadd.f32 %v6894_v7, %v12000_v63  ;;  %v6897_v47 = vadd.f32 %v6896_v19, %v6895_v49  ;;  %v7032_v15 = vpop.f32.mrb[139].mxu1 }
 0x475   : > { %v7033_v27 = vadd.f32 %v7032_v15, %v7031_v48 }
 0x476   : > { %v7573_v22 = vadd.f32 %v6897_v47, %v12002_v16  ;;  %v12100_v9 = vadd.f32 %v7567_v37, %v7030_v26 }
 0x478   : > { %v6898_v51 = vpop.f32.mrb[236].mxu0  ;;  %v12102_v60 = vadd.f32 %v7573_v22, %v7033_v27 }
 0x479   : > { %v6899_v5 = vpop.f32.mrb[237].mxu0  ;;  %v7034_v14 = vpop.f32.mrb[140].mxu1 }
 0x47a   : > { %v6900_v17 = vadd.f32 %v6899_v5, %v6898_v51  ;;  %v6901_v4 = vpop.f32.mrb[238].mxu0  ;;  %v7035_v20 = vpop.f32.mrb[141].mxu1 }
 0x47b   : > { %v6902_v36 = vpop.f32.mrb[239].mxu0  ;;  %v7036_v46 = vadd.f32 %v7035_v20, %v7034_v14  ;;  %v7037_v13 = vpop.f32.mrb[142].mxu1 }
 0x47c   : > { %v7564_v63 = vadd.f32 %v6900_v17, %v12008_v12  ;;  %v6903_v25 = vadd.f32 %v6902_v36, %v6901_v4  ;;  %v7038_v39 = vpop.f32.mrb[143].mxu1 }
 0x47d   : > { %v7039_v2 = vadd.f32 %v7038_v39, %v7037_v13 }
 0x47e   : > { %v7570_v16 = vadd.f32 %v6903_v25, %v12010_v18  ;;  %v12106_v62 = vadd.f32 %v7564_v63, %v7036_v46 }
 0x480   : > { %v6904_v61 = vpop.f32.mrb[240].mxu0  ;;  %v12108_v52 = vadd.f32 %v7570_v16, %v7039_v2 }
 0x481   : > { %v6905_v43 = vpop.f32.mrb[241].mxu0  ;;  %v7040_v24 = vpop.f32.mrb[144].mxu1 }
 0x482   : > { %v6906_v45 = vadd.f32 %v6905_v43, %v6904_v61  ;;  %v6907_v7 = vpop.f32.mrb[242].mxu0  ;;  %v7041_v23 = vpop.f32.mrb[145].mxu1 }
 0x483   : > { %v6908_v49 = vpop.f32.mrb[243].mxu0  ;;  %v7042_v38 = vadd.f32 %v7041_v23, %v7040_v24  ;;  %v7043_v37 = vpop.f32.mrb[146].mxu1 }
 0x484   : > { %v7579_v12 = vadd.f32 %v6906_v45, %v12016_v3  ;;  %v6909_v19 = vadd.f32 %v6908_v49, %v6907_v7  ;;  %v7044_v26 = vpop.f32.mrb[147].mxu1 }
 0x485   : > { %v7045_v47 = vadd.f32 %v7044_v26, %v7043_v37 }
 0x486   : > { %v7585_v18 = vadd.f32 %v6909_v19, %v12022_v54  ;;  %v12112_v48 = vadd.f32 %v7579_v12, %v7042_v38 }
 0x488   : > { %v6910_v15 = vpop.f32.mrb[244].mxu0  ;;  %v12114_v22 = vadd.f32 %v7585_v18, %v7045_v47 }
 0x489   : > { %v6911_v27 = vpop.f32.mrb[245].mxu0  ;;  %v7046_v5 = vpop.f32.mrb[148].mxu1 }
 0x48a   : > { %v6912_v51 = vadd.f32 %v6911_v27, %v6910_v15  ;;  %v6913_v17 = vpop.f32.mrb[246].mxu0  ;;  %v7047_v14 = vpop.f32.mrb[149].mxu1 }
 0x48b   : > { %v6914_v4 = vpop.f32.mrb[247].mxu0  ;;  %v7048_v20 = vadd.f32 %v7047_v14, %v7046_v5  ;;  %v7049_v63 = vpop.f32.mrb[150].mxu1 }
 0x48c   : > { %v7576_v3 = vadd.f32 %v6912_v51, %v12027_v57  ;;  %v6915_v36 = vadd.f32 %v6914_v4, %v6913_v17  ;;  %v7050_v46 = vpop.f32.mrb[151].mxu1 }
 0x48d   : > { %v7051_v25 = vadd.f32 %v7050_v46, %v7049_v63 }
 0x48e   : > { %v7582_v54 = vadd.f32 %v6915_v36, %v12029_v41  ;;  %v12118_v13 = vadd.f32 %v7576_v3, %v7048_v20 }
 0x490   : > { %v6916_v39 = vpop.f32.mrb[248].mxu0  ;;  %v12120_v16 = vadd.f32 %v7582_v54, %v7051_v25 }
 0x491   : > { %v6917_v2 = vpop.f32.mrb[249].mxu0  ;;  %v7052_v43 = vpop.f32.mrb[152].mxu1 }
 0x492   : > { %v6918_v61 = vadd.f32 %v6917_v2, %v6916_v39  ;;  %v6919_v45 = vpop.f32.mrb[250].mxu0  ;;  %v7053_v24 = vpop.f32.mrb[153].mxu1 }
 0x493   : > { %v6920_v7 = vpop.f32.mrb[251].mxu0  ;;  %v7054_v23 = vadd.f32 %v7053_v24, %v7052_v43  ;;  %v7055_v12 = vpop.f32.mrb[154].mxu1 }
 0x494   : > { %v7591_v57 = vadd.f32 %v6918_v61, %v12033_v21  ;;  %v6921_v49 = vadd.f32 %v6920_v7, %v6919_v45  ;;  %v7056_v38 = vpop.f32.mrb[155].mxu1 }
 0x495   : > { %v7057_v19 = vadd.f32 %v7056_v38, %v7055_v12 }
 0x496   : > { %v7597_v41 = vadd.f32 %v6921_v49, %v12035_v56  ;;  %v12124_v37 = vadd.f32 %v7591_v57, %v7054_v23 }
 0x498   : > { %v6922_v26 = vpop.f32.mrb[252].mxu0  ;;  %v12126_v18 = vadd.f32 %v7597_v41, %v7057_v19 }
 0x499   : > { %v6923_v47 = vpop.f32.mrb[253].mxu0  ;;  %v7058_v27 = vpop.f32.mrb[156].mxu1 }
 0x49a   : > { %v6924_v15 = vadd.f32 %v6923_v47, %v6922_v26  ;;  %v6925_v51 = vpop.f32.mrb[254].mxu0  ;;  %v7059_v5 = vpop.f32.mrb[157].mxu1 }
 0x49b   : > { %v6926_v17 = vpop.f32.mrb[255].mxu0  ;;  %v7060_v14 = vadd.f32 %v7059_v5, %v7058_v27  ;;  %v7061_v3 = vpop.f32.mrb[158].mxu1 }
 0x49c   : > { %v7588_v21 = vadd.f32 %v6924_v15, %v12039_v6  ;;  %v6927_v4 = vadd.f32 %v6926_v17, %v6925_v51  ;;  %v7062_v20 = vpop.f32.mrb[159].mxu1 }
 0x49d   : > { %v7063_v36 = vadd.f32 %v7062_v20, %v7061_v3 }
 0x49e   : > { %v7594_v56 = vadd.f32 %v6927_v4, %v12041_v8  ;;  %v12130_v63 = vadd.f32 %v7588_v21, %v7060_v14 }
 0x4a0   : > { %v6928_v46 = vpop.f32.mrb[0].mxu0  ;;  %v12132_v54 = vadd.f32 %v7594_v56, %v7063_v36 }
 0x4a1   : > { %v6929_v25 = vpop.f32.mrb[1].mxu0  ;;  %v7064_v2 = vpop.f32.mrb[160].mxu1 }
 0x4a2   : > { %v6930_v39 = vadd.f32 %v6929_v25, %v6928_v46  ;;  %v6931_v61 = vpop.f32.mrb[2].mxu0  ;;  %v7065_v43 = vpop.f32.mrb[161].mxu1 }
 0x4a3   : > { %v6932_v45 = vpop.f32.mrb[3].mxu0  ;;  %v7066_v24 = vadd.f32 %v7065_v43, %v7064_v2  ;;  %v7067_v57 = vpop.f32.mrb[162].mxu1 }
 0x4a4   : > { %v7603_v6 = vadd.f32 %v6930_v39, %v12045_v29  ;;  %v6933_v7 = vadd.f32 %v6932_v45, %v6931_v61  ;;  %v7068_v23 = vpop.f32.mrb[163].mxu1 }
 0x4a5   : > { %v7069_v49 = vadd.f32 %v7068_v23, %v7067_v57 }
 0x4a6   : > { %v7609_v8 = vadd.f32 %v6933_v7, %v12047_v34  ;;  %v12136_v12 = vadd.f32 %v7603_v6, %v7066_v24 }
 0x4a8   : > { %v6934_v38 = vpop.f32.mrb[4].mxu0  ;;  %v12138_v41 = vadd.f32 %v7609_v8, %v7069_v49 }
 0x4a9   : > { %v6935_v19 = vpop.f32.mrb[5].mxu0  ;;  %v7070_v47 = vpop.f32.mrb[164].mxu1 }
 0x4aa   : > { %v6936_v26 = vadd.f32 %v6935_v19, %v6934_v38  ;;  %v6937_v15 = vpop.f32.mrb[6].mxu0  ;;  %v7071_v27 = vpop.f32.mrb[165].mxu1 }
 0x4ab   : > { %v6938_v51 = vpop.f32.mrb[7].mxu0  ;;  %v7072_v5 = vadd.f32 %v7071_v27, %v7070_v47  ;;  %v7073_v21 = vpop.f32.mrb[166].mxu1 }
 0x4ac   : > { %v7600_v29 = vadd.f32 %v6936_v26, %v12051_v30  ;;  %v6939_v17 = vadd.f32 %v6938_v51, %v6937_v15  ;;  %v7074_v14 = vpop.f32.mrb[167].mxu1 }
 0x4ad   : > { %v7075_v4 = vadd.f32 %v7074_v14, %v7073_v21 }
 0x4ae   : > { %v7606_v34 = vadd.f32 %v6939_v17, %v12053_v31  ;;  %v12142_v3 = vadd.f32 %v7600_v29, %v7072_v5 }
 0x4b0   : > { %v6940_v20 = vpop.f32.mrb[8].mxu0  ;;  %v12144_v56 = vadd.f32 %v7606_v34, %v7075_v4 }
 0x4b1   : > { %v6941_v36 = vpop.f32.mrb[9].mxu0  ;;  %v7076_v25 = vpop.f32.mrb[168].mxu1 }
 0x4b2   : > { %v6942_v46 = vadd.f32 %v6941_v36, %v6940_v20  ;;  %v6943_v39 = vpop.f32.mrb[10].mxu0  ;;  %v7077_v2 = vpop.f32.mrb[169].mxu1 }
 0x4b3   : > { %v6944_v61 = vpop.f32.mrb[11].mxu0  ;;  %v7078_v43 = vadd.f32 %v7077_v2, %v7076_v25  ;;  %v7079_v6 = vpop.f32.mrb[170].mxu1 }
 0x4b4   : > { %v7615_v30 = vadd.f32 %v6942_v46, %v12057_v11  ;;  %v6945_v45 = vadd.f32 %v6944_v61, %v6943_v39  ;;  %v7080_v24 = vpop.f32.mrb[171].mxu1 }
 0x4b5   : > { %v7081_v7 = vadd.f32 %v7080_v24, %v7079_v6 }
 0x4b6   : > { %v7621_v31 = vadd.f32 %v6945_v45, %v12059_v40  ;;  %v12148_v57 = vadd.f32 %v7615_v30, %v7078_v43 }
 0x4b8   : > { %v6946_v23 = vpop.f32.mrb[12].mxu0  ;;  %v12150_v8 = vadd.f32 %v7621_v31, %v7081_v7 }
 0x4b9   : > { %v6947_v49 = vpop.f32.mrb[13].mxu0  ;;  %v7082_v19 = vpop.f32.mrb[172].mxu1 }
 0x4ba   : > { %v6948_v38 = vadd.f32 %v6947_v49, %v6946_v23  ;;  %v6949_v26 = vpop.f32.mrb[14].mxu0  ;;  %v7083_v47 = vpop.f32.mrb[173].mxu1 }
 0x4bb   : > { %v6950_v15 = vpop.f32.mrb[15].mxu0  ;;  %v7084_v27 = vadd.f32 %v7083_v47, %v7082_v19  ;;  %v7085_v29 = vpop.f32.mrb[174].mxu1 }
 0x4bc   : > { %v7612_v11 = vadd.f32 %v6948_v38, %v12063_v0  ;;  %v6951_v51 = vadd.f32 %v6950_v15, %v6949_v26  ;;  %v7086_v5 = vpop.f32.mrb[175].mxu1 }
 0x4bd   : > { %v7087_v17 = vadd.f32 %v7086_v5, %v7085_v29 }
 0x4be   : > { %v7618_v40 = vadd.f32 %v6951_v51, %v12065_v32  ;;  %v12154_v21 = vadd.f32 %v7612_v11, %v7084_v27 }
 0x4c0   : > { %v6952_v14 = vpop.f32.mrb[16].mxu0  ;;  %v12156_v34 = vadd.f32 %v7618_v40, %v7087_v17 }
 0x4c1   : > { %v6953_v4 = vpop.f32.mrb[17].mxu0  ;;  %v7088_v36 = vpop.f32.mrb[176].mxu1 }
 0x4c2   : > { %v6954_v20 = vadd.f32 %v6953_v4, %v6952_v14  ;;  %v6955_v46 = vpop.f32.mrb[18].mxu0  ;;  %v7089_v25 = vpop.f32.mrb[177].mxu1 }
 0x4c3   : > { %v6956_v39 = vpop.f32.mrb[19].mxu0  ;;  %v7090_v2 = vadd.f32 %v7089_v25, %v7088_v36  ;;  %v7091_v30 = vpop.f32.mrb[178].mxu1 }
 0x4c4   : > { %v7627_v0 = vadd.f32 %v6954_v20, %v12069_v55  ;;  %v6957_v61 = vadd.f32 %v6956_v39, %v6955_v46  ;;  %v7092_v43 = vpop.f32.mrb[179].mxu1 }
 0x4c5   : > { %v7093_v45 = vadd.f32 %v7092_v43, %v7091_v30 }
 0x4c6   : > { %v7633_v32 = vadd.f32 %v6957_v61, %v12071_v50  ;;  %v12160_v6 = vadd.f32 %v7627_v0, %v7090_v2 }
 0x4c8   : > { %v6958_v24 = vpop.f32.mrb[20].mxu0  ;;  %v12162_v31 = vadd.f32 %v7633_v32, %v7093_v45 }
 0x4c9   : > { %v6959_v7 = vpop.f32.mrb[21].mxu0  ;;  %v7094_v49 = vpop.f32.mrb[180].mxu1 }
 0x4ca   : > { %v6960_v23 = vadd.f32 %v6959_v7, %v6958_v24  ;;  %v6961_v38 = vpop.f32.mrb[22].mxu0  ;;  %v7095_v19 = vpop.f32.mrb[181].mxu1 }
 0x4cb   : > { %v6962_v26 = vpop.f32.mrb[23].mxu0  ;;  %v7096_v47 = vadd.f32 %v7095_v19, %v7094_v49  ;;  %v7097_v11 = vpop.f32.mrb[182].mxu1 }
 0x4cc   : > { %v7624_v55 = vadd.f32 %v6960_v23, %v12074_v53  ;;  %v6963_v15 = vadd.f32 %v6962_v26, %v6961_v38  ;;  %v7098_v27 = vpop.f32.mrb[183].mxu1 }
 0x4cd   : > { %v7099_v51 = vadd.f32 %v7098_v27, %v7097_v11 }
 0x4ce   : > { %v7630_v50 = vadd.f32 %v6963_v15, %v12076_v1  ;;  %v12166_v29 = vadd.f32 %v7624_v55, %v7096_v47 }
 0x4d0   : > { %v6964_v5 = vpop.f32.mrb[24].mxu0  ;;  %v12168_v40 = vadd.f32 %v7630_v50, %v7099_v51 }
 0x4d1   : > { %v6965_v17 = vpop.f32.mrb[25].mxu0  ;;  %v7100_v4 = vpop.f32.mrb[184].mxu1 }
 0x4d2   : > { %v6966_v14 = vadd.f32 %v6965_v17, %v6964_v5  ;;  %v6967_v20 = vpop.f32.mrb[26].mxu0  ;;  %v7101_v36 = vpop.f32.mrb[185].mxu1 }
 0x4d3   : > { %v6968_v46 = vpop.f32.mrb[27].mxu0  ;;  %v7102_v25 = vadd.f32 %v7101_v36, %v7100_v4  ;;  %v7103_v0 = vpop.f32.mrb[186].mxu1 }
 0x4d4   : > { %v7639_v53 = vadd.f32 %v6966_v14, %v12078_v58  ;;  %v6969_v39 = vadd.f32 %v6968_v46, %v6967_v20  ;;  %v7104_v2 = vpop.f32.mrb[187].mxu1 }
 0x4d5   : > { %v7105_v61 = vadd.f32 %v7104_v2, %v7103_v0 }
 0x4d6   : > { %v7645_v1 = vadd.f32 %v6969_v39, %v12080_v10  ;;  %v12172_v30 = vadd.f32 %v7639_v53, %v7102_v25 }
 0x4d8   : > { %v6970_v43 = vpop.f32.mrb[28].mxu0  ;;  %v12174_v32 = vadd.f32 %v7645_v1, %v7105_v61 }
 0x4d9   : > { %v6971_v45 = vpop.f32.mrb[29].mxu0  ;;  %v7106_v7 = vpop.f32.mrb[188].mxu1 }
 0x4da   : > { %v6972_v24 = vadd.f32 %v6971_v45, %v6970_v43  ;;  %v6973_v23 = vpop.f32.mrb[30].mxu0  ;;  %v7107_v49 = vpop.f32.mrb[189].mxu1 }
 0x4db   : > { %v6974_v38 = vpop.f32.mrb[31].mxu0  ;;  %v7108_v19 = vadd.f32 %v7107_v49, %v7106_v7  ;;  %v7109_v55 = vpop.f32.mrb[190].mxu1 }
 0x4dc   : > { %v7636_v58 = vadd.f32 %v6972_v24, %v12082_v35  ;;  %v6975_v26 = vadd.f32 %v6974_v38, %v6973_v23  ;;  %v7110_v47 = vpop.f32.mrb[191].mxu1 }
 0x4dd   : > { %v7111_v15 = vadd.f32 %v7110_v47, %v7109_v55 }
 0x4de   : > { %v7642_v10 = vadd.f32 %v6975_v26, %v12084_v44  ;;  %v12178_v11 = vadd.f32 %v7636_v58, %v7108_v19 }
 0x4e0   : > { %v12180_v27 = vadd.f32 %v7642_v10, %v7111_v15 }
 0x4e1   : > { %v7394_v50 = vpop.f32.mrb[96].mxu1 }
 0x4e2   : > { %v12183_v51 = vadd.f32 %v12094_v59, %v7394_v50  ;;  %v5477_v5 = vpop.f32.mrb[97].mxu1 }
 0x4e3   : > { %v12186_v17 = vadd.f32 %v12088_v42, %v5477_v5  ;;  %v7395_v35 = vpop.f32.mrb[98].mxu1 }
 0x4e4   : > { %v12189_v14 = vadd.f32 %v12096_v28, %v7395_v35  ;;  %v5480_v4 = vpop.f32.mrb[99].mxu1  ;;  %v5675_v42 = vmul.f32 %v12183_v51, %v12183_v51 }
 0x4e5   : > { %v12192_v44 = vadd.f32 %v12090_v33, %v5480_v4  ;;  %v5673_v20 = vmul.f32 %v12186_v17, %v12186_v17 }
 0x4e6   : > { %v5676_v39 = vmul.f32 %v12189_v14, %v12189_v14 }
 0x4e7   : > { %v5636_v36 = vadd.f32 %v12192_v44, %v12186_v17  ;;  %v5674_v59 = vmul.f32 %v12192_v44, %v12192_v44 }
 0x4e9   : > { %v5637_v46 = vadd.f32 %v12183_v51, %v5636_v36  ;;  %v5705_v28 = vadd.f32 %v5674_v59, %v5673_v20  ;;  %v7398_v53 = vpop.f32.mrb[100].mxu1 }
 0x4ea   : > { %v12204_v25 = vadd.f32 %v12106_v62, %v7398_v53  ;;  %v5493_v33 = vpop.f32.mrb[101].mxu1 }
 0x4eb   : > { %v5706_v0 = vadd.f32 %v5705_v28, %v5675_v42  ;;  %v12209_v2 = vadd.f32 %v12100_v9, %v5493_v33  ;;  %v5638_v1 = vadd.f32 %v12189_v14, %v5637_v46  ;;  %v7399_v61 = vpop.f32.mrb[102].mxu1 }
 0x4ec   : > { %v12213_v43 = vadd.f32 %v12108_v52, %v7399_v61  ;;  %v5496_v45 = vpop.f32.mrb[103].mxu1  ;;  %v5679_v52 = vmul.f32 %v12204_v25, %v12204_v25 }
 0x4ed   : > { %v5639_v24 = vadd.f32 %v12209_v2, %v5638_v1  ;;  %v5677_v62 = vmul.f32 %v12209_v2, %v12209_v2  ;;  %v5707_v7 = vadd.f32 %v5706_v0, %v5676_v39  ;;  %v12219_v23 = vadd.f32 %v12102_v60, %v5496_v45 }
 0x4ee   : > { %v5680_v60 = vmul.f32 %v12213_v43, %v12213_v43 }
 0x4ef   : > { %v5708_v49 = vadd.f32 %v5707_v7, %v5677_v62  ;;  %v5640_v9 = vadd.f32 %v12219_v23, %v5639_v24  ;;  %v5678_v38 = vmul.f32 %v12219_v23, %v12219_v23 }
 0x4f1   : > { %v5641_v58 = vadd.f32 %v12204_v25, %v5640_v9  ;;  %v5709_v19 = vadd.f32 %v5708_v49, %v5678_v38  ;;  %v7402_v26 = vpop.f32.mrb[104].mxu1 }
 0x4f2   : > { %v12228_v55 = vadd.f32 %v12118_v13, %v7402_v26  ;;  %v5509_v47 = vpop.f32.mrb[105].mxu1 }
 0x4f3   : > { %v5710_v10 = vadd.f32 %v5709_v19, %v5679_v52  ;;  %v12233_v15 = vadd.f32 %v12112_v48, %v5509_v47  ;;  %v5642_v50 = vadd.f32 %v12213_v43, %v5641_v58  ;;  %v7403_v5 = vpop.f32.mrb[106].mxu1 }
 0x4f4   : > { %v12237_v35 = vadd.f32 %v12120_v16, %v7403_v5  ;;  %v5512_v4 = vpop.f32.mrb[107].mxu1  ;;  %v5683_v16 = vmul.f32 %v12228_v55, %v12228_v55 }
 0x4f5   : > { %v5643_v20 = vadd.f32 %v12233_v15, %v5642_v50  ;;  %v5681_v13 = vmul.f32 %v12233_v15, %v12233_v15  ;;  %v5711_v36 = vadd.f32 %v5710_v10, %v5680_v60  ;;  %v12243_v59 = vadd.f32 %v12114_v22, %v5512_v4 }
 0x4f6   : > { %v5684_v22 = vmul.f32 %v12237_v35, %v12237_v35 }
 0x4f7   : > { %v5712_v42 = vadd.f32 %v5711_v36, %v5681_v13  ;;  %v5644_v48 = vadd.f32 %v12243_v59, %v5643_v20  ;;  %v5682_v46 = vmul.f32 %v12243_v59, %v12243_v59 }
 0x4f9   : > { %v5645_v28 = vadd.f32 %v12228_v55, %v5644_v48  ;;  %v5713_v53 = vadd.f32 %v5712_v42, %v5682_v46  ;;  %v7406_v33 = vpop.f32.mrb[108].mxu1 }
 0x4fa   : > { %v12252_v39 = vadd.f32 %v12130_v63, %v7406_v33  ;;  %v5525_v0 = vpop.f32.mrb[109].mxu1 }
 0x4fb   : > { %v5714_v1 = vadd.f32 %v5713_v53, %v5683_v16  ;;  %v12257_v61 = vadd.f32 %v12124_v37, %v5525_v0  ;;  %v5646_v45 = vadd.f32 %v12237_v35, %v5645_v28  ;;  %v7407_v24 = vpop.f32.mrb[110].mxu1 }
 0x4fc   : > { %v12261_v62 = vadd.f32 %v12132_v54, %v7407_v24  ;;  %v5528_v7 = vpop.f32.mrb[111].mxu1  ;;  %v5687_v54 = vmul.f32 %v12252_v39, %v12252_v39 }
 0x4fd   : > { %v5647_v49 = vadd.f32 %v12257_v61, %v5646_v45  ;;  %v5685_v63 = vmul.f32 %v12257_v61, %v12257_v61  ;;  %v5715_v9 = vadd.f32 %v5714_v1, %v5684_v22  ;;  %v12267_v38 = vadd.f32 %v12126_v18, %v5528_v7 }
 0x4fe   : > { %v5688_v18 = vmul.f32 %v12261_v62, %v12261_v62 }
 0x4ff   : > { %v5716_v52 = vadd.f32 %v5715_v9, %v5685_v63  ;;  %v5648_v37 = vadd.f32 %v12267_v38, %v5647_v49  ;;  %v5686_v58 = vmul.f32 %v12267_v38, %v12267_v38 }
 0x501   : > { %v5649_v19 = vadd.f32 %v12252_v39, %v5648_v37  ;;  %v5717_v26 = vadd.f32 %v5716_v52, %v5686_v58  ;;  %v7410_v47 = vpop.f32.mrb[112].mxu1 }
 0x502   : > { %v12276_v60 = vadd.f32 %v12142_v3, %v7410_v47  ;;  %v5541_v10 = vpop.f32.mrb[113].mxu1 }
 0x503   : > { %v5718_v50 = vadd.f32 %v5717_v26, %v5687_v54  ;;  %v12281_v5 = vadd.f32 %v12136_v12, %v5541_v10  ;;  %v5650_v4 = vadd.f32 %v12261_v62, %v5649_v19  ;;  %v7411_v20 = vpop.f32.mrb[114].mxu1 }
 0x504   : > { %v12285_v13 = vadd.f32 %v12144_v56, %v7411_v20  ;;  %v5544_v36 = vpop.f32.mrb[115].mxu1  ;;  %v5691_v56 = vmul.f32 %v12276_v60, %v12276_v60 }
 0x505   : > { %v5651_v42 = vadd.f32 %v12281_v5, %v5650_v4  ;;  %v5689_v3 = vmul.f32 %v12281_v5, %v12281_v5  ;;  %v5719_v48 = vadd.f32 %v5718_v50, %v5688_v18  ;;  %v12291_v46 = vadd.f32 %v12138_v41, %v5544_v36 }
 0x506   : > { %v5692_v41 = vmul.f32 %v12285_v13, %v12285_v13 }
 0x507   : > { %v5720_v16 = vadd.f32 %v5719_v48, %v5689_v3  ;;  %v5652_v12 = vadd.f32 %v12291_v46, %v5651_v42  ;;  %v5690_v28 = vmul.f32 %v12291_v46, %v12291_v46 }
 0x509   : > { %v5653_v53 = vadd.f32 %v12276_v60, %v5652_v12  ;;  %v5721_v33 = vadd.f32 %v5720_v16, %v5690_v28  ;;  %v7414_v0 = vpop.f32.mrb[116].mxu1 }
 0x50a   : > { %v12300_v22 = vadd.f32 %v12154_v21, %v7414_v0  ;;  %v5557_v1 = vpop.f32.mrb[117].mxu1 }
 0x50b   : > { %v5722_v45 = vadd.f32 %v5721_v33, %v5691_v56  ;;  %v12305_v24 = vadd.f32 %v12148_v57, %v5557_v1  ;;  %v5654_v7 = vadd.f32 %v12285_v13, %v5653_v53  ;;  %v7415_v49 = vpop.f32.mrb[118].mxu1 }
 0x50c   : > { %v12309_v63 = vadd.f32 %v12156_v34, %v7415_v49  ;;  %v5560_v9 = vpop.f32.mrb[119].mxu1  ;;  %v5695_v34 = vmul.f32 %v12300_v22, %v12300_v22 }
 0x50d   : > { %v5655_v52 = vadd.f32 %v12305_v24, %v5654_v7  ;;  %v5693_v21 = vmul.f32 %v12305_v24, %v12305_v24  ;;  %v5723_v37 = vadd.f32 %v5722_v45, %v5692_v41  ;;  %v12315_v58 = vadd.f32 %v12150_v8, %v5560_v9 }
 0x50e   : > { %v5696_v8 = vmul.f32 %v12309_v63, %v12309_v63 }
 0x50f   : > { %v5724_v54 = vadd.f32 %v5723_v37, %v5693_v21  ;;  %v5656_v57 = vadd.f32 %v12315_v58, %v5655_v52  ;;  %v5694_v19 = vmul.f32 %v12315_v58, %v12315_v58 }
 0x511   : > { %v5657_v26 = vadd.f32 %v12300_v22, %v5656_v57  ;;  %v5725_v47 = vadd.f32 %v5724_v54, %v5694_v19  ;;  %v7418_v10 = vpop.f32.mrb[120].mxu1 }
 0x512   : > { %v12324_v18 = vadd.f32 %v12166_v29, %v7418_v10  ;;  %v5573_v50 = vpop.f32.mrb[121].mxu1 }
 0x513   : > { %v5726_v4 = vadd.f32 %v5725_v47, %v5695_v34  ;;  %v12329_v20 = vadd.f32 %v12160_v6, %v5573_v50  ;;  %v5658_v36 = vadd.f32 %v12309_v63, %v5657_v26  ;;  %v7419_v42 = vpop.f32.mrb[122].mxu1 }
 0x514   : > { %v12333_v3 = vadd.f32 %v12168_v40, %v7419_v42  ;;  %v5576_v48 = vpop.f32.mrb[123].mxu1  ;;  %v5699_v40 = vmul.f32 %v12324_v18, %v12324_v18 }
 0x515   : > { %v5659_v16 = vadd.f32 %v12329_v20, %v5658_v36  ;;  %v5697_v29 = vmul.f32 %v12329_v20, %v12329_v20  ;;  %v5727_v12 = vadd.f32 %v5726_v4, %v5696_v8  ;;  %v12339_v28 = vadd.f32 %v12162_v31, %v5576_v48 }
 0x516   : > { %v5700_v31 = vmul.f32 %v12333_v3, %v12333_v3 }
 0x517   : > { %v5728_v56 = vadd.f32 %v5727_v12, %v5697_v29  ;;  %v5660_v6 = vadd.f32 %v12339_v28, %v5659_v16  ;;  %v5698_v53 = vmul.f32 %v12339_v28, %v12339_v28 }
 0x519   : > { %v5661_v33 = vadd.f32 %v12324_v18, %v5660_v6  ;;  %v5729_v0 = vadd.f32 %v5728_v56, %v5698_v53  ;;  %v7422_v1 = vpop.f32.mrb[124].mxu1 }
 0x51a   : > { %v12348_v41 = vadd.f32 %v12178_v11, %v7422_v1  ;;  %v5589_v45 = vpop.f32.mrb[125].mxu1 }
 0x51b   : > { %v5730_v7 = vadd.f32 %v5729_v0, %v5699_v40  ;;  %v12353_v49 = vadd.f32 %v12172_v30, %v5589_v45  ;;  %v5662_v9 = vadd.f32 %v12333_v3, %v5661_v33  ;;  %v7423_v52 = vpop.f32.mrb[126].mxu1  ;;  %v12377_v45 = vld [vmem:[%s8403_s5 + $0x10] sm:$0xff]  }
 0x51c   : > { %v12357_v21 = vadd.f32 %v12180_v27, %v7423_v52  ;;  %v5592_v37 = vpop.f32.mrb[127].mxu1  ;;  %v5703_v27 = vmul.f32 %v12348_v41, %v12348_v41 }
 0x51d   : > { %v5663_v54 = vadd.f32 %v12353_v49, %v5662_v9  ;;  %v5701_v11 = vmul.f32 %v12353_v49, %v12353_v49  ;;  %v5731_v57 = vadd.f32 %v5730_v7, %v5700_v31  ;;  %v12363_v19 = vadd.f32 %v12174_v32, %v5592_v37  ;;  %v12380_v31 = vld [vmem:[%s8403_s5 + $0x8] sm:$0xff]   ;;  %v12490_v37 = vld [vmem:[%s8403_s5 + $0x78] sm:$0xff]  }
 0x51e   : > { %v5704_v50 = vmul.f32 %v12357_v21, %v12357_v21  ;;  %13841 = vst [vmem:[#allocation17_spill] sm:$0xff] %v12490_v37 }
 0x51f   : > { %v5732_v34 = vadd.f32 %v5731_v57, %v5701_v11  ;;  %v5664_v30 = vadd.f32 %v12363_v19, %v5663_v54  ;;  %v5702_v26 = vmul.f32 %v12363_v19, %v12363_v19  ;;  %v12446_v54 = vld [vmem:[%s8403_s5 + $0x38] sm:$0xff]   ;;  %v12473_v57 = vld [vmem:[%s8403_s5 + $0x70] sm:$0xff]  }
 0x520   : > { %13839 = vst [vmem:[#allocation16_spill] sm:$0xff] %v12473_v57 }
 0x521   : > { %v5665_v47 = vadd.f32 %v12348_v41, %v5664_v30  ;;  %v5733_v10 = vadd.f32 %v5732_v34, %v5702_v26 }
 0x523   : > { %v5666_v8 = vadd.f32 %v12357_v21, %v5665_v47  ;;  %v5734_v32 = vadd.f32 %v5733_v10, %v5703_v27 }
 0x525   : > { %v5667_v4 = vrot.slane %v5666_v8, 4  ;;  %v5735_v36 = vadd.f32 %v5734_v32, %v5704_v50  ;;  %v6299_v50 = vunpack.c.h.bf16 %v12490_v37 }
 0x527   : > { %v5668_v42 = vadd.f32 %v5667_v4, %v5666_v8  ;;  %v5736_v48 = vrot.slane %v5735_v36, 4 }
 0x529   : > { %v5669_v16 = vrot.slane %v5668_v42, 2  ;;  %v5737_v29 = vadd.f32 %v5736_v48, %v5735_v36  ;;  %v12483_v36 = vld [vmem:[%s8403_s5 + $0x80] sm:$0xff]  }
 0x52a   : > { %13840 = vst [vmem:[#allocation69_spill] sm:$0xff] %v12483_v36 }
 0x52b   : > { %v5670_v12 = vadd.f32 %v5669_v16, %v5668_v42  ;;  %v5738_v56 = vrot.slane %v5737_v29, 2  ;;  %v12409_v42 = vld [vmem:[%s8403_s5 + $0x20] sm:$0xff]  }
 0x52d   : > { %v5671_v6 = vrot.slane %v5670_v12, 1  ;;  %v5739_v53 = vadd.f32 %v5738_v56, %v5737_v29  ;;  %v12418_v56 = vld [vmem:[%s8403_s5 + $0x18] sm:$0xff]  }
 0x52f   : > { %v5672_v40 = vadd.f32 %v5671_v6, %v5670_v12  ;;  %v5740_v33 = vrot.slane %v5739_v53, 1  ;;  %v12421_v6 = vld [vmem:[%s8403_s5 + $0x30] sm:$0xff]   ;;  %v12470_v12 = vld [vmem:[%s8403_s5 + $0x58] sm:$0xff]  }
 0x531   : > { %v5741_v0 = vadd.f32 %v5740_v33, %v5739_v53  ;;  %v12374_v1 = vmul.f32 0.00390625, %v5672_v40  ;;  %v12460_v33 = vld [vmem:[%s8403_s5 + $0x48] sm:$0xff]   ;;  %v12463_v40 = vld [vmem:[%s8403_s5 + $0x60] sm:$0xff]  }
 0x532   : > { %v12480_v53 = vld [vmem:[%s8403_s5 + $0x68] sm:$0xff]  }
 0x533   : > { %v5743_v7 = vmul.f32 0.00390625, %v5741_v0  ;;  %v5744_v9 = vmul.f32 %v12374_v1, %v12374_v1  ;;  %v5776_v52 = vsub.f32 %v12363_v19, %v12374_v1  ;;  %v12449_v0 = vld [vmem:[%s8403_s5 + $0x50] sm:$0xff]   ;;  %v5747_v34 = vsub.f32 %v12186_v17, %v12374_v1 }
 0x534   : > { %v5748_v16 = vsub.f32 %v12192_v44, %v12374_v1  ;;  %v5749_v32 = vsub.f32 %v12183_v51, %v12374_v1  ;;  %v5753_v17 = vsub.f32 %v12204_v25, %v12374_v1  ;;  %v5754_v44 = vsub.f32 %v12213_v43, %v12374_v1 }
 0x535   : > { %v5745_v11 = vsub.f32 %v5743_v7, %v5744_v9  ;;  %v12432_v7 = vld [vmem:[%s8403_s5 + $0x28] sm:$0xff]   ;;  %v12435_v9 = vld [vmem:[%s8403_s5 + $0x40] sm:$0xff]   ;;  %v5755_v8 = vsub.f32 %v12233_v15, %v12374_v1  ;;  %v5757_v51 = vsub.f32 %v12228_v55, %v12374_v1  ;;  %v13842_v15 = vsub.f32 %v12243_v59, %v12374_v1 }
 0x536   : > { %v13843_v55 = vsub.f32 %v12237_v35, %v12374_v1  ;;  %v13846_v59 = vsub.f32 %v12252_v39, %v12374_v1  ;;  %v13847_v35 = vsub.f32 %v12261_v62, %v12374_v1  ;;  %v13851_v39 = vsub.f32 %v12285_v13, %v12374_v1 }
 0x537   : > { %v5746_v27 = vmax.f32 %v5745_v11, 0.0  ;;  %v5750_v11 = vsub.f32 %v12189_v14, %v12374_v1  ;;  %v13852_v62 = vsub.f32 %v12305_v24, %v12374_v1  ;;  %v13856_v13 = vsub.f32 %v12329_v20, %v12374_v1 }
 0x538   : > { %v13857_v24 = vsub.f32 %v12339_v28, %v12374_v1  ;;  %v13861_v20 = vsub.f32 %v12348_v41, %v12374_v1  ;;  %v13867_v41 = vunpack.c.l.bf16 %v12418_v56 }
 0x539   : > { %v5779_v48 = vadd.f32 1e-05, %v5746_v27  ;;  %v5752_v27 = vsub.f32 %v12219_v23, %v12374_v1 }
 0x53b   : > { %8028 = vrsqrt.f32 %v5779_v48  ;;  %v5751_v48 = vsub.f32 %v12209_v2, %v12374_v1 }
 0x545   : > { %v8029_v4 = vpop.eup %8028 }
 0x546   : > { %v5810_v14 = vmul.f32 %v8029_v4, %v5776_v52  ;;  %v5781_v2 = vmul.f32 %v8029_v4, %v5747_v34  ;;  %v5782_v29 = vmul.f32 %v8029_v4, %v5748_v16  ;;  %v5783_v23 = vmul.f32 %v8029_v4, %v5749_v32 }
 0x547   : > { %v5784_v10 = vmul.f32 %v8029_v4, %v5750_v11  ;;  %v5785_v47 = vmul.f32 %v8029_v4, %v5751_v48  ;;  %v5786_v26 = vmul.f32 %v8029_v4, %v5752_v27  ;;  %v5787_v25 = vmul.f32 %v8029_v4, %v5753_v17 }
 0x548   : > { %v5906_v30 = vadd.f32 %v6299_v50, %v5810_v14  ;;  %v5788_v36 = vmul.f32 %v8029_v4, %v5754_v44  ;;  %v5789_v43 = vmul.f32 %v8029_v4, %v5755_v8  ;;  %v5790_v37 = vmul.f32 %v8029_v4, %v13842_v15 }
 0x549   : > { %v5791_v57 = vmul.f32 %v8029_v4, %v5757_v51  ;;  %v5792_v19 = vmul.f32 %v8029_v4, %v13843_v55  ;;  %v13844_v52 = vsub.f32 %v12257_v61, %v12374_v1  ;;  %v13845_v32 = vsub.f32 %v12267_v38, %v12374_v1 }
 0x54a   : > { %5938 = vst [vmem:[%s12538_s20 + $0xe8] sm:$0xff] %v5906_v30  ;;  %v5795_v50 = vmul.f32 %v8029_v4, %v13846_v59  ;;  %v5796_v8 = vmul.f32 %v8029_v4, %v13847_v35  ;;  %v13848_v61 = vsub.f32 %v12281_v5, %v12374_v1  ;;  %v13849_v38 = vsub.f32 %v12291_v46, %v12374_v1 }
 0x54b   : > { %v5793_v34 = vmul.f32 %v8029_v4, %v13844_v52  ;;  %v5794_v16 = vmul.f32 %v8029_v4, %v13845_v32  ;;  %v13850_v48 = vsub.f32 %v12276_v60, %v12374_v1  ;;  %v5800_v17 = vmul.f32 %v8029_v4, %v13851_v39 }
 0x54c   : > { %v5797_v11 = vmul.f32 %v8029_v4, %v13848_v61  ;;  %v5798_v27 = vmul.f32 %v8029_v4, %v13849_v38  ;;  %v5801_v44 = vmul.f32 %v8029_v4, %v13852_v62  ;;  %v13853_v5 = vsub.f32 %v12315_v58, %v12374_v1 }
 0x54d   : > { %v5799_v30 = vmul.f32 %v8029_v4, %v13850_v48  ;;  %v13854_v46 = vsub.f32 %v12300_v22, %v12374_v1  ;;  %v13855_v60 = vsub.f32 %v12309_v63, %v12374_v1  ;;  %v5805_v55 = vmul.f32 %v8029_v4, %v13856_v13 }
 0x54e   : > { %v5802_v51 = vmul.f32 %v8029_v4, %v13853_v5  ;;  %v5806_v52 = vmul.f32 %v8029_v4, %v13857_v24  ;;  %v13858_v58 = vsub.f32 %v12324_v18, %v12374_v1  ;;  %v13859_v22 = vsub.f32 %v12333_v3, %v12374_v1 }
 0x54f   : > { %v5803_v14 = vmul.f32 %v8029_v4, %v13854_v46  ;;  %v5804_v15 = vmul.f32 %v8029_v4, %v13855_v60  ;;  %v13860_v63 = vsub.f32 %v12353_v49, %v12374_v1  ;;  %v5811_v28 = vmul.f32 %v8029_v4, %v13861_v20 }
 0x550   : > { %v5807_v32 = vmul.f32 %v8029_v4, %v13858_v58  ;;  %v5808_v59 = vmul.f32 %v8029_v4, %v13859_v22  ;;  %v13862_v61 = vsub.f32 %v12357_v21, %v12374_v1  ;;  %v13863_v38 = vunpack.c.l.bf16 %v12380_v31 }
 0x551   : > { %v5809_v35 = vmul.f32 %v8029_v4, %v13860_v63  ;;  %v13864_v3 = vunpack.c.h.bf16 %v12380_v31  ;;  %v13865_v62 = vunpack.c.l.bf16 %v12377_v45  ;;  %v13866_v5 = vunpack.c.h.bf16 %v12377_v45 }
 0x552   : > { %v5812_v18 = vmul.f32 %v8029_v4, %v13862_v61  ;;  %v5877_v48 = vadd.f32 %v13863_v38, %v5781_v2  ;;  %v5881_v60 = vadd.f32 %v13867_v41, %v5785_v47  ;;  %v13868_v21 = vunpack.c.h.bf16 %v12418_v56 }
 0x553   : > { %v5878_v39 = vadd.f32 %v13864_v3, %v5782_v29  ;;  %v5879_v49 = vadd.f32 %v13865_v62, %v5783_v23  ;;  %v5880_v46 = vadd.f32 %v13866_v5, %v5784_v10  ;;  %v13869_v4 = vunpack.c.l.bf16 %v12409_v42 }
 0x554   : > { %v5882_v1 = vadd.f32 %v13868_v21, %v5786_v26  ;;  %v13870_v29 = vunpack.c.h.bf16 %v12409_v42  ;;  %v13871_v45 = vunpack.c.l.bf16 %v12432_v7  ;;  %v13872_v23 = vunpack.c.h.bf16 %v12432_v7  ;;  %5909 = vst [vmem:[%s12538_s20] sm:$0xff] %v5877_v48  ;;  %5913 = vst [vmem:[%s12538_s20 + $0x20] sm:$0xff] %v5881_v60 }
 0x555   : > { %v5883_v31 = vadd.f32 %v13869_v4, %v5787_v25  ;;  %v13873_v47 = vunpack.c.l.bf16 %v12421_v6  ;;  %5910 = vst [vmem:[%s12538_s20 + $0x8] sm:$0xff] %v5878_v39  ;;  %5911 = vst [vmem:[%s12538_s20 + $0x10] sm:$0xff] %v5879_v49  ;;  %v13874_v26 = vunpack.c.h.bf16 %v12421_v6  ;;  %v13883_v22 = vunpack.c.l.bf16 %v12470_v12 }
 0x556   : > { %v5884_v2 = vadd.f32 %v13870_v29, %v5788_v36  ;;  %v5885_v10 = vadd.f32 %v13871_v45, %v5789_v43  ;;  %v5886_v13 = vadd.f32 %v13872_v23, %v5790_v37  ;;  %v13875_v36 = vunpack.c.l.bf16 %v12446_v54  ;;  %5912 = vst [vmem:[%s12538_s20 + $0x18] sm:$0xff] %v5880_v46  ;;  %5914 = vst [vmem:[%s12538_s20 + $0x28] sm:$0xff] %v5882_v1 }
 0x557   : > { %v5887_v56 = vadd.f32 %v13873_v47, %v5791_v57  ;;  %v5888_v42 = vadd.f32 %v13874_v26, %v5792_v19  ;;  %v13876_v43 = vunpack.c.h.bf16 %v12446_v54  ;;  %v13877_v37 = vunpack.c.l.bf16 %v12435_v9  ;;  %5915 = vst [vmem:[%s12538_s20 + $0x30] sm:$0xff] %v5883_v31 }
 0x558   : > { %v5889_v25 = vadd.f32 %v13875_v36, %v5793_v34  ;;  %v13878_v57 = vunpack.c.h.bf16 %v12435_v9  ;;  %v13879_v54 = vunpack.c.l.bf16 %v12460_v33  ;;  %v13880_v34 = vunpack.c.h.bf16 %v12460_v33  ;;  %5916 = vst [vmem:[%s12538_s20 + $0x38] sm:$0xff] %v5884_v2  ;;  %5917 = vst [vmem:[%s12538_s20 + $0x40] sm:$0xff] %v5885_v10 }
 0x559   : > { %v5890_v7 = vadd.f32 %v13876_v43, %v5794_v16  ;;  %v5891_v24 = vadd.f32 %v13877_v37, %v5795_v50  ;;  %v13881_v50 = vunpack.c.l.bf16 %v12449_v0  ;;  %5918 = vst [vmem:[%s12538_s20 + $0x48] sm:$0xff] %v5886_v13  ;;  %5919 = vst [vmem:[%s12538_s20 + $0x50] sm:$0xff] %v5887_v56  ;;  %v13882_v9 = vunpack.c.h.bf16 %v12449_v0 }
 0x55a   : > { %v5892_v6 = vadd.f32 %v13878_v57, %v5796_v8  ;;  %v5893_v19 = vadd.f32 %v13879_v54, %v5797_v11  ;;  %v5894_v16 = vadd.f32 %v13880_v34, %v5798_v27  ;;  %v5897_v11 = vadd.f32 %v13883_v22, %v5801_v44  ;;  %5920 = vst [vmem:[%s12538_s20 + $0x58] sm:$0xff] %v5888_v42 }
 0x55b   : > { %v5895_v58 = vadd.f32 %v13881_v50, %v5799_v30  ;;  %v5896_v8 = vadd.f32 %v13882_v9, %v5800_v17  ;;  %v13884_v33 = vunpack.c.h.bf16 %v12470_v12  ;;  %v13885_v63 = vunpack.c.l.bf16 %v12463_v40  ;;  %5921 = vst [vmem:[%s12538_s20 + $0x60] sm:$0xff] %v5889_v25  ;;  %5922 = vst [vmem:[%s12538_s20 + $0x68] sm:$0xff] %v5890_v7 }
 0x55c   : > { %5923 = vst [vmem:[%s12538_s20 + $0x70] sm:$0xff] %v5891_v24  ;;  %v13886_v20 = vunpack.c.h.bf16 %v12463_v40  ;;  %v13887_v17 = vunpack.c.l.bf16 %v12480_v53  ;;  %v13888_v44 = vunpack.c.h.bf16 %v12480_v53  ;;  %5924 = vst [vmem:[%s12538_s20 + $0x78] sm:$0xff] %v5892_v6 }
 0x55d   : > { %v5898_v27 = vadd.f32 %v13884_v33, %v5802_v51  ;;  %v5899_v30 = vadd.f32 %v13885_v63, %v5803_v14  ;;  %v13889_v51 = vld [vmem:[#allocation16_spill] sm:$0xff]  ;;  %5925 = vst [vmem:[%s12538_s20 + $0x80] sm:$0xff] %v5893_v19  ;;  %5926 = vst [vmem:[%s12538_s20 + $0x88] sm:$0xff] %v5894_v16 }
 0x55e   : > { %v5900_v0 = vadd.f32 %v13886_v20, %v5804_v15  ;;  %v5901_v61 = vadd.f32 %v13887_v17, %v5805_v55  ;;  %v5902_v12 = vadd.f32 %v13888_v44, %v5806_v52  ;;  %v13890_v38 = vunpack.c.l.bf16 %v13889_v51  ;;  %5927 = vst [vmem:[%s12538_s20 + $0x90] sm:$0xff] %v5895_v58  ;;  %v13892_v15 = vld [vmem:[#allocation17_spill] sm:$0xff]  ;;  %5928 = vst [vmem:[%s12538_s20 + $0x98] sm:$0xff] %v5896_v8 }
 0x55f   : > { %v13891_v53 = vunpack.c.h.bf16 %v13889_v51  ;;  %v13893_v55 = vunpack.c.l.bf16 %v13892_v15  ;;  %5929 = vst [vmem:[%s12538_s20 + $0xa0] sm:$0xff] %v5897_v11  ;;  %5930 = vst [vmem:[%s12538_s20 + $0xa8] sm:$0xff] %v5898_v27 }
 0x560   : > { %v5903_v14 = vadd.f32 %v13890_v38, %v5807_v32  ;;  %v13894_v32 = vld [vmem:[#allocation69_spill] sm:$0xff]  ;;  %5931 = vst [vmem:[%s12538_s20 + $0xb0] sm:$0xff] %v5899_v30  ;;  %5932 = vst [vmem:[%s12538_s20 + $0xb8] sm:$0xff] %v5900_v0 }
 0x561   : > { %v5904_v40 = vadd.f32 %v13891_v53, %v5808_v59  ;;  %v5905_v52 = vadd.f32 %v13893_v55, %v5809_v35  ;;  %v13895_v48 = vunpack.c.l.bf16 %v13894_v32  ;;  %v13896_v39 = vunpack.c.h.bf16 %v13894_v32  ;;  %5933 = vst [vmem:[%s12538_s20 + $0xc0] sm:$0xff] %v5901_v61  ;;  %5934 = vst [vmem:[%s12538_s20 + $0xc8] sm:$0xff] %v5902_v12 }
 0x562   : > { %5935 = vst [vmem:[%s12538_s20 + $0xd0] sm:$0xff] %v5903_v14 }
 0x563   : > { %v5907_v3 = vadd.f32 %v13895_v48, %v5811_v28  ;;  %v5908_v62 = vadd.f32 %v13896_v39, %v5812_v18  ;;  %5936 = vst [vmem:[%s12538_s20 + $0xd8] sm:$0xff] %v5904_v40  ;;  %5937 = vst [vmem:[%s12538_s20 + $0xe0] sm:$0xff] %v5905_v52 }
 0x565   : > { %5939 = vst [vmem:[%s12538_s20 + $0xf0] sm:$0xff] %v5907_v3  ;;  %5940 = vst [vmem:[%s12538_s20 + $0xf8] sm:$0xff] %v5908_v62 }
 0x566   : > { %8131 = shalt.err (!%p8128_p1)
}
 0x567   : > { %s8132_s11 = scalar_lea.hbm %s12670_s26, 4096  ;;  %s8136_s30 = scalar_lea.hbm %s12739_s3, 8192 }
 0x568   : > { %p8133_p13 = scmp.ne.s32.totalorder %s12670_s26, %s8132_s11  ;;  %p8137_p4 = scmp.lt.u32.totalorder %s12670_s26, %s12739_s3 }
 0x569   : > { %p8138_p5 = scmp.lt.u32.totalorder %s8136_s30, %s8132_s11  ;;  %p8140_p11 = scmp.lt.u32.totalorder %s8132_s11, %s12670_s26 }
 0x56a   : > { %p8134_p6 = pnand %p8133_p13, %p13897_p0 }
 0x56b   : > { %p8139_p8 = por %p8138_p5, %p8137_p4 }
 0x56c   : > { %p8135_p10 = pneg %p8134_p6 }
 0x56d   : > { %p8141_p2 = por %p8140_p11, %p8139_p8 }
 0x56f   : > { %p8142_p3 = pnand %p8141_p2, %p8135_p10 }
 0x571   : > { %8145 = shalt.err (!%p8142_p3)
}
 0x572   : > { %s8196_s18 = smov 128   ;;  %s8197_s20 = smov 8  }
 0x573   : > { %7757 = dma.vmem_to_hbm [thread:$0]  (%p13897_p0), %s12672_s8, 4096, %s12670_s26, %s5942_s28, %s8196_s18, %s8196_s18, %s8197_s20  }
 0x574 PF: > { %s5970_s7 = sand.u32 1, %s8176_s12   ;;  %p13898_p7 = scmp.ne.s32.totalorder %s13056_s19, 0 }
 0x575   : > { %p13899_p9 = scmp.ge.s32.totalorder %s8188_s15, 2  ;;  %s5971_s16 = scalar_lea.sflag [#allocation5], %s5970_s7 }
 0x577   : > { %p7771_p12 = pnand %p13899_p9, %p13898_p7 }
 0x579   : > { %8171 = dma.done.wait (!%p7771_p12), %s5971_s16, 4096  }
 0x57a   : > { %8173 = vsyncadd (!%p7771_p12), %s5971_s16, 4294963200  ;;  %p17_p1 = scmp.ge.s32.totalorder %s8334_s23, 4   ;;  %s13900_s12 = smov %s8180_s13 }
 0x57b   : > { %s13901_s13 = smov %s8184_s14  ;;  %s13902_s14 = smov %s8350_s9 }
 0x57c   : > { %s13903_s15 = smov %s8334_s23  ;;  %19 = sbr.rel (!%p17_p1) target bundleno = 6 (0x6), region = 89 }
 0x583   :  { %5976 = vsyncpa [#allocation4], 1 }
 0x584   :  { %5978 = vsyncpa [#allocation4 + $0x1], 1 }
 0x585   :  { %5979 = vsyncpa [#allocation7], 1 }
 0x586   :  { %5980 = vsyncpa [#allocation5], 1 }
 0x587   :  { %5982 = vsyncpa [#allocation5 + $0x1], 1 }

</bundles_post_ra>
